<compile_context>
chip_gen: v5e
topology: v5e:2x2
jax: 0.10.0
libtpu: 0.0.40
codegen_flags: <defaults>
</compile_context>

<pallas_src>
import jax
import jax.numpy as jnp
from jax.experimental import pallas as pl
from jax.experimental.pallas import tpu as pltpu

IN_FEATURES = 768 * 4 ** 2   # 12288
OUT_FEATURES = 960

_N_PAD = 1024        # weight padded along N so all weight blocks are full / lane-aligned
_TN = 512            # two N tiles -> both v7x TensorCores get work even at a single M tile
_TK_SMALL_M = 2048   # K tile for the small-M (K-reduction) path; 12288 / 2048 = 6 steps
_TM_CAP = 256        # max rows per M tile


def _round_up(x, m):
    return ((x + m - 1) // m) * m


def _choose_tm(m, cap=_TM_CAP):
    """Pick tm (multiple of 16, <= cap) bounding M-padding waste, plus m_pad and #tiles."""
    num_tiles = -(-m // cap)
    tm = _round_up(-(-m // num_tiles), 16)
    return tm, tm * num_tiles, num_tiles


def _mlp_kernel_ksplit(x_ref, w_ref, o_ref):
    """Small-M path. grid = (M tiles, N tiles, K tiles); axis 2 (K) is the reduction axis.

    The output block index is constant across K, so o_ref stays VMEM-resident and is
    accumulated in place (f32)."""
    k = pl.program_id(2)
    partial = jnp.dot(x_ref[...], w_ref[...], preferred_element_type=jnp.float32)

    @pl.when(k == 0)
    def _():
        o_ref[...] = partial

    @pl.when(k > 0)
    def _():
        o_ref[...] += partial


def _mlp_kernel_wres(x_ref, w_ref, o_ref):
    """Weight-resident path. grid = (N tiles, M tiles); full-K dot, single store.

    The weight block index depends only on the outer (N) axis, so the (K, tn) weight slab
    is DMA'd once per N tile and stays in VMEM while every M tile streams past it."""
    o_ref[...] = jnp.dot(x_ref[...], w_ref[...], preferred_element_type=jnp.float32)


def prepare_weight(w):
    """One-time weight prep.

    w: PyTorch nn.Linear weight layout (out_features, in_features), float32.
    Returns transposed, bf16, N-zero-padded weight of shape (IN_FEATURES, _N_PAD)."""
    out_f, in_f = w.shape
    assert out_f == OUT_FEATURES and in_f == IN_FEATURES
    w_t = jnp.transpose(w).astype(jnp.bfloat16)          # (K, N)
    return jnp.pad(w_t, ((0, 0), (0, _N_PAD - out_f)))    # (K, 1024)


@jax.jit
def smolvlm_simple_mlp(x, w_t_padded):
    """Forward pass of SmolVLMSimpleMLP: x @ W.T (bias-free Linear).

    x:           (..., IN_FEATURES), any float dtype (streamed as bf16).
    w_t_padded:  (IN_FEATURES, 1024) bf16, from prepare_weight().
    Returns:     (..., OUT_FEATURES) float32.
    """
    orig_shape = x.shape
    k_dim = orig_shape[-1]
    kp, n_pad = w_t_padded.shape
    assert k_dim == kp == IN_FEATURES and n_pad == _N_PAD

    m = 1
    for d in orig_shape[:-1]:
        m *= d
    if m == 0:  # empty leading dims: nothing to do
        return jnp.zeros((*orig_shape[:-1], OUT_FEATURES), dtype=jnp.float32)

    tm, m_pad, m_tiles = _choose_tm(m)
    n_tiles = _N_PAD // _TN

    x2d = x.reshape(m, k_dim).astype(jnp.bfloat16)
    if m_pad != m:
        x2d = jnp.pad(x2d, ((0, m_pad - m), (0, 0)))

    out_shape = jax.ShapeDtypeStruct((m_pad, OUT_FEATURES), jnp.float32)
    cost = pl.CostEstimate(
        flops=2 * m_pad * k_dim * _N_PAD,
        transcendentals=0,
        bytes_accessed=(m_pad * k_dim * 2          # x (bf16)
                        + k_dim * _N_PAD * 2       # weight (bf16), one pass
                        + m_pad * OUT_FEATURES * 4),  # output (f32)
    )

    if m_tiles == 1:
        # --- Small-M path: K-split reduction grid, output accumulated in VMEM. ---
        tk = _TK_SMALL_M
        out2d = pl.pallas_call(
            _mlp_kernel_ksplit,
            out_shape=out_shape,
            grid_spec=pltpu.PrefetchScalarGridSpec(
                num_scalar_prefetch=0,
                grid=(m_tiles, n_tiles, k_dim // tk),
                in_specs=[
                    pl.BlockSpec((tm, tk), lambda i, j, k: (i, k)),
                    pl.BlockSpec((tk, _TN), lambda i, j, k: (k, j)),
                ],
                out_specs=pl.BlockSpec((tm, _TN), lambda i, j, k: (i, j)),
            ),
            compiler_params=pltpu.CompilerParams(
                dimension_semantics=("parallel", "parallel", "arbitrary"),
                vmem_limit_bytes=32 * 1024 * 1024,
            ),
            cost_estimate=cost,
        )(x2d, w_t_padded)
    else:
        # --- Weight-resident path: full-K weight slab stays in VMEM across all M tiles.
        # Footprint @ tm<=256: 2x12 MiB weight + 2x6 MiB x + 2x0.5 MiB out ~= 37 MiB.
        out2d = pl.pallas_call(
            _mlp_kernel_wres,
            out_shape=out_shape,
            grid_spec=pltpu.PrefetchScalarGridSpec(
                num_scalar_prefetch=0,
                grid=(n_tiles, m_tiles),
                in_specs=[
                    pl.BlockSpec((tm, k_dim), lambda j, i: (i, 0)),
                    pl.BlockSpec((k_dim, _TN), lambda j, i: (0, j)),
                ],
                out_specs=pl.BlockSpec((tm, _TN), lambda j, i: (i, j)),
            ),
            compiler_params=pltpu.CompilerParams(
                # N parallel (megacore splits the two weight slabs across cores);
                # M arbitrary so each core keeps its slab resident across its M tiles.
                dimension_semantics=("parallel", "arbitrary"),
                vmem_limit_bytes=48 * 1024 * 1024,
            ),
            cost_estimate=cost,
        )(x2d, w_t_padded)

    if m_pad != m:
        out2d = out2d[:m]
    return out2d.reshape(*orig_shape[:-1], OUT_FEATURES)


if __name__ == "__main__":
    key = jax.random.PRNGKey(0)
    kx, kw, kx2 = jax.random.split(key, 3)

    # Deterministic nn.Linear-style weight: U(-bound, bound), bound = 1/sqrt(in_features).
    bound = 1.0 / (IN_FEATURES ** 0.5)
    w = jax.random.uniform(
        kw, (OUT_FEATURES, IN_FEATURES), minval=-bound, maxval=bound, dtype=jnp.float32
    )
    w_t_padded = prepare_weight(w)          # one-time cast/transpose/pad of the weight

    # --- Small-M demo (exercises the K-split path) ---
    batch, seq = 2, 8
    x = jax.random.normal(kx, (batch, seq, IN_FEATURES), dtype=jnp.float32)
    out = smolvlm_simple_mlp(x, w_t_padded)
    out = jax.block_until_ready(out)
    assert out.shape == (batch, seq, OUT_FEATURES)
    assert out.dtype == jnp.float32

    ref = jnp.einsum("bsk,nk->bsn", x, w, precision=jax.lax.Precision.HIGHEST)
    max_err = float(jnp.max(jnp.abs(out - ref)))
    # Tolerance reflects bf16-streamed operands with f32 accumulation over K = 12288.
    assert max_err < 5e-2, f"small-M mismatch vs reference: max abs err {max_err}"

    # --- Larger-M check (exercises the weight-VMEM-resident path) ---
    m_big = 320
    x_big = jax.random.normal(kx2, (m_big, IN_FEATURES), dtype=jnp.float32)
    out_big = jax.block_until_ready(smolvlm_simple_mlp(x_big, w_t_padded))
    assert out_big.shape == (m_big, OUT_FEATURES)
    ref_big = jnp.einsum("mk,nk->mn", x_big, w, precision=jax.lax.Precision.HIGHEST)
    max_err_big = float(jnp.max(jnp.abs(out_big - ref_big)))
    assert max_err_big < 5e-2, f"large-M mismatch vs reference: max abs err {max_err_big}"

    print("KERNEL_OK")
</pallas_src>

<mosaic_0001>
module attributes {stable_mosaic.version = 11 : i64} {
  func.func @_mlp_kernel_ksplit(%arg0: i32, %arg1: i32, %arg2: i32, %arg3: memref<16x2048xbf16, #tpu.memory_space<vmem>>, %arg4: memref<2048x512xbf16, #tpu.memory_space<vmem>>, %arg5: memref<16x512xf32, #tpu.memory_space<vmem>>) attributes {dimension_semantics = [#tpu.dimension_semantics<parallel>, #tpu.dimension_semantics<parallel>, #tpu.dimension_semantics<arbitrary>], iteration_bounds = array<i64: 1, 2, 6>, scalar_prefetch = 0 : i64, scratch_operands = 0 : i64, tpu.core_type = #tpu.core_type<tc>, window_params = [{transform_indices = @transform_0, window_bounds = array<i64: 16, 2048>}, {transform_indices = @transform_1, window_bounds = array<i64: 2048, 512>}, {transform_indices = @transform_2, window_bounds = array<i64: 16, 512>}]} {
    %c0 = arith.constant 0 : index
    %c0_0 = arith.constant 0 : index
    %0 = vector.load %arg3[%c0, %c0_0] : memref<16x2048xbf16, #tpu.memory_space<vmem>>, vector<16x2048xbf16>
    %c0_1 = arith.constant 0 : index
    %c0_2 = arith.constant 0 : index
    %1 = vector.load %arg4[%c0_1, %c0_2] : memref<2048x512xbf16, #tpu.memory_space<vmem>>, vector<2048x512xbf16>
    %cst = arith.constant dense<0.000000e+00> : vector<16x512xf32>
    %2 = tpu.matmul %0, %1, %cst {dimension_numbers = #tpu.dot_dimension_numbers<[1], [0], [0], [1], [0, 0, 1, 1], [], []>} : vector<16x2048xbf16>, vector<2048x512xbf16>, vector<16x512xf32> -> vector<16x512xf32>
    %c0_i32 = arith.constant 0 : i32
    %3 = arith.cmpi eq, %arg2, %c0_i32 : i32
    %4 = arith.extui %3 : i1 to i32
    %c0_i32_3 = arith.constant 0 : i32
    %5 = arith.cmpi ne, %4, %c0_i32_3 : i32
    scf.if %5 {
      %c0_6 = arith.constant 0 : index
      %c0_7 = arith.constant 0 : index
      %9 = vector.load %arg5[%c0_6, %c0_7] : memref<16x512xf32, #tpu.memory_space<vmem>>, vector<16x512xf32>
      tpu.vector_store %arg5[%c0_6, %c0_7], %2 {strides = array<i32>} : memref<16x512xf32, #tpu.memory_space<vmem>>, vector<16x512xf32>,
    } else {
    }
    %c0_i32_4 = arith.constant 0 : i32
    %6 = arith.cmpi sgt, %arg2, %c0_i32_4 : i32
    %7 = arith.extui %6 : i1 to i32
    %c0_i32_5 = arith.constant 0 : i32
    %8 = arith.cmpi ne, %7, %c0_i32_5 : i32
    scf.if %8 {
      %c0_6 = arith.constant 0 : index
      %c0_7 = arith.constant 0 : index
      %9 = vector.load %arg5[%c0_6, %c0_7] : memref<16x512xf32, #tpu.memory_space<vmem>>, vector<16x512xf32>
      %10 = arith.addf %9, %2 : vector<16x512xf32>
      %c0_8 = arith.constant 0 : index
      %c0_9 = arith.constant 0 : index
      %11 = vector.load %arg5[%c0_8, %c0_9] : memref<16x512xf32, #tpu.memory_space<vmem>>, vector<16x512xf32>
      tpu.vector_store %arg5[%c0_8, %c0_9], %10 {strides = array<i32>} : memref<16x512xf32, #tpu.memory_space<vmem>>, vector<16x512xf32>,
    } else {
    }
    return
  }
  func.func @transform_0(%arg0: i32, %arg1: i32, %arg2: i32) -> (i32, i32) {
    %c0_i32 = arith.constant 0 : i32
    return %arg0, %arg2 : i32, i32
  }
  func.func @transform_1(%arg0: i32, %arg1: i32, %arg2: i32) -> (i32, i32) {
    %c0_i32 = arith.constant 0 : i32
    return %arg2, %arg1 : i32, i32
  }
  func.func @transform_2(%arg0: i32, %arg1: i32, %arg2: i32) -> (i32, i32) {
    %c0_i32 = arith.constant 0 : i32
    return %arg0, %arg1 : i32, i32
  }
}

</mosaic_0001>

<bundles_post_ra>
// kernel: smolvlm_simple_mlp.1
= control target key start
LH: loop header
LB: loop body
LE: loop exit
PB: predicated region body
PF: predicated region fallthrough
CT: control target
= control target key end

     0   :  { %s8994_s0 = inlined_call_operand.vmem [shape: bf16[16,12288], index: 0, kind: input, shape index: {}]   ;;  %s8995_s1 = inlined_call_operand.hbm [shape: bf16[12288,1024], index: 1, kind: input, shape index: {}]   ;;  %s8996_s2 = inlined_call_operand.hbm [shape: f32[16,960], index: 2, kind: output, shape index: {}]  }
   0x1   :  { %9002 = sst [smem:[#allocation17_spill]] %s8994_s0 }
   0x2   :  { %7 = vsyncpa [#allocation4], 0 }
   0x3   :  { %9 = vsyncpa [#allocation4 + $0x1], 0 }
   0x4   :  { %10 = vsyncpa [#allocation5], 0 }
   0x5   :  { %12 = vsyncpa [#allocation5 + $0x1], 0  ;;  %s7482_s9 = smov 0   ;;  %s7484_s10 = smov 0  }
   0x6   :  { %s7486_s11 = smov 0   ;;  %s7488_s12 = smov 0  }
   0x7   :  { %s7490_s13 = smov 0   ;;  %s7492_s14 = smov 0  }
   0x8   :  { %s7494_s15 = smov 0   ;;  %s7496_s16 = smov 0  }
   0x9   :  { %s7498_s17 = smov 0   ;;  %s7500_s18 = smov 0  }
   0xa   :  { %s7502_s19 = smov 0   ;;  %s7504_s20 = smov 0  }
   0xb   :  { %s7506_s21 = smov 0  }
   0xc LB: > { %9003 = sst [smem:[#allocation9_spill]] %s7419_s11  ;;  %s4508_s22 = sadd.s32 4294967295, %s7459_s21   ;;  %s7459_s21 = sphi %s7506_s21, %s18_s21   ;;  %s7455_s20 = sphi %s7504_s20, %s9034_s20   ;;  %s7451_s19 = sphi %s7502_s19, %s9033_s19   ;;  %s7447_s18 = sphi %s7500_s18, %s9032_s18   ;;  %s7443_s17 = sphi %s7498_s17, %s9031_s17   ;;  %s7439_s16 = sphi %s7496_s16, %s9023_s16   ;;  %s7435_s15 = sphi %s7494_s15, %s9022_s15   ;;  %s7431_s14 = sphi %s7492_s14, %s9030_s14   ;;  %s7427_s13 = sphi %s7490_s13, %s9029_s13   ;;  %s7423_s12 = sphi %s7488_s12, %s9028_s12   ;;  %s7419_s11 = sphi %s7486_s11, %s9020_s11   ;;  %s7415_s10 = sphi %s7484_s10, %s9027_s10   ;;  %s7411_s9 = sphi %s7482_s9, %s9026_s9  }
   0xd   : > { %9004 = sst [smem:[#allocation10_spill]] %s7439_s16  ;;  %s4509_s23 = sadd.s32 4294967294, %s7459_s21  }
   0xe   : > { %s30_s24 = sadd.s32 1, %s7451_s19  ;;  %s33_s25 = sadd.s32 1, %s7455_s20 }
   0xf   : > { %p31_p0 = scmp.ge.s32.totalorder %s30_s24, 6  ;;  %s46_s26 = sadd.s32 1, %s7439_s16 }
  0x10   : > { %p53_p1 = scmp.ne.s32.totalorder %s7439_s16, %s7435_s15  ;;  %p54_p2 = scmp.eq.s32.totalorder %s7459_s21, 0 }
  0x11   : > { %s9036_s24 = smov (%p31_p0, %s30_s24), 0  ;;  %s9038_s25 = smov (!%p31_p0, %s33_s25), %s7455_s20 }
  0x12   : > { %9005 = sst [smem:[#allocation11_spill]] %s9036_s24  ;;  %s42_s27 = ssub.s32 %s7451_s19, %s9036_s24 }
  0x13   : > { %p7560_p3 = por %p54_p2, %p53_p1  ;;  %p35_p4 = scmp.ge.s32.totalorder %s9038_s25, 2 }
  0x14   : > { %p44_p5 = scmp.eq.s32.totalorder %s42_s27, 0  ;;  %s74_s29 = sadd.s32 1, %s7431_s14 }
  0x15   : > { %p81_p6 = scmp.ne.s32.totalorder %s7431_s14, %s7427_s13  ;;  %s9040_s25 = smov (%p35_p4, %s9038_s25), 0 }
  0x16   : > { %9007 = sst [smem:[#allocation12_spill]] %s9040_s25  ;;  %s70_s3 = ssub.s32 %s7455_s20, %s9040_s25 }
  0x17   : > { %s7570_s30 = scalar_select %p44_p5, %s7439_s16, %s46_s26  }
  0x18   : > { %p7574_p7 = por %p81_p6, %p54_p2  ;;  %s71_s5 = sor.u32 %s70_s3, %s42_s27 }
  0x19   : > { %9008 = sst [smem:[#allocation13_spill]] %s7570_s30  ;;  %p87_p8 = scmp.ne.s32.totalorder %s7427_s13, %s7423_s12 }
  0x1a   : > { %p72_p9 = scmp.eq.s32.totalorder %s71_s5, 0  ;;  %p88_p10 = scmp.eq.s32.totalorder %s4508_s22, 0 }
  0x1b   : > { %p100_p11 = scmp.eq.s32.totalorder %s70_s3, 0  ;;  %s102_s6 = sadd.s32 1, %s7419_s11 }
  0x1c   : > { %s7584_s7 = scalar_select %p72_p9, %s7431_s14, %s74_s29  }
  0x1d   : > { %p7586_p12 = por %p88_p10, %p87_p8  ;;  %p112_p13 = scmp.ne.s32.totalorder %s7419_s11, %s7415_s10 }
  0x1e   : > { %9010 = sst [smem:[#allocation14_spill]] %s7584_s7  ;;  %p113_p0 = scmp.eq.s32.totalorder %s4508_s22, 11 }
  0x1f   : > { %s7593_s26 = scalar_select %p100_p11, %s7419_s11, %s102_s6  }
  0x20   : > { %p118_p1 = scmp.ne.s32.totalorder %s7415_s10, %s7411_s9  ;;  %p119_p2 = scmp.eq.s32.totalorder %s4509_s23, 11 }
  0x21   : > { %9012 = sst [smem:[#allocation15_spill]] %s7593_s26  ;;  %p7601_p4 = por %p113_p0, %p112_p13 }
  0x22   : > { %p7605_p5 = por %p119_p2, %p118_p1  ;;  %p4511_p6 = scmp.ge.s32.totalorder %s7459_s21, 12 }
  0x24   : > { %s9014_s27 = scalar_select %p7605_p5, 1, 0 }
  0x25   : > { %135 = sbr.rel (%p4511_p6) target bundleno = 76 (0x4c), region = 16 }
  0x26   : > { %9015 = sst [smem:[#allocation16_spill]] %s9014_s27 }
  0x2a   : > { %138 = sbr.rel (!%p7560_p3) target bundleno = 68 (0x44), region = 20  ;;  %s140_s22 = sand.u32 (%p7560_p3), 1, %s7439_s16  }
  0x2b   : > { %s6643_s29 = sshll.u32 (%p7560_p3), %s7451_s19, 6  ;;  %s4512_s3 = sshll.u32 (%p7560_p3), %s140_s22, 7 }
  0x2c   : > { %s9016_s0 = sld [smem:[#allocation17_spill]] (%p7560_p3)  ;;  %s142_s28 = scalar_lea.vmem (%p7560_p3), [#allocation2], %s4512_s3 }
  0x32   : > { %s7617_s6 = scalar_lea.vmem %s9016_s0, %s6643_s29 }
  0x33   : > { %v161_v0 = vld [vmem:[%s7617_s6] sm:$0xff]  ;;  %v163_v1 = vld [vmem:[%s7617_s6 + $0x8] sm:$0xff]  ;;  %v165_v2 = vld [vmem:[%s7617_s6 + $0x10] sm:$0xff] }
  0x34   : > { %162 = vst [vmem:[%s142_s28] sm:$0xff] %v161_v0  ;;  %v167_v3 = vld [vmem:[%s7617_s6 + $0x18] sm:$0xff]  ;;  %v169_v4 = vld [vmem:[%s7617_s6 + $0x20] sm:$0xff]  ;;  %v171_v5 = vld [vmem:[%s7617_s6 + $0x28] sm:$0xff] }
  0x35   : > { %164 = vst [vmem:[%s142_s28 + $0x8] sm:$0xff] %v163_v1  ;;  %v173_v6 = vld [vmem:[%s7617_s6 + $0x30] sm:$0xff]  ;;  %v175_v7 = vld [vmem:[%s7617_s6 + $0x38] sm:$0xff]  ;;  %v177_v8 = vld [vmem:[%s7617_s6 + $0x180] sm:$0xff] }
  0x36   : > { %166 = vst [vmem:[%s142_s28 + $0x10] sm:$0xff] %v165_v2  ;;  %v179_v9 = vld [vmem:[%s7617_s6 + $0x188] sm:$0xff]  ;;  %v181_v10 = vld [vmem:[%s7617_s6 + $0x190] sm:$0xff]  ;;  %v183_v11 = vld [vmem:[%s7617_s6 + $0x198] sm:$0xff] }
  0x37   : > { %168 = vst [vmem:[%s142_s28 + $0x18] sm:$0xff] %v167_v3  ;;  %v185_v12 = vld [vmem:[%s7617_s6 + $0x1a0] sm:$0xff]  ;;  %v187_v13 = vld [vmem:[%s7617_s6 + $0x1a8] sm:$0xff]  ;;  %v189_v14 = vld [vmem:[%s7617_s6 + $0x1b0] sm:$0xff] }
  0x38   : > { %170 = vst [vmem:[%s142_s28 + $0x20] sm:$0xff] %v169_v4  ;;  %v191_v15 = vld [vmem:[%s7617_s6 + $0x1b8] sm:$0xff] }
  0x39   : > { %172 = vst [vmem:[%s142_s28 + $0x28] sm:$0xff] %v171_v5 }
  0x3a   : > { %174 = vst [vmem:[%s142_s28 + $0x30] sm:$0xff] %v173_v6 }
  0x3b   : > { %176 = vst [vmem:[%s142_s28 + $0x38] sm:$0xff] %v175_v7 }
  0x3c   : > { %178 = vst [vmem:[%s142_s28 + $0x40] sm:$0xff] %v177_v8 }
  0x3d   : > { %180 = vst [vmem:[%s142_s28 + $0x48] sm:$0xff] %v179_v9 }
  0x3e   : > { %182 = vst [vmem:[%s142_s28 + $0x50] sm:$0xff] %v181_v10 }
  0x3f   : > { %184 = vst [vmem:[%s142_s28 + $0x58] sm:$0xff] %v183_v11 }
  0x40   : > { %186 = vst [vmem:[%s142_s28 + $0x60] sm:$0xff] %v185_v12 }
  0x41   : > { %188 = vst [vmem:[%s142_s28 + $0x68] sm:$0xff] %v187_v13 }
  0x42   : > { %190 = vst [vmem:[%s142_s28 + $0x70] sm:$0xff] %v189_v14 }
  0x43   : > { %192 = vst [vmem:[%s142_s28 + $0x78] sm:$0xff] %v191_v15 }
  0x44 PF: > { %s199_s22 = sand.u32 1, %s7431_s14   ;;  %s4517_s29 = sshll.u32 %s7455_s20, 2 }
  0x45   : > { %s4515_s3 = sshll.u32 %s199_s22, 12  ;;  %s6644_s23 = sshll.u32 %s7451_s19, 11 }
  0x46   : > { %s209_s5 = sadd.s32 %s6644_s23, %s4517_s29  ;;  %s203_s0 = scalar_lea.vmem [#allocation3], %s4515_s3 }
  0x47   : > { %s214_s25 = sshll.u32 %s203_s0, 4  ;;  %s4519_s24 = sshll.u32 %s209_s5, 2  ;;  %s215_s25 = int_to_ptr.vmem [resolvable:$true] %s214_s25 }
  0x48   : > { %s211_s6 = scalar_lea.hbm %s8995_s1, %s4519_s24  ;;  %s200_s28 = scalar_lea.sflag [#allocation4], %s199_s22 }
  0x49   : > { %s212_s7 = sshll.u32 %s211_s6, 4  ;;  %s7461_s26 = smov 512   ;;  %s213_s7 = int_to_ptr.hbm [resolvable:$true] %s212_s7 }
  0x4a   : > { %s7462_s11 = smov 256   ;;  %s7463_s27 = smov 16  }
  0x4b   : > { %7174 = dma.hbm_to_vmem [thread:$0]  (%p7574_p7), %s213_s7, 65536, %s215_s25, %s200_s28, %s7461_s26, %s7462_s11, %s7463_s27  }
  0x4c PF: > { %p4520_p3 = scmp.ge.s32.totalorder %s7459_s21, 1  ;;  %p222_p8 = scmp.lt.s32.totalorder %s7459_s21, 13 }
  0x4e   : > { %p223_p9 = pnand %p4520_p3, %p222_p8 }
  0x4f   : > { %s229_s0 = sand.u32 (!%p223_p9), 1, %s7435_s15   ;;  %s235_s16 = sand.u32 (!%p223_p9), 1, %s7427_s13  }
  0x50   : > { %226 = sbr.rel (%p223_p9) target bundleno = 792 (0x318), region = 47  ;;  %s4521_s24 = sshll.u32 (!%p223_p9), %s229_s0, 7 }
  0x51   : > { %s4522_s30 = sshll.u32 (!%p223_p9), %s235_s16, 12  ;;  %s7647_s22 = scalar_lea.vmem (!%p223_p9), [#allocation2], %s4521_s24 }
  0x52   : > { %s236_s29 = scalar_lea.sflag (!%p223_p9), [#allocation4], %s235_s16  ;;  %s7649_s3 = scalar_lea.vmem (!%p223_p9), [#allocation3], %s4522_s30 }
  0x55   : > { %7402 = dma.done.wait (%p7586_p12), %s236_s29, 65536  }
  0x56   : > { %7404 = vsyncadd (%p7586_p12), %s236_s29, 4294901760  ;;  %s262_s11 = sand.u32 1, %s7415_s10   ;;  %v4702_v16 = vld [vmem:[%s7649_s3 + $0xe0] sm:$0xf]  ;;  %v6691_v17 = vld [vmem:[%s7649_s3 + $0xec] sm:$0xf0] }
  0x57   : > { %s7658_s15 = sshll.u32 %s262_s11, 6  ;;  %v4830_v18 = vld [vmem:[%s7649_s3 + $0x1e0] sm:$0xf]  ;;  %v4703_v19 = vor.u32 %v6691_v17, %v4702_v16  ;;  %v6723_v20 = vld [vmem:[%s7649_s3 + $0x1ec] sm:$0xf0]  ;;  %p6636_p7 = scmp.ne.s32.totalorder %s7443_s17, 0 }
  0x58   : > { %v4958_v21 = vld [vmem:[%s7649_s3 + $0x2e0] sm:$0xf]  ;;  %v6755_v22 = vld [vmem:[%s7649_s3 + $0x2ec] sm:$0xf0]  ;;  %v4831_v23 = vor.u32 %v6723_v20, %v4830_v18  ;;  %s8888_s25 = scalar_lea.vmem [#allocation6], %s7658_s15 }
  0x59   : > { %v4959_v24 = vor.u32 %v6755_v22, %v4958_v21  ;;  %v5086_v25 = vld [vmem:[%s7649_s3 + $0x3e0] sm:$0xf]  ;;  %v6787_v26 = vld [vmem:[%s7649_s3 + $0x3ec] sm:$0xf0]  ;;  %3439 = vmatpush.bf16.msra.mxu0 %v4703_v19 }
  0x5a   : > { %v4686_v27 = vld [vmem:[%s7649_s3 + $0xc0] sm:$0xf]  ;;  %v5087_v28 = vor.u32 %v6787_v26, %v5086_v25  ;;  %v6687_v29 = vld [vmem:[%s7649_s3 + $0xcc] sm:$0xf0]  ;;  %3453 = vmatpush.bf16.msra.mxu1 %v4831_v23 }
  0x5b   : > { %v4814_v30 = vld [vmem:[%s7649_s3 + $0x1c0] sm:$0xf]  ;;  %v6719_v31 = vld [vmem:[%s7649_s3 + $0x1cc] sm:$0xf0]  ;;  %3467 = vmatpush.bf16.msra.mxu2 %v4959_v24  ;;  %v4687_v32 = vor.u32 %v6687_v29, %v4686_v27 }
  0x5c   : > { %v4815_v33 = vor.u32 %v6719_v31, %v4814_v30  ;;  %v4942_v34 = vld [vmem:[%s7649_s3 + $0x2c0] sm:$0xf]  ;;  %v6751_v35 = vld [vmem:[%s7649_s3 + $0x2cc] sm:$0xf0]  ;;  %3481 = vmatpush.bf16.msra.mxu3 %v5087_v28 }
  0x5d   : > { %v5070_v36 = vld [vmem:[%s7649_s3 + $0x3c0] sm:$0xf]  ;;  %v4943_v37 = vor.u32 %v6751_v35, %v4942_v34  ;;  %v6783_v38 = vld [vmem:[%s7649_s3 + $0x3cc] sm:$0xf0]  ;;  %3440 = vmatpush.bf16.msra.mxu0 %v4687_v32 }
  0x5e   : > { %v4670_v39 = vld [vmem:[%s7649_s3 + $0xa0] sm:$0xf]  ;;  %v6683_v40 = vld [vmem:[%s7649_s3 + $0xac] sm:$0xf0]  ;;  %v5071_v41 = vor.u32 %v6783_v38, %v5070_v36  ;;  %3454 = vmatpush.bf16.msra.mxu1 %v4815_v33 }
  0x5f   : > { %v4798_v42 = vld [vmem:[%s7649_s3 + $0x1a0] sm:$0xf]  ;;  %v6715_v43 = vld [vmem:[%s7649_s3 + $0x1ac] sm:$0xf0]  ;;  %v4671_v45 = vor.u32 %v6683_v40, %v4670_v39  ;;  %3468 = vmatpush.bf16.msra.mxu2 %v4943_v37 }
  0x60   : > { %v4926_v44 = vld [vmem:[%s7649_s3 + $0x2a0] sm:$0xf]  ;;  %v6747_v46 = vld [vmem:[%s7649_s3 + $0x2ac] sm:$0xf0]  ;;  %v4799_v49 = vor.u32 %v6715_v43, %v4798_v42  ;;  %3482 = vmatpush.bf16.msra.mxu3 %v5071_v41 }
  0x61   : > { %v5054_v47 = vld [vmem:[%s7649_s3 + $0x3a0] sm:$0xf]  ;;  %v6779_v48 = vld [vmem:[%s7649_s3 + $0x3ac] sm:$0xf0]  ;;  %v4927_v50 = vor.u32 %v6747_v46, %v4926_v44  ;;  %3441 = vmatpush.bf16.msra.mxu0 %v4671_v45 }
  0x62   : > { %v4654_v51 = vld [vmem:[%s7649_s3 + $0x80] sm:$0xf]  ;;  %v6679_v52 = vld [vmem:[%s7649_s3 + $0x8c] sm:$0xf0]  ;;  %v5055_v54 = vor.u32 %v6779_v48, %v5054_v47  ;;  %3455 = vmatpush.bf16.msra.mxu1 %v4799_v49 }
  0x63   : > { %v4782_v53 = vld [vmem:[%s7649_s3 + $0x180] sm:$0xf]  ;;  %v6711_v55 = vld [vmem:[%s7649_s3 + $0x18c] sm:$0xf0]  ;;  %v4655_v60 = vor.u32 %v6679_v52, %v4654_v51  ;;  %3469 = vmatpush.bf16.msra.mxu2 %v4927_v50 }
  0x64   : > { %v4910_v56 = vld [vmem:[%s7649_s3 + $0x280] sm:$0xf]  ;;  %v6743_v57 = vld [vmem:[%s7649_s3 + $0x28c] sm:$0xf0]  ;;  %v4783_v61 = vor.u32 %v6711_v55, %v4782_v53  ;;  %3483 = vmatpush.bf16.msra.mxu3 %v5055_v54 }
  0x65   : > { %v5038_v58 = vld [vmem:[%s7649_s3 + $0x380] sm:$0xf]  ;;  %v6775_v59 = vld [vmem:[%s7649_s3 + $0x38c] sm:$0xf0]  ;;  %v4911_v62 = vor.u32 %v6743_v57, %v4910_v56  ;;  %3442 = vmatpush.bf16.msra.mxu0 %v4655_v60 }
  0x66   : > { %v4638_v63 = vld [vmem:[%s7649_s3 + $0x60] sm:$0xf]  ;;  %v6675_v0 = vld [vmem:[%s7649_s3 + $0x6c] sm:$0xf0]  ;;  %v5039_v2 = vor.u32 %v6775_v59, %v5038_v58  ;;  %3456 = vmatpush.bf16.msra.mxu1 %v4783_v61 }
  0x67   : > { %v4766_v1 = vld [vmem:[%s7649_s3 + $0x160] sm:$0xf]  ;;  %v6707_v3 = vld [vmem:[%s7649_s3 + $0x16c] sm:$0xf0]  ;;  %v4639_v8 = vor.u32 %v6675_v0, %v4638_v63  ;;  %3470 = vmatpush.bf16.msra.mxu2 %v4911_v62 }
  0x68   : > { %v4894_v4 = vld [vmem:[%s7649_s3 + $0x260] sm:$0xf]  ;;  %v6739_v5 = vld [vmem:[%s7649_s3 + $0x26c] sm:$0xf0]  ;;  %v4767_v9 = vor.u32 %v6707_v3, %v4766_v1  ;;  %3484 = vmatpush.bf16.msra.mxu3 %v5039_v2 }
  0x69   : > { %v5022_v6 = vld [vmem:[%s7649_s3 + $0x360] sm:$0xf]  ;;  %v6771_v7 = vld [vmem:[%s7649_s3 + $0x36c] sm:$0xf0]  ;;  %v4895_v10 = vor.u32 %v6739_v5, %v4894_v4  ;;  %3443 = vmatpush.bf16.msra.mxu0 %v4639_v8 }
  0x6a   : > { %v4622_v11 = vld [vmem:[%s7649_s3 + $0x40] sm:$0xf]  ;;  %v6671_v12 = vld [vmem:[%s7649_s3 + $0x4c] sm:$0xf0]  ;;  %v5023_v14 = vor.u32 %v6771_v7, %v5022_v6  ;;  %3457 = vmatpush.bf16.msra.mxu1 %v4767_v9  ;;  %v4534_v6 = vld [vmem:[%s7647_s22 + $0x8] sm:$0xf] }
  0x6b   : > { %v4750_v13 = vld [vmem:[%s7649_s3 + $0x140] sm:$0xf]  ;;  %v6703_v15 = vld [vmem:[%s7649_s3 + $0x14c] sm:$0xf0]  ;;  %v4623_v20 = vor.u32 %v6671_v12, %v4622_v11  ;;  %3471 = vmatpush.bf16.msra.mxu2 %v4895_v10  ;;  %v6654_v11 = vld [vmem:[%s7647_s22 + $0x44] sm:$0xf0] }
  0x6c   : > { %v4878_v16 = vld [vmem:[%s7649_s3 + $0x240] sm:$0xf]  ;;  %v6735_v17 = vld [vmem:[%s7649_s3 + $0x24c] sm:$0xf0]  ;;  %v4751_v21 = vor.u32 %v6703_v15, %v4750_v13  ;;  %3485 = vmatpush.bf16.msra.mxu3 %v5023_v14 }
  0x6d   : > { %v5006_v18 = vld [vmem:[%s7649_s3 + $0x340] sm:$0xf]  ;;  %v6767_v19 = vld [vmem:[%s7649_s3 + $0x34c] sm:$0xf0]  ;;  %v4879_v22 = vor.u32 %v6735_v17, %v4878_v16  ;;  %3444 = vmatpush.bf16.msra.mxu0 %v4623_v20  ;;  %v7751_v17 = vor.u32 %v6654_v11, %v4534_v6 }
  0x6e   : > { %v4606_v23 = vld [vmem:[%s7649_s3 + $0x20] sm:$0xf]  ;;  %v6667_v24 = vld [vmem:[%s7649_s3 + $0x2c] sm:$0xf0]  ;;  %v5007_v26 = vor.u32 %v6767_v19, %v5006_v18  ;;  %3458 = vmatpush.bf16.msra.mxu1 %v4751_v21 }
  0x6f   : > { %v4734_v25 = vld [vmem:[%s7649_s3 + $0x120] sm:$0xf]  ;;  %v6699_v27 = vld [vmem:[%s7649_s3 + $0x12c] sm:$0xf0]  ;;  %v4607_v32 = vor.u32 %v6667_v24, %v4606_v23  ;;  %3472 = vmatpush.bf16.msra.mxu2 %v4879_v22  ;;  %v6645_v22 = vld [vmem:[%s7647_s22 + $0x4] sm:$0xf] }
  0x70   : > { %v4862_v28 = vld [vmem:[%s7649_s3 + $0x220] sm:$0xf]  ;;  %v6731_v29 = vld [vmem:[%s7649_s3 + $0x22c] sm:$0xf0]  ;;  %v4735_v35 = vor.u32 %v6699_v27, %v4734_v25  ;;  %3486 = vmatpush.bf16.msra.mxu3 %v5007_v26  ;;  %v4528_v23 = vld [vmem:[%s7647_s22 + $0x40] sm:$0xf0] }
  0x71   : > { %v4990_v30 = vld [vmem:[%s7649_s3 + $0x320] sm:$0xf]  ;;  %v6763_v31 = vld [vmem:[%s7649_s3 + $0x32c] sm:$0xf0]  ;;  %v4863_v36 = vor.u32 %v6731_v29, %v4862_v28  ;;  %3445 = vmatpush.bf16.msra.mxu0 %v4607_v32  ;;  %v6646_v24 = vld [vmem:[%s7647_s22 + $0xc] sm:$0xf]  ;;  %v7761_v26 = vor.u32 %v6645_v22, %v4528_v23 }
  0x72   : > { %v4590_v33 = vld [vmem:[%s7649_s3] sm:$0xf]  ;;  %v6663_v34 = vld [vmem:[%s7649_s3 + $0xc] sm:$0xf0]  ;;  %v4991_v40 = vor.u32 %v6763_v31, %v4990_v30  ;;  %3459 = vmatpush.bf16.msra.mxu1 %v4735_v35  ;;  %v4536_v27 = vld [vmem:[%s7647_s22 + $0x48] sm:$0xf0] }
  0x73   : > { %v4718_v37 = vld [vmem:[%s7649_s3 + $0x100] sm:$0xf]  ;;  %v6695_v38 = vld [vmem:[%s7649_s3 + $0x10c] sm:$0xf0]  ;;  %v4591_v47 = vor.u32 %v6663_v34, %v4590_v33  ;;  %3473 = vmatpush.bf16.msra.mxu2 %v4863_v36  ;;  %v7767_v33 = vor.u32 %v6646_v24, %v4536_v27 }
  0x74   : > { %v4846_v39 = vld [vmem:[%s7649_s3 + $0x200] sm:$0xf]  ;;  %v6727_v41 = vld [vmem:[%s7649_s3 + $0x20c] sm:$0xf0]  ;;  %v4719_v51 = vor.u32 %v6695_v38, %v4718_v37  ;;  %3487 = vmatpush.bf16.msra.mxu3 %v4991_v40 }
  0x75   : > { %v4974_v42 = vld [vmem:[%s7649_s3 + $0x300] sm:$0xf]  ;;  %v6759_v43 = vld [vmem:[%s7649_s3 + $0x30c] sm:$0xf0]  ;;  %v4847_v52 = vor.u32 %v6727_v41, %v4846_v39  ;;  %3446 = vmatpush.bf16.msra.mxu0 %v4591_v47 }
  0x76   : > { %v5214_v44 = vld [vmem:[%s7649_s3 + $0x4e0] sm:$0xf]  ;;  %v6819_v45 = vld [vmem:[%s7649_s3 + $0x4ec] sm:$0xf0]  ;;  %v4975_v55 = vor.u32 %v6759_v43, %v4974_v42  ;;  %3460 = vmatpush.bf16.msra.mxu1 %v4719_v51 }
  0x77   : > { %v5342_v46 = vld [vmem:[%s7649_s3 + $0x5e0] sm:$0xf]  ;;  %v6851_v48 = vld [vmem:[%s7649_s3 + $0x5ec] sm:$0xf0]  ;;  %v5215_v56 = vor.u32 %v6819_v45, %v5214_v44  ;;  %3474 = vmatpush.bf16.msra.mxu2 %v4847_v52 }
  0x78   : > { %v5470_v49 = vld [vmem:[%s7649_s3 + $0x6e0] sm:$0xf]  ;;  %v6883_v50 = vld [vmem:[%s7649_s3 + $0x6ec] sm:$0xf0]  ;;  %v5343_v59 = vor.u32 %v6851_v48, %v5342_v46  ;;  %3488 = vmatpush.bf16.msra.mxu3 %v4975_v55 }
  0x79   : > { %v5598_v53 = vld [vmem:[%s7649_s3 + $0x7e0] sm:$0xf]  ;;  %v6915_v54 = vld [vmem:[%s7649_s3 + $0x7ec] sm:$0xf0]  ;;  %v5471_v60 = vor.u32 %v6883_v50, %v5470_v49  ;;  %3495 = vmatpush.bf16.msrb.mxu0 %v5215_v56  ;;  %3461 = vmatmul.bf16.vlgmr.msra.gmra.mxu1 %v7761_v26 }
  0x7a   : > { %v5198_v57 = vld [vmem:[%s7649_s3 + $0x4c0] sm:$0xf]  ;;  %v6815_v58 = vld [vmem:[%s7649_s3 + $0x4cc] sm:$0xf0]  ;;  %v5599_v0 = vor.u32 %v6915_v54, %v5598_v53  ;;  %3509 = vmatpush.bf16.msrb.mxu1 %v5343_v59  ;;  %3475 = vmatmul.bf16.vlgmr.msra.gmra.mxu2 %v7751_v17 }
  0x7b   : > { %v5326_v61 = vld [vmem:[%s7649_s3 + $0x5c0] sm:$0xf]  ;;  %v6847_v62 = vld [vmem:[%s7649_s3 + $0x5cc] sm:$0xf0]  ;;  %v5199_v7 = vor.u32 %v6815_v58, %v5198_v57  ;;  %3523 = vmatpush.bf16.msrb.mxu2 %v5471_v60  ;;  %3489 = vmatmul.bf16.vlgmr.msra.gmra.mxu3 %v7767_v33 }
  0x7c   : > { %v5454_v63 = vld [vmem:[%s7649_s3 + $0x6c0] sm:$0xf]  ;;  %v6879_v1 = vld [vmem:[%s7649_s3 + $0x6cc] sm:$0xf0]  ;;  %v5327_v12 = vor.u32 %v6847_v62, %v5326_v61  ;;  %3537 = vmatpush.bf16.msrb.mxu3 %v5599_v0 }
  0x7d   : > { %v5582_v2 = vld [vmem:[%s7649_s3 + $0x7c0] sm:$0xf]  ;;  %v6911_v3 = vld [vmem:[%s7649_s3 + $0x7cc] sm:$0xf0]  ;;  %v5455_v13 = vor.u32 %v6879_v1, %v5454_v63  ;;  %3496 = vmatpush.bf16.msrb.mxu0 %v5199_v7 }
  0x7e   : > { %v4526_v4 = vld [vmem:[%s7647_s22] sm:$0xf]  ;;  %v6811_v9 = vld [vmem:[%s7649_s3 + $0x4ac] sm:$0xf0]  ;;  %v5583_v18 = vor.u32 %v6911_v3, %v5582_v2  ;;  %3510 = vmatpush.bf16.msrb.mxu1 %v5327_v12 }
  0x7f   : > { %v6653_v5 = vld [vmem:[%s7647_s22 + $0x3c] sm:$0xf0]  ;;  %v6843_v15 = vld [vmem:[%s7649_s3 + $0x5ac] sm:$0xf0]  ;;  %3524 = vmatpush.bf16.msrb.mxu2 %v5455_v13 }
  0x80   : > { %v5182_v8 = vld [vmem:[%s7649_s3 + $0x4a0] sm:$0xf]  ;;  %v7745_v10 = vor.u32 %v6653_v5, %v4526_v4  ;;  %v6875_v19 = vld [vmem:[%s7649_s3 + $0x6ac] sm:$0xf0]  ;;  %3538 = vmatpush.bf16.msrb.mxu3 %v5583_v18 }
  0x81   : > { %v5310_v14 = vld [vmem:[%s7649_s3 + $0x5a0] sm:$0xf]  ;;  %v6907_v21 = vld [vmem:[%s7649_s3 + $0x7ac] sm:$0xf0]  ;;  %v5183_v25 = vor.u32 %v6811_v9, %v5182_v8 }
  0x82   : > { %v5438_v16 = vld [vmem:[%s7649_s3 + $0x6a0] sm:$0xf]  ;;  %3447 = vmatmul.bf16.vlgmr.msra.gmra.mxu0 %v7745_v10  ;;  %v5311_v28 = vor.u32 %v6843_v15, %v5310_v14  ;;  %v6807_v31 = vld [vmem:[%s7649_s3 + $0x48c] sm:$0xf0] }
  0x83   : > { %v5566_v20 = vld [vmem:[%s7649_s3 + $0x7a0] sm:$0xf]  ;;  %v5439_v29 = vor.u32 %v6875_v19, %v5438_v16  ;;  %v6839_v35 = vld [vmem:[%s7649_s3 + $0x58c] sm:$0xf0]  ;;  %3497 = vmatpush.bf16.msrb.mxu0 %v5183_v25 }
  0x84   : > { %v5166_v30 = vld [vmem:[%s7649_s3 + $0x480] sm:$0xf]  ;;  %v5567_v34 = vor.u32 %v6907_v21, %v5566_v20  ;;  %v6871_v37 = vld [vmem:[%s7649_s3 + $0x68c] sm:$0xf0]  ;;  %3511 = vmatpush.bf16.msrb.mxu1 %v5311_v28 }
  0x85   : > { %v5294_v32 = vld [vmem:[%s7649_s3 + $0x580] sm:$0xf]  ;;  %v6903_v39 = vld [vmem:[%s7649_s3 + $0x78c] sm:$0xf0]  ;;  %v5167_v40 = vor.u32 %v6807_v31, %v5166_v30  ;;  %3525 = vmatpush.bf16.msrb.mxu2 %v5439_v29 }
  0x86   : > { %v5422_v36 = vld [vmem:[%s7649_s3 + $0x680] sm:$0xf]  ;;  %v5295_v41 = vor.u32 %v6839_v35, %v5294_v32  ;;  %v6803_v44 = vld [vmem:[%s7649_s3 + $0x46c] sm:$0xf0]  ;;  %3539 = vmatpush.bf16.msrb.mxu3 %v5567_v34 }
  0x87   : > { %v5550_v38 = vld [vmem:[%s7649_s3 + $0x780] sm:$0xf]  ;;  %v5423_v42 = vor.u32 %v6871_v37, %v5422_v36  ;;  %v6835_v47 = vld [vmem:[%s7649_s3 + $0x56c] sm:$0xf0]  ;;  %3498 = vmatpush.bf16.msrb.mxu0 %v5167_v40 }
  0x88   : > { %v5150_v43 = vld [vmem:[%s7649_s3 + $0x460] sm:$0xf]  ;;  %v5551_v46 = vor.u32 %v6903_v39, %v5550_v38  ;;  %v6867_v49 = vld [vmem:[%s7649_s3 + $0x66c] sm:$0xf0]  ;;  %3512 = vmatpush.bf16.msrb.mxu1 %v5295_v41  ;;  %v4550_v41 = vld [vmem:[%s7647_s22 + $0x18] sm:$0xf] }
  0x89   : > { %v5278_v45 = vld [vmem:[%s7649_s3 + $0x560] sm:$0xf]  ;;  %v6899_v51 = vld [vmem:[%s7649_s3 + $0x76c] sm:$0xf0]  ;;  %v5151_v52 = vor.u32 %v6803_v44, %v5150_v43  ;;  %3526 = vmatpush.bf16.msrb.mxu2 %v5423_v42  ;;  %v6656_v42 = vld [vmem:[%s7647_s22 + $0x54] sm:$0xf0] }
  0x8a   : > { %v5406_v48 = vld [vmem:[%s7649_s3 + $0x660] sm:$0xf]  ;;  %v5279_v53 = vor.u32 %v6835_v47, %v5278_v45  ;;  %v6799_v56 = vld [vmem:[%s7649_s3 + $0x44c] sm:$0xf0]  ;;  %3540 = vmatpush.bf16.msrb.mxu3 %v5551_v46  ;;  %v6647_v43 = vld [vmem:[%s7647_s22 + $0x14] sm:$0xf] }
  0x8b   : > { %v5534_v50 = vld [vmem:[%s7649_s3 + $0x760] sm:$0xf]  ;;  %v5407_v54 = vor.u32 %v6867_v49, %v5406_v48  ;;  %v6831_v59 = vld [vmem:[%s7649_s3 + $0x54c] sm:$0xf0]  ;;  %3499 = vmatpush.bf16.msrb.mxu0 %v5151_v52  ;;  %v4544_v46 = vld [vmem:[%s7647_s22 + $0x50] sm:$0xf0] }
  0x8c   : > { %v5134_v55 = vld [vmem:[%s7649_s3 + $0x440] sm:$0xf]  ;;  %v5535_v58 = vor.u32 %v6899_v51, %v5534_v50  ;;  %v6863_v61 = vld [vmem:[%s7649_s3 + $0x64c] sm:$0xf0]  ;;  %3513 = vmatpush.bf16.msrb.mxu1 %v5279_v53  ;;  %v6648_v47 = vld [vmem:[%s7647_s22 + $0x1c] sm:$0xf] }
  0x8d   : > { %v5262_v57 = vld [vmem:[%s7649_s3 + $0x540] sm:$0xf]  ;;  %v6895_v63 = vld [vmem:[%s7649_s3 + $0x74c] sm:$0xf0]  ;;  %v5135_v0 = vor.u32 %v6799_v56, %v5134_v55  ;;  %3527 = vmatpush.bf16.msrb.mxu2 %v5407_v54  ;;  %v4552_v48 = vld [vmem:[%s7647_s22 + $0x58] sm:$0xf0] }
  0x8e   : > { %v5390_v60 = vld [vmem:[%s7649_s3 + $0x640] sm:$0xf]  ;;  %v5263_v2 = vor.u32 %v6831_v59, %v5262_v57  ;;  %v6795_v4 = vld [vmem:[%s7649_s3 + $0x42c] sm:$0xf0]  ;;  %3541 = vmatpush.bf16.msrb.mxu3 %v5535_v58  ;;  %v7832_v59 = vor.u32 %v6656_v42, %v4550_v41 }
  0x8f   : > { %v5518_v62 = vld [vmem:[%s7649_s3 + $0x740] sm:$0xf]  ;;  %v5391_v3 = vor.u32 %v6863_v61, %v5390_v60  ;;  %v6827_v6 = vld [vmem:[%s7649_s3 + $0x52c] sm:$0xf0]  ;;  %3500 = vmatpush.bf16.msrb.mxu0 %v5135_v0  ;;  %v7834_v60 = vor.u32 %v6647_v43, %v4544_v46 }
  0x90   : > { %v5118_v1 = vld [vmem:[%s7649_s3 + $0x420] sm:$0xf]  ;;  %v5519_v7 = vor.u32 %v6895_v63, %v5518_v62  ;;  %v6859_v9 = vld [vmem:[%s7649_s3 + $0x62c] sm:$0xf0]  ;;  %3514 = vmatpush.bf16.msrb.mxu1 %v5263_v2  ;;  %v7838_v63 = vor.u32 %v6648_v47, %v4552_v48 }
  0x91   : > { %v5246_v5 = vld [vmem:[%s7649_s3 + $0x520] sm:$0xf]  ;;  %v6891_v12 = vld [vmem:[%s7649_s3 + $0x72c] sm:$0xf0]  ;;  %v5119_v15 = vor.u32 %v6795_v4, %v5118_v1  ;;  %3528 = vmatpush.bf16.msrb.mxu2 %v5391_v3 }
  0x92   : > { %v5374_v8 = vld [vmem:[%s7649_s3 + $0x620] sm:$0xf]  ;;  %v6791_v14 = vld [vmem:[%s7649_s3 + $0x40c] sm:$0xf0]  ;;  %v5247_v21 = vor.u32 %v6827_v6, %v5246_v5  ;;  %3542 = vmatpush.bf16.msrb.mxu3 %v5519_v7 }
  0x93   : > { %v5502_v11 = vld [vmem:[%s7649_s3 + $0x720] sm:$0xf]  ;;  %v6823_v18 = vld [vmem:[%s7649_s3 + $0x50c] sm:$0xf0]  ;;  %v5375_v22 = vor.u32 %v6859_v9, %v5374_v8  ;;  %3501 = vmatpush.bf16.msrb.mxu0 %v5119_v15 }
  0x94   : > { %v5102_v13 = vld [vmem:[%s7649_s3 + $0x400] sm:$0xf]  ;;  %v6855_v20 = vld [vmem:[%s7649_s3 + $0x60c] sm:$0xf0]  ;;  %v5503_v27 = vor.u32 %v6891_v12, %v5502_v11  ;;  %3515 = vmatpush.bf16.msrb.mxu1 %v5247_v21 }
  0x95   : > { %v5230_v16 = vld [vmem:[%s7649_s3 + $0x500] sm:$0xf]  ;;  %v6887_v24 = vld [vmem:[%s7649_s3 + $0x70c] sm:$0xf0]  ;;  %v5103_v35 = vor.u32 %v6791_v14, %v5102_v13  ;;  %3529 = vmatpush.bf16.msrb.mxu2 %v5375_v22 }
  0x96   : > { %v5358_v19 = vld [vmem:[%s7649_s3 + $0x600] sm:$0xf]  ;;  %v6947_v28 = vld [vmem:[%s7649_s3 + $0x8ec] sm:$0xf0]  ;;  %v5231_v39 = vor.u32 %v6823_v18, %v5230_v16  ;;  %3543 = vmatpush.bf16.msrb.mxu3 %v5503_v27 }
  0x97   : > { %v5486_v23 = vld [vmem:[%s7649_s3 + $0x700] sm:$0xf]  ;;  %v6979_v30 = vld [vmem:[%s7649_s3 + $0x9ec] sm:$0xf0]  ;;  %v5359_v40 = vor.u32 %v6855_v20, %v5358_v19  ;;  %3502 = vmatpush.bf16.msrb.mxu0 %v5103_v35 }
  0x98   : > { %v5726_v25 = vld [vmem:[%s7649_s3 + $0x8e0] sm:$0xf]  ;;  %v7011_v32 = vld [vmem:[%s7649_s3 + $0xaec] sm:$0xf0]  ;;  %v5487_v44 = vor.u32 %v6887_v24, %v5486_v23  ;;  %3516 = vmatpush.bf16.msrb.mxu1 %v5231_v39 }
  0x99   : > { %v5854_v29 = vld [vmem:[%s7649_s3 + $0x9e0] sm:$0xf]  ;;  %v7043_v36 = vld [vmem:[%s7649_s3 + $0xbec] sm:$0xf0]  ;;  %v5727_v45 = vor.u32 %v6947_v28, %v5726_v25  ;;  %3530 = vmatpush.bf16.msrb.mxu2 %v5359_v40 }
  0x9a   : > { %v5982_v31 = vld [vmem:[%s7649_s3 + $0xae0] sm:$0xf]  ;;  %v4542_v37 = vld [vmem:[%s7647_s22 + $0x10] sm:$0xf]  ;;  %v5855_v49 = vor.u32 %v6979_v30, %v5854_v29  ;;  %3544 = vmatpush.bf16.msrb.mxu3 %v5487_v44 }
  0x9b   : > { %v6110_v34 = vld [vmem:[%s7649_s3 + $0xbe0] sm:$0xf]  ;;  %v6655_v38 = vld [vmem:[%s7647_s22 + $0x4c] sm:$0xf0]  ;;  %v5983_v50 = vor.u32 %v7011_v32, %v5982_v31  ;;  %3551 = vmatpush.bf16.msra.mxu0 %v5727_v45  ;;  %3517 = vmatmul.bf16.vlgmr.msrb.gmra.mxu1 %v7834_v60 }
  0x9c   : > { %v5710_v51 = vld [vmem:[%s7649_s3 + $0x8c0] sm:$0xf]  ;;  %v6943_v52 = vld [vmem:[%s7649_s3 + $0x8cc] sm:$0xf0]  ;;  %v6111_v54 = vor.u32 %v7043_v36, %v6110_v34  ;;  %v7827_v55 = vor.u32 %v6655_v38, %v4542_v37  ;;  %3565 = vmatpush.bf16.msra.mxu1 %v5855_v49  ;;  %3531 = vmatmul.bf16.vlgmr.msrb.gmra.mxu2 %v7832_v59 }
  0x9d   : > { %v5838_v53 = vld [vmem:[%s7649_s3 + $0x9c0] sm:$0xf]  ;;  %v6975_v56 = vld [vmem:[%s7649_s3 + $0x9cc] sm:$0xf0]  ;;  %v5711_v0 = vor.u32 %v6943_v52, %v5710_v51  ;;  %3579 = vmatpush.bf16.msra.mxu2 %v5983_v50  ;;  %3545 = vmatmul.bf16.vlgmr.msrb.gmra.mxu3 %v7838_v63 }
  0x9e   : > { %v5966_v57 = vld [vmem:[%s7649_s3 + $0xac0] sm:$0xf]  ;;  %v7007_v58 = vld [vmem:[%s7649_s3 + $0xacc] sm:$0xf0]  ;;  %v5839_v1 = vor.u32 %v6975_v56, %v5838_v53  ;;  %3593 = vmatpush.bf16.msra.mxu3 %v6111_v54  ;;  %3503 = vmatmul.bf16.vlgmr.msrb.gmra.mxu0 %v7827_v55 }
  0x9f   : > { %v6094_v61 = vld [vmem:[%s7649_s3 + $0xbc0] sm:$0xf]  ;;  %v7039_v62 = vld [vmem:[%s7649_s3 + $0xbcc] sm:$0xf0]  ;;  %v5967_v2 = vor.u32 %v7007_v58, %v5966_v57  ;;  %3552 = vmatpush.bf16.msra.mxu0 %v5711_v0 }
  0xa0   : > { %v5694_v3 = vld [vmem:[%s7649_s3 + $0x8a0] sm:$0xf]  ;;  %v6939_v4 = vld [vmem:[%s7649_s3 + $0x8ac] sm:$0xf0]  ;;  %v6095_v6 = vor.u32 %v7039_v62, %v6094_v61  ;;  %3566 = vmatpush.bf16.msra.mxu1 %v5839_v1 }
  0xa1   : > { %v5822_v5 = vld [vmem:[%s7649_s3 + $0x9a0] sm:$0xf]  ;;  %v6971_v7 = vld [vmem:[%s7649_s3 + $0x9ac] sm:$0xf0]  ;;  %v5695_v13 = vor.u32 %v6939_v4, %v5694_v3  ;;  %3580 = vmatpush.bf16.msra.mxu2 %v5967_v2 }
  0xa2   : > { %v5950_v8 = vld [vmem:[%s7649_s3 + $0xaa0] sm:$0xf]  ;;  %v7003_v9 = vld [vmem:[%s7649_s3 + $0xaac] sm:$0xf0]  ;;  %v5823_v14 = vor.u32 %v6971_v7, %v5822_v5  ;;  %3594 = vmatpush.bf16.msra.mxu3 %v6095_v6 }
  0xa3   : > { %v6078_v11 = vld [vmem:[%s7649_s3 + $0xba0] sm:$0xf]  ;;  %v7035_v12 = vld [vmem:[%s7649_s3 + $0xbac] sm:$0xf0]  ;;  %v5951_v15 = vor.u32 %v7003_v9, %v5950_v8  ;;  %3553 = vmatpush.bf16.msra.mxu0 %v5695_v13 }
  0xa4   : > { %v5678_v16 = vld [vmem:[%s7649_s3 + $0x880] sm:$0xf]  ;;  %v6935_v18 = vld [vmem:[%s7649_s3 + $0x88c] sm:$0xf0]  ;;  %v6079_v20 = vor.u32 %v7035_v12, %v6078_v11  ;;  %3567 = vmatpush.bf16.msra.mxu1 %v5823_v14 }
  0xa5   : > { %v5806_v19 = vld [vmem:[%s7649_s3 + $0x980] sm:$0xf]  ;;  %v6967_v21 = vld [vmem:[%s7649_s3 + $0x98c] sm:$0xf0]  ;;  %v5679_v27 = vor.u32 %v6935_v18, %v5678_v16  ;;  %3581 = vmatpush.bf16.msra.mxu2 %v5951_v15 }
  0xa6   : > { %v5934_v22 = vld [vmem:[%s7649_s3 + $0xa80] sm:$0xf]  ;;  %v6999_v23 = vld [vmem:[%s7649_s3 + $0xa8c] sm:$0xf0]  ;;  %v5807_v28 = vor.u32 %v6967_v21, %v5806_v19  ;;  %3595 = vmatpush.bf16.msra.mxu3 %v6079_v20 }
  0xa7   : > { %v6062_v24 = vld [vmem:[%s7649_s3 + $0xb80] sm:$0xf]  ;;  %v7031_v25 = vld [vmem:[%s7649_s3 + $0xb8c] sm:$0xf0]  ;;  %v5935_v29 = vor.u32 %v6999_v23, %v5934_v22  ;;  %3554 = vmatpush.bf16.msra.mxu0 %v5679_v27 }
  0xa8   : > { %v5662_v30 = vld [vmem:[%s7649_s3 + $0x860] sm:$0xf]  ;;  %v6931_v31 = vld [vmem:[%s7649_s3 + $0x86c] sm:$0xf0]  ;;  %v6063_v34 = vor.u32 %v7031_v25, %v6062_v24  ;;  %3568 = vmatpush.bf16.msra.mxu1 %v5807_v28 }
  0xa9   : > { %v5790_v32 = vld [vmem:[%s7649_s3 + $0x960] sm:$0xf]  ;;  %v6963_v35 = vld [vmem:[%s7649_s3 + $0x96c] sm:$0xf0]  ;;  %v5663_v40 = vor.u32 %v6931_v31, %v5662_v30  ;;  %3582 = vmatpush.bf16.msra.mxu2 %v5935_v29 }
  0xaa   : > { %v5918_v36 = vld [vmem:[%s7649_s3 + $0xa60] sm:$0xf]  ;;  %v6995_v37 = vld [vmem:[%s7649_s3 + $0xa6c] sm:$0xf0]  ;;  %v5791_v41 = vor.u32 %v6963_v35, %v5790_v32  ;;  %3596 = vmatpush.bf16.msra.mxu3 %v6063_v34  ;;  %v4566_v32 = vld [vmem:[%s7647_s22 + $0x28] sm:$0xf] }
  0xab   : > { %v6046_v38 = vld [vmem:[%s7649_s3 + $0xb60] sm:$0xf]  ;;  %v7027_v39 = vld [vmem:[%s7649_s3 + $0xb6c] sm:$0xf0]  ;;  %v5919_v42 = vor.u32 %v6995_v37, %v5918_v36  ;;  %3555 = vmatpush.bf16.msra.mxu0 %v5663_v40  ;;  %v6658_v34 = vld [vmem:[%s7647_s22 + $0x64] sm:$0xf0] }
  0xac   : > { %v5646_v43 = vld [vmem:[%s7649_s3 + $0x840] sm:$0xf]  ;;  %v6927_v44 = vld [vmem:[%s7649_s3 + $0x84c] sm:$0xf0]  ;;  %v6047_v46 = vor.u32 %v7027_v39, %v6046_v38  ;;  %3569 = vmatpush.bf16.msra.mxu1 %v5791_v41  ;;  %v6649_v35 = vld [vmem:[%s7647_s22 + $0x24] sm:$0xf] }
  0xad   : > { %v5774_v45 = vld [vmem:[%s7649_s3 + $0x940] sm:$0xf]  ;;  %v6959_v47 = vld [vmem:[%s7649_s3 + $0x94c] sm:$0xf0]  ;;  %v5647_v52 = vor.u32 %v6927_v44, %v5646_v43  ;;  %3583 = vmatpush.bf16.msra.mxu2 %v5919_v42  ;;  %v4560_v38 = vld [vmem:[%s7647_s22 + $0x60] sm:$0xf0] }
  0xae   : > { %v5902_v48 = vld [vmem:[%s7649_s3 + $0xa40] sm:$0xf]  ;;  %v6991_v49 = vld [vmem:[%s7649_s3 + $0xa4c] sm:$0xf0]  ;;  %v5775_v54 = vor.u32 %v6959_v47, %v5774_v45  ;;  %3597 = vmatpush.bf16.msra.mxu3 %v6047_v46  ;;  %v6650_v39 = vld [vmem:[%s7647_s22 + $0x2c] sm:$0xf] }
  0xaf   : > { %v6030_v50 = vld [vmem:[%s7649_s3 + $0xb40] sm:$0xf]  ;;  %v7023_v51 = vld [vmem:[%s7649_s3 + $0xb4c] sm:$0xf0]  ;;  %v5903_v56 = vor.u32 %v6991_v49, %v5902_v48  ;;  %3556 = vmatpush.bf16.msra.mxu0 %v5647_v52  ;;  %v4568_v40 = vld [vmem:[%s7647_s22 + $0x68] sm:$0xf0]  ;;  %v7918_v52 = vor.u32 %v6649_v35, %v4560_v38 }
  0xb0   : > { %v5630_v53 = vld [vmem:[%s7649_s3 + $0x820] sm:$0xf]  ;;  %v6923_v57 = vld [vmem:[%s7649_s3 + $0x82c] sm:$0xf0]  ;;  %v6031_v62 = vor.u32 %v7023_v51, %v6030_v50  ;;  %3570 = vmatpush.bf16.msra.mxu1 %v5775_v54  ;;  %v7916_v51 = vor.u32 %v6658_v34, %v4566_v32 }
  0xb1   : > { %v5758_v58 = vld [vmem:[%s7649_s3 + $0x920] sm:$0xf]  ;;  %v6955_v61 = vld [vmem:[%s7649_s3 + $0x92c] sm:$0xf0]  ;;  %v5631_v6 = vor.u32 %v6923_v57, %v5630_v53  ;;  %3584 = vmatpush.bf16.msra.mxu2 %v5903_v56  ;;  %v7922_v56 = vor.u32 %v6650_v39, %v4568_v40 }
  0xb2   : > { %v5886_v0 = vld [vmem:[%s7649_s3 + $0xa20] sm:$0xf]  ;;  %v6987_v1 = vld [vmem:[%s7649_s3 + $0xa2c] sm:$0xf0]  ;;  %v5759_v12 = vor.u32 %v6955_v61, %v5758_v58  ;;  %3598 = vmatpush.bf16.msra.mxu3 %v6031_v62 }
  0xb3   : > { %v6014_v2 = vld [vmem:[%s7649_s3 + $0xb20] sm:$0xf]  ;;  %v7019_v3 = vld [vmem:[%s7649_s3 + $0xb2c] sm:$0xf0]  ;;  %v5887_v13 = vor.u32 %v6987_v1, %v5886_v0  ;;  %3557 = vmatpush.bf16.msra.mxu0 %v5631_v6 }
  0xb4   : > { %v5614_v4 = vld [vmem:[%s7649_s3 + $0x800] sm:$0xf]  ;;  %v6919_v5 = vld [vmem:[%s7649_s3 + $0x80c] sm:$0xf0]  ;;  %v6015_v18 = vor.u32 %v7019_v3, %v6014_v2  ;;  %3571 = vmatpush.bf16.msra.mxu1 %v5759_v12 }
  0xb5   : > { %v5742_v7 = vld [vmem:[%s7649_s3 + $0x900] sm:$0xf]  ;;  %v6951_v8 = vld [vmem:[%s7649_s3 + $0x90c] sm:$0xf0]  ;;  %v5615_v25 = vor.u32 %v6919_v5, %v5614_v4  ;;  %3585 = vmatpush.bf16.msra.mxu2 %v5887_v13 }
  0xb6   : > { %v5870_v9 = vld [vmem:[%s7649_s3 + $0xa00] sm:$0xf]  ;;  %v6983_v11 = vld [vmem:[%s7649_s3 + $0xa0c] sm:$0xf0]  ;;  %v5743_v30 = vor.u32 %v6951_v8, %v5742_v7  ;;  %3599 = vmatpush.bf16.msra.mxu3 %v6015_v18 }
  0xb7   : > { %v5998_v14 = vld [vmem:[%s7649_s3 + $0xb00] sm:$0xf]  ;;  %v7015_v15 = vld [vmem:[%s7649_s3 + $0xb0c] sm:$0xf0]  ;;  %v5871_v31 = vor.u32 %v6983_v11, %v5870_v9  ;;  %3558 = vmatpush.bf16.msra.mxu0 %v5615_v25 }
  0xb8   : > { %v6238_v16 = vld [vmem:[%s7649_s3 + $0xce0] sm:$0xf]  ;;  %v7075_v19 = vld [vmem:[%s7649_s3 + $0xcec] sm:$0xf0]  ;;  %v5999_v36 = vor.u32 %v7015_v15, %v5998_v14  ;;  %3572 = vmatpush.bf16.msra.mxu1 %v5743_v30 }
  0xb9   : > { %v6366_v20 = vld [vmem:[%s7649_s3 + $0xde0] sm:$0xf]  ;;  %v7107_v21 = vld [vmem:[%s7649_s3 + $0xdec] sm:$0xf0]  ;;  %v6239_v37 = vor.u32 %v7075_v19, %v6238_v16  ;;  %3586 = vmatpush.bf16.msra.mxu2 %v5871_v31 }
  0xba   : > { %v6494_v22 = vld [vmem:[%s7649_s3 + $0xee0] sm:$0xf]  ;;  %v7139_v23 = vld [vmem:[%s7649_s3 + $0xeec] sm:$0xf0]  ;;  %v6367_v41 = vor.u32 %v7107_v21, %v6366_v20  ;;  %3600 = vmatpush.bf16.msra.mxu3 %v5999_v36 }
  0xbb   : > { %v6622_v24 = vld [vmem:[%s7649_s3 + $0xfe0] sm:$0xf]  ;;  %v7171_v27 = vld [vmem:[%s7649_s3 + $0xfec] sm:$0xf0]  ;;  %v6495_v42 = vor.u32 %v7139_v23, %v6494_v22  ;;  %3607 = vmatpush.bf16.msrb.mxu0 %v6239_v37  ;;  %3573 = vmatmul.bf16.vlgmr.msra.gmra.mxu1 %v7918_v52 }
  0xbc   : > { %v4558_v28 = vld [vmem:[%s7647_s22 + $0x20] sm:$0xf]  ;;  %v7071_v44 = vld [vmem:[%s7649_s3 + $0xccc] sm:$0xf0]  ;;  %v6623_v46 = vor.u32 %v7171_v27, %v6622_v24  ;;  %3621 = vmatpush.bf16.msrb.mxu1 %v6367_v41  ;;  %3587 = vmatmul.bf16.vlgmr.msra.gmra.mxu2 %v7916_v51 }
  0xbd   : > { %v6657_v29 = vld [vmem:[%s7647_s22 + $0x5c] sm:$0xf0]  ;;  %v7103_v48 = vld [vmem:[%s7649_s3 + $0xdcc] sm:$0xf0]  ;;  %3635 = vmatpush.bf16.msrb.mxu2 %v6495_v42  ;;  %3601 = vmatmul.bf16.vlgmr.msra.gmra.mxu3 %v7922_v56 }
  0xbe   : > { %v6222_v43 = vld [vmem:[%s7649_s3 + $0xcc0] sm:$0xf]  ;;  %v7911_v47 = vor.u32 %v6657_v29, %v4558_v28  ;;  %v7135_v50 = vld [vmem:[%s7649_s3 + $0xecc] sm:$0xf0]  ;;  %3649 = vmatpush.bf16.msrb.mxu3 %v6623_v46 }
  0xbf   : > { %v6350_v45 = vld [vmem:[%s7649_s3 + $0xdc0] sm:$0xf]  ;;  %v7167_v54 = vld [vmem:[%s7649_s3 + $0xfcc] sm:$0xf0]  ;;  %v6223_v57 = vor.u32 %v7071_v44, %v6222_v43 }
  0xc0   : > { %v6478_v49 = vld [vmem:[%s7649_s3 + $0xec0] sm:$0xf]  ;;  %v6351_v58 = vor.u32 %v7103_v48, %v6350_v45  ;;  %v7067_v0 = vld [vmem:[%s7649_s3 + $0xcac] sm:$0xf0]  ;;  %3559 = vmatmul.bf16.vlgmr.msra.gmra.mxu0 %v7911_v47 }
  0xc1   : > { %v6606_v53 = vld [vmem:[%s7649_s3 + $0xfc0] sm:$0xf]  ;;  %v6479_v61 = vor.u32 %v7135_v50, %v6478_v49  ;;  %v7099_v3 = vld [vmem:[%s7649_s3 + $0xdac] sm:$0xf0]  ;;  %3608 = vmatpush.bf16.msrb.mxu0 %v6223_v57 }
  0xc2   : > { %v6206_v62 = vld [vmem:[%s7649_s3 + $0xca0] sm:$0xf]  ;;  %v6607_v2 = vor.u32 %v7167_v54, %v6606_v53  ;;  %v7131_v5 = vld [vmem:[%s7649_s3 + $0xeac] sm:$0xf0]  ;;  %3622 = vmatpush.bf16.msrb.mxu1 %v6351_v58 }
  0xc3   : > { %v6334_v1 = vld [vmem:[%s7649_s3 + $0xda0] sm:$0xf]  ;;  %v7163_v7 = vld [vmem:[%s7649_s3 + $0xfac] sm:$0xf0]  ;;  %v6207_v8 = vor.u32 %v7067_v0, %v6206_v62  ;;  %3636 = vmatpush.bf16.msrb.mxu2 %v6479_v61 }
  0xc4   : > { %v6462_v4 = vld [vmem:[%s7649_s3 + $0xea0] sm:$0xf]  ;;  %v6335_v9 = vor.u32 %v7099_v3, %v6334_v1  ;;  %v7063_v13 = vld [vmem:[%s7649_s3 + $0xc8c] sm:$0xf0]  ;;  %3650 = vmatpush.bf16.msrb.mxu3 %v6607_v2 }
  0xc5   : > { %v6590_v6 = vld [vmem:[%s7649_s3 + $0xfa0] sm:$0xf]  ;;  %v6463_v11 = vor.u32 %v7131_v5, %v6462_v4  ;;  %v7095_v16 = vld [vmem:[%s7649_s3 + $0xd8c] sm:$0xf0]  ;;  %3609 = vmatpush.bf16.msrb.mxu0 %v6207_v8 }
  0xc6   : > { %v6190_v12 = vld [vmem:[%s7649_s3 + $0xc80] sm:$0xf]  ;;  %v6591_v15 = vor.u32 %v7163_v7, %v6590_v6  ;;  %v7127_v19 = vld [vmem:[%s7649_s3 + $0xe8c] sm:$0xf0]  ;;  %3623 = vmatpush.bf16.msrb.mxu1 %v6335_v9 }
  0xc7   : > { %v6318_v14 = vld [vmem:[%s7649_s3 + $0xd80] sm:$0xf]  ;;  %v7159_v21 = vld [vmem:[%s7649_s3 + $0xf8c] sm:$0xf0]  ;;  %v6191_v22 = vor.u32 %v7063_v13, %v6190_v12  ;;  %3637 = vmatpush.bf16.msrb.mxu2 %v6463_v11 }
  0xc8   : > { %v6446_v18 = vld [vmem:[%s7649_s3 + $0xe80] sm:$0xf]  ;;  %v6319_v23 = vor.u32 %v7095_v16, %v6318_v14  ;;  %v7059_v27 = vld [vmem:[%s7649_s3 + $0xc6c] sm:$0xf0]  ;;  %3651 = vmatpush.bf16.msrb.mxu3 %v6591_v15  ;;  %v6689_v16 = vld [vmem:[%s7649_s3 + $0xe4] sm:$0xf] }
  0xc9   : > { %v6574_v20 = vld [vmem:[%s7649_s3 + $0xf80] sm:$0xf]  ;;  %v6447_v24 = vor.u32 %v7127_v19, %v6446_v18  ;;  %v7091_v30 = vld [vmem:[%s7649_s3 + $0xd6c] sm:$0xf0]  ;;  %3610 = vmatpush.bf16.msrb.mxu0 %v6191_v22  ;;  %v4704_v19 = vld [vmem:[%s7649_s3 + $0xf0] sm:$0xf0] }
  0xca   : > { %v6174_v25 = vld [vmem:[%s7649_s3 + $0xc60] sm:$0xf]  ;;  %v6575_v29 = vor.u32 %v7159_v21, %v6574_v20  ;;  %v7123_v32 = vld [vmem:[%s7649_s3 + $0xe6c] sm:$0xf0]  ;;  %3624 = vmatpush.bf16.msrb.mxu1 %v6319_v23  ;;  %v6721_v20 = vld [vmem:[%s7649_s3 + $0x1e4] sm:$0xf] }
  0xcb   : > { %v6302_v28 = vld [vmem:[%s7649_s3 + $0xd60] sm:$0xf]  ;;  %v7155_v35 = vld [vmem:[%s7649_s3 + $0xf6c] sm:$0xf0]  ;;  %v6175_v36 = vor.u32 %v7059_v27, %v6174_v25  ;;  %3638 = vmatpush.bf16.msrb.mxu2 %v6447_v24  ;;  %v4832_v21 = vld [vmem:[%s7649_s3 + $0x1f0] sm:$0xf0] }
  0xcc   : > { %v6430_v31 = vld [vmem:[%s7649_s3 + $0xe60] sm:$0xf]  ;;  %v6303_v37 = vor.u32 %v7091_v30, %v6302_v28  ;;  %v7055_v40 = vld [vmem:[%s7649_s3 + $0xc4c] sm:$0xf0]  ;;  %3652 = vmatpush.bf16.msrb.mxu3 %v6575_v29  ;;  %v6753_v22 = vld [vmem:[%s7649_s3 + $0x2e4] sm:$0xf] }
  0xcd   : > { %v6558_v34 = vld [vmem:[%s7649_s3 + $0xf60] sm:$0xf]  ;;  %v6431_v38 = vor.u32 %v7123_v32, %v6430_v31  ;;  %v7087_v43 = vld [vmem:[%s7649_s3 + $0xd4c] sm:$0xf0]  ;;  %3611 = vmatpush.bf16.msrb.mxu0 %v6175_v36  ;;  %v4960_v23 = vld [vmem:[%s7649_s3 + $0x2f0] sm:$0xf0] }
  0xce   : > { %v6158_v39 = vld [vmem:[%s7649_s3 + $0xc40] sm:$0xf]  ;;  %v6559_v42 = vor.u32 %v7155_v35, %v6558_v34  ;;  %v7119_v45 = vld [vmem:[%s7649_s3 + $0xe4c] sm:$0xf0]  ;;  %3625 = vmatpush.bf16.msrb.mxu1 %v6303_v37  ;;  %v6785_v24 = vld [vmem:[%s7649_s3 + $0x3e4] sm:$0xf]  ;;  %v4707_v37 = vor.u32 %v6689_v16, %v4704_v19 }
  0xcf   : > { %v6286_v41 = vld [vmem:[%s7649_s3 + $0xd40] sm:$0xf]  ;;  %v7151_v48 = vld [vmem:[%s7649_s3 + $0xf4c] sm:$0xf0]  ;;  %v6159_v49 = vor.u32 %v7055_v40, %v6158_v39  ;;  %3639 = vmatpush.bf16.msrb.mxu2 %v6431_v38  ;;  %v5088_v27 = vld [vmem:[%s7649_s3 + $0x3f0] sm:$0xf0] }
  0xd0   : > { %v6414_v44 = vld [vmem:[%s7649_s3 + $0xe40] sm:$0xf]  ;;  %v6287_v53 = vor.u32 %v7087_v43, %v6286_v41  ;;  %v7051_v57 = vld [vmem:[%s7649_s3 + $0xc2c] sm:$0xf0]  ;;  %3653 = vmatpush.bf16.msrb.mxu3 %v6559_v42  ;;  %v4582_v32 = vld [vmem:[%s7647_s22 + $0x38] sm:$0xf]  ;;  %v4835_v41 = vor.u32 %v6721_v20, %v4832_v21  ;;  %v4963_v42 = vor.u32 %v6753_v22, %v4960_v23 }
  0xd1   : > { %v6542_v46 = vld [vmem:[%s7649_s3 + $0xf40] sm:$0xf]  ;;  %v6415_v54 = vor.u32 %v7119_v45, %v6414_v44  ;;  %v7083_v61 = vld [vmem:[%s7649_s3 + $0xd2c] sm:$0xf0]  ;;  %3612 = vmatpush.bf16.msrb.mxu0 %v6159_v49  ;;  %v6660_v34 = vld [vmem:[%s7647_s22 + $0x74] sm:$0xf0] }
  0xd2   : > { %v6142_v50 = vld [vmem:[%s7649_s3 + $0xc20] sm:$0xf]  ;;  %v6543_v62 = vor.u32 %v7151_v48, %v6542_v46  ;;  %v7115_v1 = vld [vmem:[%s7649_s3 + $0xe2c] sm:$0xf0]  ;;  %3626 = vmatpush.bf16.msrb.mxu1 %v6287_v53  ;;  %v6651_v35 = vld [vmem:[%s7647_s22 + $0x34] sm:$0xf]  ;;  %v5091_v46 = vor.u32 %v6785_v24, %v5088_v27 }
  0xd3   : > { %v6270_v58 = vld [vmem:[%s7649_s3 + $0xd20] sm:$0xf]  ;;  %v7147_v3 = vld [vmem:[%s7649_s3 + $0xf2c] sm:$0xf0]  ;;  %v6143_v6 = vor.u32 %v7051_v57, %v6142_v50  ;;  %3640 = vmatpush.bf16.msrb.mxu2 %v6415_v54  ;;  %v4576_v38 = vld [vmem:[%s7647_s22 + $0x70] sm:$0xf0]  ;;  %v8000_v54 = vor.u32 %v6660_v34, %v4582_v32 }
  0xd4   : > { %v6398_v0 = vld [vmem:[%s7649_s3 + $0xe20] sm:$0xf]  ;;  %v7047_v5 = vld [vmem:[%s7649_s3 + $0xc0c] sm:$0xf0]  ;;  %v6271_v12 = vor.u32 %v7083_v61, %v6270_v58  ;;  %3654 = vmatpush.bf16.msrb.mxu3 %v6543_v62  ;;  %v6652_v39 = vld [vmem:[%s7647_s22 + $0x3c] sm:$0xf]  ;;  %v8002_v57 = vor.u32 %v6651_v35, %v4576_v38 }
  0xd5   : > { %v6526_v2 = vld [vmem:[%s7649_s3 + $0xf20] sm:$0xf]  ;;  %v7079_v8 = vld [vmem:[%s7649_s3 + $0xd0c] sm:$0xf0]  ;;  %v6399_v13 = vor.u32 %v7115_v1, %v6398_v0  ;;  %3613 = vmatpush.bf16.msrb.mxu0 %v6143_v6  ;;  %v4584_v40 = vld [vmem:[%s7647_s22 + $0x78] sm:$0xf0] }
  0xd6   : > { %v6126_v4 = vld [vmem:[%s7649_s3 + $0xc00] sm:$0xf]  ;;  %v7111_v11 = vld [vmem:[%s7649_s3 + $0xe0c] sm:$0xf0]  ;;  %v6527_v18 = vor.u32 %v7147_v3, %v6526_v2  ;;  %3627 = vmatpush.bf16.msrb.mxu1 %v6271_v12  ;;  %v6685_v43 = vld [vmem:[%s7649_s3 + $0xc4] sm:$0xf]  ;;  %v8006_v62 = vor.u32 %v6652_v39, %v4584_v40 }
  0xd7   : > { %v6254_v7 = vld [vmem:[%s7649_s3 + $0xd00] sm:$0xf]  ;;  %v7143_v15 = vld [vmem:[%s7649_s3 + $0xf0c] sm:$0xf0]  ;;  %v6127_v25 = vor.u32 %v7047_v5, %v6126_v4  ;;  %3641 = vmatpush.bf16.msrb.mxu2 %v6399_v13  ;;  %v4688_v44 = vld [vmem:[%s7649_s3 + $0xd0] sm:$0xf0] }
  0xd8   : > { %v6382_v9 = vld [vmem:[%s7649_s3 + $0xe00] sm:$0xf]  ;;  %v4574_v28 = vld [vmem:[%s7647_s22 + $0x30] sm:$0xf]  ;;  %v6255_v30 = vor.u32 %v7079_v8, %v6254_v7  ;;  %3655 = vmatpush.bf16.msrb.mxu3 %v6527_v18  ;;  %v6717_v45 = vld [vmem:[%s7649_s3 + $0x1c4] sm:$0xf]  ;;  %v4691_v0 = vor.u32 %v6685_v43, %v4688_v44 }
  0xd9   : > { %v6510_v14 = vld [vmem:[%s7649_s3 + $0xf00] sm:$0xf]  ;;  %v6659_v29 = vld [vmem:[%s7647_s22 + $0x6c] sm:$0xf0]  ;;  %v6383_v31 = vor.u32 %v7111_v11, %v6382_v9  ;;  %3614 = vmatpush.bf16.msrb.mxu0 %v6127_v25  ;;  %v4816_v49 = vld [vmem:[%s7649_s3 + $0x1d0] sm:$0xf0] }
  0xda   : > { %v6511_v36 = vor.u32 %v7143_v15, %v6510_v14  ;;  %v7995_v48 = vor.u32 %v6659_v29, %v4574_v28  ;;  %v6749_v50 = vld [vmem:[%s7649_s3 + $0x2c4] sm:$0xf]  ;;  %v4944_v53 = vld [vmem:[%s7649_s3 + $0x2d0] sm:$0xf0]  ;;  %3628 = vmatpush.bf16.msrb.mxu1 %v6255_v30  ;;  %v4819_v1 = vor.u32 %v6717_v45, %v4816_v49 }
  0xdb   : > { %3642 = vmatpush.bf16.msrb.mxu2 %v6383_v31  ;;  %v6781_v58 = vld [vmem:[%s7649_s3 + $0x3c4] sm:$0xf]  ;;  %v5072_v61 = vld [vmem:[%s7649_s3 + $0x3d0] sm:$0xf0]  ;;  %v4947_v2 = vor.u32 %v6749_v50, %v4944_v53 }
  0xdc   : > { %3656 = vmatpush.bf16.msrb.mxu3 %v6511_v36  ;;  %v6681_v3 = vld [vmem:[%s7649_s3 + $0xa4] sm:$0xf]  ;;  %v4672_v4 = vld [vmem:[%s7649_s3 + $0xb0] sm:$0xf0]  ;;  %3615 = vmatmul.bf16.vlgmr.msrb.gmra.mxu0 %v7995_v48  ;;  %v5075_v6 = vor.u32 %v6781_v58, %v5072_v61 }
  0xdd   : > { %3663 = vmatpush.bf16.msra.mxu0 %v4707_v37  ;;  %v6713_v5 = vld [vmem:[%s7649_s3 + $0x1a4] sm:$0xf]  ;;  %v4800_v7 = vld [vmem:[%s7649_s3 + $0x1b0] sm:$0xf0]  ;;  %3629 = vmatmul.bf16.vlgmr.msrb.gmra.mxu1 %v8002_v57  ;;  %v4675_v13 = vor.u32 %v6681_v3, %v4672_v4 }
  0xde   : > { %3677 = vmatpush.bf16.msra.mxu1 %v4835_v41  ;;  %v6745_v8 = vld [vmem:[%s7649_s3 + $0x2a4] sm:$0xf]  ;;  %v4928_v9 = vld [vmem:[%s7649_s3 + $0x2b0] sm:$0xf0]  ;;  %3643 = vmatmul.bf16.vlgmr.msrb.gmra.mxu2 %v8000_v54  ;;  %v4803_v14 = vor.u32 %v6713_v5, %v4800_v7 }
  0xdf   : > { %3691 = vmatpush.bf16.msra.mxu2 %v4963_v42  ;;  %v6777_v11 = vld [vmem:[%s7649_s3 + $0x3a4] sm:$0xf]  ;;  %v5056_v12 = vld [vmem:[%s7649_s3 + $0x3b0] sm:$0xf0]  ;;  %3657 = vmatmul.bf16.vlgmr.msrb.gmra.mxu3 %v8006_v62  ;;  %v4931_v15 = vor.u32 %v6745_v8, %v4928_v9 }
  0xe0   : > { %3705 = vmatpush.bf16.msra.mxu3 %v5091_v46  ;;  %v6677_v16 = vld [vmem:[%s7649_s3 + $0x84] sm:$0xf]  ;;  %v4656_v18 = vld [vmem:[%s7649_s3 + $0x90] sm:$0xf0]  ;;  %v5059_v20 = vor.u32 %v6777_v11, %v5056_v12 }
  0xe1   : > { %3664 = vmatpush.bf16.msra.mxu0 %v4691_v0  ;;  %v6709_v19 = vld [vmem:[%s7649_s3 + $0x184] sm:$0xf]  ;;  %v4784_v21 = vld [vmem:[%s7649_s3 + $0x190] sm:$0xf0]  ;;  %v4659_v27 = vor.u32 %v6677_v16, %v4656_v18 }
  0xe2   : > { %3678 = vmatpush.bf16.msra.mxu1 %v4819_v1  ;;  %v6741_v22 = vld [vmem:[%s7649_s3 + $0x284] sm:$0xf]  ;;  %v4912_v23 = vld [vmem:[%s7649_s3 + $0x290] sm:$0xf0]  ;;  %v4787_v28 = vor.u32 %v6709_v19, %v4784_v21 }
  0xe3   : > { %3692 = vmatpush.bf16.msra.mxu2 %v4947_v2  ;;  %v6773_v24 = vld [vmem:[%s7649_s3 + $0x384] sm:$0xf]  ;;  %v5040_v25 = vld [vmem:[%s7649_s3 + $0x390] sm:$0xf0]  ;;  %v4915_v29 = vor.u32 %v6741_v22, %v4912_v23 }
  0xe4   : > { %3706 = vmatpush.bf16.msra.mxu3 %v5075_v6  ;;  %v6673_v30 = vld [vmem:[%s7649_s3 + $0x64] sm:$0xf]  ;;  %v4640_v31 = vld [vmem:[%s7649_s3 + $0x70] sm:$0xf0]  ;;  %v5043_v34 = vor.u32 %v6773_v24, %v5040_v25 }
  0xe5   : > { %3665 = vmatpush.bf16.msra.mxu0 %v4675_v13  ;;  %v6705_v32 = vld [vmem:[%s7649_s3 + $0x164] sm:$0xf]  ;;  %v4768_v35 = vld [vmem:[%s7649_s3 + $0x170] sm:$0xf0]  ;;  %v4643_v40 = vor.u32 %v6673_v30, %v4640_v31 }
  0xe6   : > { %3679 = vmatpush.bf16.msra.mxu1 %v4803_v14  ;;  %v6737_v36 = vld [vmem:[%s7649_s3 + $0x264] sm:$0xf]  ;;  %v4896_v37 = vld [vmem:[%s7649_s3 + $0x270] sm:$0xf0]  ;;  %v4771_v41 = vor.u32 %v6705_v32, %v4768_v35 }
  0xe7   : > { %3693 = vmatpush.bf16.msra.mxu2 %v4931_v15  ;;  %v6769_v38 = vld [vmem:[%s7649_s3 + $0x364] sm:$0xf]  ;;  %v5024_v39 = vld [vmem:[%s7649_s3 + $0x370] sm:$0xf0]  ;;  %v4899_v42 = vor.u32 %v6737_v36, %v4896_v37 }
  0xe8   : > { %3707 = vmatpush.bf16.msra.mxu3 %v5059_v20  ;;  %v6669_v43 = vld [vmem:[%s7649_s3 + $0x44] sm:$0xf]  ;;  %v4624_v44 = vld [vmem:[%s7649_s3 + $0x50] sm:$0xf0]  ;;  %v5027_v46 = vor.u32 %v6769_v38, %v5024_v39 }
  0xe9   : > { %3666 = vmatpush.bf16.msra.mxu0 %v4659_v27  ;;  %v6701_v45 = vld [vmem:[%s7649_s3 + $0x144] sm:$0xf]  ;;  %v4752_v49 = vld [vmem:[%s7649_s3 + $0x150] sm:$0xf0]  ;;  %v4627_v0 = vor.u32 %v6669_v43, %v4624_v44 }
  0xea   : > { %3680 = vmatpush.bf16.msra.mxu1 %v4787_v28  ;;  %v6733_v50 = vld [vmem:[%s7649_s3 + $0x244] sm:$0xf]  ;;  %v4880_v53 = vld [vmem:[%s7649_s3 + $0x250] sm:$0xf0]  ;;  %v4755_v1 = vor.u32 %v6701_v45, %v4752_v49 }
  0xeb   : > { %3694 = vmatpush.bf16.msra.mxu2 %v4915_v29  ;;  %v6765_v58 = vld [vmem:[%s7649_s3 + $0x344] sm:$0xf]  ;;  %v5008_v61 = vld [vmem:[%s7649_s3 + $0x350] sm:$0xf0]  ;;  %v4883_v2 = vor.u32 %v6733_v50, %v4880_v53 }
  0xec   : > { %3708 = vmatpush.bf16.msra.mxu3 %v5043_v34  ;;  %v6665_v3 = vld [vmem:[%s7649_s3 + $0x24] sm:$0xf]  ;;  %v4608_v4 = vld [vmem:[%s7649_s3 + $0x30] sm:$0xf0]  ;;  %v5011_v6 = vor.u32 %v6765_v58, %v5008_v61 }
  0xed   : > { %3667 = vmatpush.bf16.msra.mxu0 %v4643_v40  ;;  %v6697_v5 = vld [vmem:[%s7649_s3 + $0x124] sm:$0xf]  ;;  %v4736_v7 = vld [vmem:[%s7649_s3 + $0x130] sm:$0xf0]  ;;  %v4611_v13 = vor.u32 %v6665_v3, %v4608_v4 }
  0xee   : > { %3681 = vmatpush.bf16.msra.mxu1 %v4771_v41  ;;  %v6729_v8 = vld [vmem:[%s7649_s3 + $0x224] sm:$0xf]  ;;  %v4864_v9 = vld [vmem:[%s7649_s3 + $0x230] sm:$0xf0]  ;;  %v4739_v16 = vor.u32 %v6697_v5, %v4736_v7 }
  0xef   : > { %3695 = vmatpush.bf16.msra.mxu2 %v4899_v42  ;;  %v6761_v11 = vld [vmem:[%s7649_s3 + $0x324] sm:$0xf]  ;;  %v4992_v12 = vld [vmem:[%s7649_s3 + $0x330] sm:$0xf0]  ;;  %v4867_v18 = vor.u32 %v6729_v8, %v4864_v9 }
  0xf0   : > { %3709 = vmatpush.bf16.msra.mxu3 %v5027_v46  ;;  %v6661_v14 = vld [vmem:[%s7649_s3 + $0x4] sm:$0xf]  ;;  %v4592_v15 = vld [vmem:[%s7649_s3 + $0x10] sm:$0xf0]  ;;  %v4995_v22 = vor.u32 %v6761_v11, %v4992_v12 }
  0xf1   : > { %3668 = vmatpush.bf16.msra.mxu0 %v4627_v0  ;;  %v6693_v19 = vld [vmem:[%s7649_s3 + $0x104] sm:$0xf]  ;;  %v4720_v20 = vld [vmem:[%s7649_s3 + $0x110] sm:$0xf0]  ;;  %v4595_v30 = vor.u32 %v6661_v14, %v4592_v15 }
  0xf2   : > { %3682 = vmatpush.bf16.msra.mxu1 %v4755_v1  ;;  %v6725_v21 = vld [vmem:[%s7649_s3 + $0x204] sm:$0xf]  ;;  %v4848_v23 = vld [vmem:[%s7649_s3 + $0x210] sm:$0xf0]  ;;  %v4723_v35 = vor.u32 %v6693_v19, %v4720_v20 }
  0xf3   : > { %3696 = vmatpush.bf16.msra.mxu2 %v4883_v2  ;;  %v6757_v24 = vld [vmem:[%s7649_s3 + $0x304] sm:$0xf]  ;;  %v4976_v25 = vld [vmem:[%s7649_s3 + $0x310] sm:$0xf0]  ;;  %v4851_v36 = vor.u32 %v6725_v21, %v4848_v23 }
  0xf4   : > { %3710 = vmatpush.bf16.msra.mxu3 %v5011_v6  ;;  %v6817_v27 = vld [vmem:[%s7649_s3 + $0x4e4] sm:$0xf]  ;;  %v5216_v28 = vld [vmem:[%s7649_s3 + $0x4f0] sm:$0xf0]  ;;  %v4979_v39 = vor.u32 %v6757_v24, %v4976_v25 }
  0xf5   : > { %v6849_v29 = vld [vmem:[%s7649_s3 + $0x5e4] sm:$0xf]  ;;  %3669 = vmatpush.bf16.msra.mxu0 %v4611_v13  ;;  %v5344_v31 = vld [vmem:[%s7649_s3 + $0x5f0] sm:$0xf0]  ;;  %v5219_v40 = vor.u32 %v6817_v27, %v5216_v28 }
  0xf6   : > { %v6881_v32 = vld [vmem:[%s7649_s3 + $0x6e4] sm:$0xf]  ;;  %v5472_v34 = vld [vmem:[%s7649_s3 + $0x6f0] sm:$0xf0]  ;;  %3683 = vmatpush.bf16.msra.mxu1 %v4739_v16  ;;  %v5347_v41 = vor.u32 %v6849_v29, %v5344_v31 }
  0xf7   : > { %3697 = vmatpush.bf16.msra.mxu2 %v4867_v18  ;;  %v6913_v37 = vld [vmem:[%s7649_s3 + $0x7e4] sm:$0xf]  ;;  %v5600_v38 = vld [vmem:[%s7649_s3 + $0x7f0] sm:$0xf0]  ;;  %v5475_v42 = vor.u32 %v6881_v32, %v5472_v34 }
  0xf8   : > { %3711 = vmatpush.bf16.msra.mxu3 %v4995_v22  ;;  %v6813_v43 = vld [vmem:[%s7649_s3 + $0x4c4] sm:$0xf]  ;;  %v5200_v44 = vld [vmem:[%s7649_s3 + $0x4d0] sm:$0xf0]  ;;  %v5603_v46 = vor.u32 %v6913_v37, %v5600_v38 }
  0xf9   : > { %v6845_v45 = vld [vmem:[%s7649_s3 + $0x5c4] sm:$0xf]  ;;  %3670 = vmatpush.bf16.msra.mxu0 %v4595_v30  ;;  %v5328_v49 = vld [vmem:[%s7649_s3 + $0x5d0] sm:$0xf0]  ;;  %v5203_v0 = vor.u32 %v6813_v43, %v5200_v44 }
  0xfa   : > { %v6877_v50 = vld [vmem:[%s7649_s3 + $0x6c4] sm:$0xf]  ;;  %v5456_v53 = vld [vmem:[%s7649_s3 + $0x6d0] sm:$0xf0]  ;;  %3684 = vmatpush.bf16.msra.mxu1 %v4723_v35  ;;  %v5331_v1 = vor.u32 %v6845_v45, %v5328_v49 }
  0xfb   : > { %3698 = vmatpush.bf16.msra.mxu2 %v4851_v36  ;;  %v6909_v58 = vld [vmem:[%s7649_s3 + $0x7c4] sm:$0xf]  ;;  %v5584_v61 = vld [vmem:[%s7649_s3 + $0x7d0] sm:$0xf0]  ;;  %v5459_v2 = vor.u32 %v6877_v50, %v5456_v53 }
  0xfc   : > { %3712 = vmatpush.bf16.msra.mxu3 %v4979_v39  ;;  %v6809_v3 = vld [vmem:[%s7649_s3 + $0x4a4] sm:$0xf]  ;;  %v5184_v4 = vld [vmem:[%s7649_s3 + $0x4b0] sm:$0xf0]  ;;  %v5587_v6 = vor.u32 %v6909_v58, %v5584_v61  ;;  %3671 = vmatmul.bf16.vlgmr.msra.gmra.mxu0 %v7745_v10 }
  0xfd   : > { %3719 = vmatpush.bf16.msrb.mxu0 %v5219_v40  ;;  %v6841_v5 = vld [vmem:[%s7649_s3 + $0x5a4] sm:$0xf]  ;;  %v5312_v7 = vld [vmem:[%s7649_s3 + $0x5b0] sm:$0xf0]  ;;  %3685 = vmatmul.bf16.vlgmr.msra.gmra.mxu1 %v7761_v26  ;;  %v5187_v13 = vor.u32 %v6809_v3, %v5184_v4 }
  0xfe   : > { %3733 = vmatpush.bf16.msrb.mxu1 %v5347_v41  ;;  %v6873_v8 = vld [vmem:[%s7649_s3 + $0x6a4] sm:$0xf]  ;;  %v5440_v9 = vld [vmem:[%s7649_s3 + $0x6b0] sm:$0xf0]  ;;  %3699 = vmatmul.bf16.vlgmr.msra.gmra.mxu2 %v7751_v17  ;;  %v5315_v14 = vor.u32 %v6841_v5, %v5312_v7  ;;  %v3462_v41 = vpop.f32.mrf.mxu1 }
  0xff   : > { %3747 = vmatpush.bf16.msrb.mxu2 %v5475_v42  ;;  %v6905_v11 = vld [vmem:[%s7649_s3 + $0x7a4] sm:$0xf]  ;;  %v5568_v12 = vld [vmem:[%s7649_s3 + $0x7b0] sm:$0xf0]  ;;  %3713 = vmatmul.bf16.vlgmr.msra.gmra.mxu3 %v7767_v33  ;;  %v5443_v15 = vor.u32 %v6873_v8, %v5440_v9  ;;  %v3448_v40 = vpop.f32.mrf.mxu0 }
 0x100   : > { %3761 = vmatpush.bf16.msrb.mxu3 %v5603_v46  ;;  %v6805_v16 = vld [vmem:[%s7649_s3 + $0x484] sm:$0xf]  ;;  %v5168_v18 = vld [vmem:[%s7649_s3 + $0x490] sm:$0xf0]  ;;  %v5571_v20 = vor.u32 %v6905_v11, %v5568_v12  ;;  %v3463_v43 = vadd.f32 %v3462_v41, %v3448_v40 }
 0x101   : > { %3720 = vmatpush.bf16.msrb.mxu0 %v5203_v0  ;;  %v6837_v19 = vld [vmem:[%s7649_s3 + $0x584] sm:$0xf]  ;;  %v5296_v21 = vld [vmem:[%s7649_s3 + $0x590] sm:$0xf0]  ;;  %v5171_v27 = vor.u32 %v6805_v16, %v5168_v18  ;;  %v3490_v16 = vpop.f32.mrf.mxu3 }
 0x102   : > { %3734 = vmatpush.bf16.msrb.mxu1 %v5331_v1  ;;  %v6869_v22 = vld [vmem:[%s7649_s3 + $0x684] sm:$0xf]  ;;  %v5424_v23 = vld [vmem:[%s7649_s3 + $0x690] sm:$0xf0]  ;;  %v5299_v28 = vor.u32 %v6837_v19, %v5296_v21  ;;  %v3476_v1 = vpop.f32.mrf.mxu2 }
 0x103   : > { %3748 = vmatpush.bf16.msrb.mxu2 %v5459_v2  ;;  %v6901_v24 = vld [vmem:[%s7649_s3 + $0x784] sm:$0xf]  ;;  %v5552_v25 = vld [vmem:[%s7649_s3 + $0x790] sm:$0xf0]  ;;  %v5427_v29 = vor.u32 %v6869_v22, %v5424_v23  ;;  %v3477_v4 = vadd.f32 %v3476_v1, %v3463_v43 }
 0x104   : > { %3762 = vmatpush.bf16.msrb.mxu3 %v5587_v6  ;;  %v6801_v30 = vld [vmem:[%s7649_s3 + $0x464] sm:$0xf]  ;;  %v5152_v31 = vld [vmem:[%s7649_s3 + $0x470] sm:$0xf0]  ;;  %v5555_v34 = vor.u32 %v6901_v24, %v5552_v25 }
 0x105   : > { %3721 = vmatpush.bf16.msrb.mxu0 %v5187_v13  ;;  %v6833_v32 = vld [vmem:[%s7649_s3 + $0x564] sm:$0xf]  ;;  %v5280_v35 = vld [vmem:[%s7649_s3 + $0x570] sm:$0xf0]  ;;  %v5155_v42 = vor.u32 %v6801_v30, %v5152_v31 }
 0x106   : > { %3735 = vmatpush.bf16.msrb.mxu1 %v5315_v14  ;;  %v6865_v36 = vld [vmem:[%s7649_s3 + $0x664] sm:$0xf]  ;;  %v5408_v37 = vld [vmem:[%s7649_s3 + $0x670] sm:$0xf0]  ;;  %v5283_v44 = vor.u32 %v6833_v32, %v5280_v35 }
 0x107   : > { %3749 = vmatpush.bf16.msrb.mxu2 %v5443_v15  ;;  %v6897_v38 = vld [vmem:[%s7649_s3 + $0x764] sm:$0xf]  ;;  %v5536_v39 = vld [vmem:[%s7649_s3 + $0x770] sm:$0xf0]  ;;  %v5411_v45 = vor.u32 %v6865_v36, %v5408_v37 }
 0x108   : > { %3763 = vmatpush.bf16.msrb.mxu3 %v5571_v20  ;;  %v6797_v46 = vld [vmem:[%s7649_s3 + $0x444] sm:$0xf]  ;;  %v5136_v49 = vld [vmem:[%s7649_s3 + $0x450] sm:$0xf0]  ;;  %v5539_v53 = vor.u32 %v6897_v38, %v5536_v39  ;;  %v8120_v20 = vadd.f32 %v3490_v16, %v3477_v4 }
 0x109   : > { %3722 = vmatpush.bf16.msrb.mxu0 %v5171_v27  ;;  %v6829_v50 = vld [vmem:[%s7649_s3 + $0x544] sm:$0xf]  ;;  %v5264_v58 = vld [vmem:[%s7649_s3 + $0x550] sm:$0xf0]  ;;  %v5139_v5 = vor.u32 %v6797_v46, %v5136_v49 }
 0x10a   : > { %3736 = vmatpush.bf16.msrb.mxu1 %v5299_v28  ;;  %v6861_v61 = vld [vmem:[%s7649_s3 + $0x644] sm:$0xf]  ;;  %v5392_v0 = vld [vmem:[%s7649_s3 + $0x650] sm:$0xf0]  ;;  %v5267_v6 = vor.u32 %v6829_v50, %v5264_v58  ;;  %v8138_v58 = vpop.f32.mrf.mxu0 }
 0x10b   : > { %3750 = vmatpush.bf16.msrb.mxu2 %v5427_v29  ;;  %v6893_v2 = vld [vmem:[%s7649_s3 + $0x744] sm:$0xf]  ;;  %v5520_v3 = vld [vmem:[%s7649_s3 + $0x750] sm:$0xf0]  ;;  %v5395_v7 = vor.u32 %v6861_v61, %v5392_v0 }
 0x10c   : > { %3764 = vmatpush.bf16.msrb.mxu3 %v5555_v34  ;;  %v6793_v8 = vld [vmem:[%s7649_s3 + $0x424] sm:$0xf]  ;;  %v5120_v9 = vld [vmem:[%s7649_s3 + $0x430] sm:$0xf0]  ;;  %v5523_v12 = vor.u32 %v6893_v2, %v5520_v3 }
 0x10d   : > { %3723 = vmatpush.bf16.msrb.mxu0 %v5155_v42  ;;  %v6825_v11 = vld [vmem:[%s7649_s3 + $0x524] sm:$0xf]  ;;  %v5248_v13 = vld [vmem:[%s7649_s3 + $0x530] sm:$0xf0]  ;;  %v5123_v21 = vor.u32 %v6793_v8, %v5120_v9  ;;  %v8148_v8 = vpop.f32.mrf.mxu1 }
 0x10e   : > { %3737 = vmatpush.bf16.msrb.mxu1 %v5283_v44  ;;  %v6857_v14 = vld [vmem:[%s7649_s3 + $0x624] sm:$0xf]  ;;  %v5376_v15 = vld [vmem:[%s7649_s3 + $0x630] sm:$0xf0]  ;;  %v5251_v24 = vor.u32 %v6825_v11, %v5248_v13 }
 0x10f   : > { %3751 = vmatpush.bf16.msrb.mxu2 %v5411_v45  ;;  %v6889_v18 = vld [vmem:[%s7649_s3 + $0x724] sm:$0xf]  ;;  %v5504_v19 = vld [vmem:[%s7649_s3 + $0x730] sm:$0xf0]  ;;  %v5379_v25 = vor.u32 %v6857_v14, %v5376_v15 }
 0x110   : > { %3765 = vmatpush.bf16.msrb.mxu3 %v5539_v53  ;;  %v6789_v22 = vld [vmem:[%s7649_s3 + $0x404] sm:$0xf]  ;;  %v5104_v23 = vld [vmem:[%s7649_s3 + $0x410] sm:$0xf0]  ;;  %v5507_v30 = vor.u32 %v6889_v18, %v5504_v19 }
 0x111   : > { %3724 = vmatpush.bf16.msrb.mxu0 %v5139_v5  ;;  %v6821_v27 = vld [vmem:[%s7649_s3 + $0x504] sm:$0xf]  ;;  %v5232_v28 = vld [vmem:[%s7649_s3 + $0x510] sm:$0xf0]  ;;  %v5107_v38 = vor.u32 %v6789_v22, %v5104_v23 }
 0x112   : > { %3738 = vmatpush.bf16.msrb.mxu1 %v5267_v6  ;;  %v6853_v29 = vld [vmem:[%s7649_s3 + $0x604] sm:$0xf]  ;;  %v5360_v31 = vld [vmem:[%s7649_s3 + $0x610] sm:$0xf0]  ;;  %v5235_v42 = vor.u32 %v6821_v27, %v5232_v28 }
 0x113   : > { %3752 = vmatpush.bf16.msrb.mxu2 %v5395_v7  ;;  %v6885_v32 = vld [vmem:[%s7649_s3 + $0x704] sm:$0xf]  ;;  %v5488_v34 = vld [vmem:[%s7649_s3 + $0x710] sm:$0xf0]  ;;  %v5363_v43 = vor.u32 %v6853_v29, %v5360_v31 }
 0x114   : > { %3766 = vmatpush.bf16.msrb.mxu3 %v5523_v12  ;;  %v6945_v35 = vld [vmem:[%s7649_s3 + $0x8e4] sm:$0xf]  ;;  %v5728_v36 = vld [vmem:[%s7649_s3 + $0x8f0] sm:$0xf0]  ;;  %v5491_v46 = vor.u32 %v6885_v32, %v5488_v34  ;;  %v8167_v34 = vpop.f32.mrf.mxu3 }
 0x115   : > { %v6977_v37 = vld [vmem:[%s7649_s3 + $0x9e4] sm:$0xf]  ;;  %3725 = vmatpush.bf16.msrb.mxu0 %v5123_v21  ;;  %v5856_v39 = vld [vmem:[%s7649_s3 + $0x9f0] sm:$0xf0]  ;;  %v5731_v49 = vor.u32 %v6945_v35, %v5728_v36 }
 0x116   : > { %v7009_v40 = vld [vmem:[%s7649_s3 + $0xae4] sm:$0xf]  ;;  %v5984_v41 = vld [vmem:[%s7649_s3 + $0xaf0] sm:$0xf0]  ;;  %3739 = vmatpush.bf16.msrb.mxu1 %v5251_v24  ;;  %v5859_v50 = vor.u32 %v6977_v37, %v5856_v39 }
 0x117   : > { %3753 = vmatpush.bf16.msrb.mxu2 %v5379_v25  ;;  %v7041_v44 = vld [vmem:[%s7649_s3 + $0xbe4] sm:$0xf]  ;;  %v6112_v45 = vld [vmem:[%s7649_s3 + $0xbf0] sm:$0xf0]  ;;  %v5987_v53 = vor.u32 %v7009_v40, %v5984_v41  ;;  %v8162_v25 = vpop.f32.mrf.mxu2 }
 0x118   : > { %3767 = vmatpush.bf16.msrb.mxu3 %v5507_v30  ;;  %v6941_v61 = vld [vmem:[%s7649_s3 + $0x8c4] sm:$0xf]  ;;  %v5712_v0 = vld [vmem:[%s7649_s3 + $0x8d0] sm:$0xf0]  ;;  %v6115_v2 = vor.u32 %v7041_v44, %v6112_v45  ;;  %v3518_v45 = vpop.f32.mrf.mxu1 }
 0x119   : > { %v6973_v1 = vld [vmem:[%s7649_s3 + $0x9c4] sm:$0xf]  ;;  %3726 = vmatpush.bf16.msrb.mxu0 %v5107_v38  ;;  %v5840_v3 = vld [vmem:[%s7649_s3 + $0x9d0] sm:$0xf0]  ;;  %v5715_v9 = vor.u32 %v6941_v61, %v5712_v0 }
 0x11a   : > { %v7005_v4 = vld [vmem:[%s7649_s3 + $0xac4] sm:$0xf]  ;;  %v5968_v5 = vld [vmem:[%s7649_s3 + $0xad0] sm:$0xf0]  ;;  %3740 = vmatpush.bf16.msrb.mxu1 %v5235_v42  ;;  %v5843_v11 = vor.u32 %v6973_v1, %v5840_v3 }
 0x11b   : > { %3754 = vmatpush.bf16.msrb.mxu2 %v5363_v43  ;;  %v7037_v6 = vld [vmem:[%s7649_s3 + $0xbc4] sm:$0xf]  ;;  %v6096_v7 = vld [vmem:[%s7649_s3 + $0xbd0] sm:$0xf0]  ;;  %v5971_v12 = vor.u32 %v7005_v4, %v5968_v5  ;;  %v3504_v38 = vpop.f32.mrf.mxu0 }
 0x11c   : > { %3768 = vmatpush.bf16.msrb.mxu3 %v5491_v46  ;;  %v6937_v13 = vld [vmem:[%s7649_s3 + $0x8a4] sm:$0xf]  ;;  %v5696_v14 = vld [vmem:[%s7649_s3 + $0x8b0] sm:$0xf0]  ;;  %3727 = vmatmul.bf16.vlgmr.msrb.gmra.mxu0 %v7827_v55  ;;  %v6099_v16 = vor.u32 %v7037_v6, %v6096_v7  ;;  %v3505_v41 = vadd.f32 %v3504_v38, %v8120_v20 }
 0x11d   : > { %3775 = vmatpush.bf16.msra.mxu0 %v5731_v49  ;;  %v6969_v15 = vld [vmem:[%s7649_s3 + $0x9a4] sm:$0xf]  ;;  %v5824_v18 = vld [vmem:[%s7649_s3 + $0x9b0] sm:$0xf0]  ;;  %3741 = vmatmul.bf16.vlgmr.msrb.gmra.mxu1 %v7834_v60  ;;  %v5699_v24 = vor.u32 %v6937_v13, %v5696_v14 }
 0x11e   : > { %3789 = vmatpush.bf16.msra.mxu1 %v5859_v50  ;;  %v7001_v19 = vld [vmem:[%s7649_s3 + $0xaa4] sm:$0xf]  ;;  %v5952_v21 = vld [vmem:[%s7649_s3 + $0xab0] sm:$0xf0]  ;;  %3755 = vmatmul.bf16.vlgmr.msrb.gmra.mxu2 %v7832_v59  ;;  %v5827_v27 = vor.u32 %v6969_v15, %v5824_v18  ;;  %v3519_v61 = vadd.f32 %v3518_v45, %v3505_v41 }
 0x11f   : > { %3803 = vmatpush.bf16.msra.mxu2 %v5987_v53  ;;  %v7033_v22 = vld [vmem:[%s7649_s3 + $0xba4] sm:$0xf]  ;;  %v6080_v23 = vld [vmem:[%s7649_s3 + $0xbb0] sm:$0xf0]  ;;  %3769 = vmatmul.bf16.vlgmr.msrb.gmra.mxu3 %v7838_v63  ;;  %v5955_v28 = vor.u32 %v7001_v19, %v5952_v21  ;;  %v3532_v13 = vpop.f32.mrf.mxu2 }
 0x120   : > { %3817 = vmatpush.bf16.msra.mxu3 %v6115_v2  ;;  %v6933_v29 = vld [vmem:[%s7649_s3 + $0x884] sm:$0xf]  ;;  %v5680_v30 = vld [vmem:[%s7649_s3 + $0x890] sm:$0xf0]  ;;  %v6083_v32 = vor.u32 %v7033_v22, %v6080_v23  ;;  %v3533_v18 = vadd.f32 %v3532_v13, %v3519_v61  ;;  %v3546_v22 = vpop.f32.mrf.mxu3 }
 0x121   : > { %3776 = vmatpush.bf16.msra.mxu0 %v5715_v9  ;;  %v6965_v31 = vld [vmem:[%s7649_s3 + $0x984] sm:$0xf]  ;;  %v5808_v35 = vld [vmem:[%s7649_s3 + $0x990] sm:$0xf0]  ;;  %v5683_v42 = vor.u32 %v6933_v29, %v5680_v30 }
 0x122   : > { %3790 = vmatpush.bf16.msra.mxu1 %v5843_v11  ;;  %v6997_v36 = vld [vmem:[%s7649_s3 + $0xa84] sm:$0xf]  ;;  %v5936_v37 = vld [vmem:[%s7649_s3 + $0xa90] sm:$0xf0]  ;;  %v5811_v43 = vor.u32 %v6965_v31, %v5808_v35 }
 0x123   : > { %3804 = vmatpush.bf16.msra.mxu2 %v5971_v12  ;;  %v7029_v39 = vld [vmem:[%s7649_s3 + $0xb84] sm:$0xf]  ;;  %v6064_v40 = vld [vmem:[%s7649_s3 + $0xb90] sm:$0xf0]  ;;  %v5939_v44 = vor.u32 %v6997_v36, %v5936_v37 }
 0x124   : > { %3818 = vmatpush.bf16.msra.mxu3 %v6099_v16  ;;  %v6929_v46 = vld [vmem:[%s7649_s3 + $0x864] sm:$0xf]  ;;  %v5664_v49 = vld [vmem:[%s7649_s3 + $0x870] sm:$0xf0]  ;;  %v6067_v53 = vor.u32 %v7029_v39, %v6064_v40 }
 0x125   : > { %3777 = vmatpush.bf16.msra.mxu0 %v5699_v24  ;;  %v6961_v50 = vld [vmem:[%s7649_s3 + $0x964] sm:$0xf]  ;;  %v5792_v0 = vld [vmem:[%s7649_s3 + $0x970] sm:$0xf0]  ;;  %v5667_v4 = vor.u32 %v6929_v46, %v5664_v49  ;;  %v8191_v24 = vadd.f32 %v3546_v22, %v3533_v18 }
 0x126   : > { %3791 = vmatpush.bf16.msra.mxu1 %v5827_v27  ;;  %v6993_v1 = vld [vmem:[%s7649_s3 + $0xa64] sm:$0xf]  ;;  %v5920_v20 = vld [vmem:[%s7649_s3 + $0xa70] sm:$0xf0]  ;;  %v5795_v5 = vor.u32 %v6961_v50, %v5792_v0 }
 0x127   : > { %3805 = vmatpush.bf16.msra.mxu2 %v5955_v28  ;;  %v7025_v2 = vld [vmem:[%s7649_s3 + $0xb64] sm:$0xf]  ;;  %v6048_v3 = vld [vmem:[%s7649_s3 + $0xb70] sm:$0xf0]  ;;  %v5923_v6 = vor.u32 %v6993_v1, %v5920_v20 }
 0x128   : > { %3819 = vmatpush.bf16.msra.mxu3 %v6083_v32  ;;  %v6925_v7 = vld [vmem:[%s7649_s3 + $0x844] sm:$0xf]  ;;  %v5648_v9 = vld [vmem:[%s7649_s3 + $0x850] sm:$0xf0]  ;;  %v6051_v12 = vor.u32 %v7025_v2, %v6048_v3 }
 0x129   : > { %3778 = vmatpush.bf16.msra.mxu0 %v5683_v42  ;;  %v6957_v11 = vld [vmem:[%s7649_s3 + $0x944] sm:$0xf]  ;;  %v5776_v14 = vld [vmem:[%s7649_s3 + $0x950] sm:$0xf0]  ;;  %v5651_v23 = vor.u32 %v6925_v7, %v5648_v9 }
 0x12a   : > { %3792 = vmatpush.bf16.msra.mxu1 %v5811_v43  ;;  %v6989_v15 = vld [vmem:[%s7649_s3 + $0xa44] sm:$0xf]  ;;  %v5904_v16 = vld [vmem:[%s7649_s3 + $0xa50] sm:$0xf0]  ;;  %v5779_v27 = vor.u32 %v6957_v11, %v5776_v14 }
 0x12b   : > { %3806 = vmatpush.bf16.msra.mxu2 %v5939_v44  ;;  %v7021_v19 = vld [vmem:[%s7649_s3 + $0xb44] sm:$0xf]  ;;  %v6032_v21 = vld [vmem:[%s7649_s3 + $0xb50] sm:$0xf0]  ;;  %v5907_v28 = vor.u32 %v6989_v15, %v5904_v16 }
 0x12c   : > { %3820 = vmatpush.bf16.msra.mxu3 %v6067_v53  ;;  %v6921_v29 = vld [vmem:[%s7649_s3 + $0x824] sm:$0xf]  ;;  %v5632_v30 = vld [vmem:[%s7649_s3 + $0x830] sm:$0xf0]  ;;  %v6035_v32 = vor.u32 %v7021_v19, %v6032_v21 }
 0x12d   : > { %3779 = vmatpush.bf16.msra.mxu0 %v5667_v4  ;;  %v6953_v31 = vld [vmem:[%s7649_s3 + $0x924] sm:$0xf]  ;;  %v5760_v35 = vld [vmem:[%s7649_s3 + $0x930] sm:$0xf0]  ;;  %v5635_v40 = vor.u32 %v6921_v29, %v5632_v30  ;;  %v8223_v29 = vpop.f32.mrf.mxu0 }
 0x12e   : > { %3793 = vmatpush.bf16.msra.mxu1 %v5795_v5  ;;  %v6985_v36 = vld [vmem:[%s7649_s3 + $0xa24] sm:$0xf]  ;;  %v5888_v37 = vld [vmem:[%s7649_s3 + $0xa30] sm:$0xf0]  ;;  %v5763_v43 = vor.u32 %v6953_v31, %v5760_v35 }
 0x12f   : > { %3807 = vmatpush.bf16.msra.mxu2 %v5923_v6  ;;  %v7017_v38 = vld [vmem:[%s7649_s3 + $0xb24] sm:$0xf]  ;;  %v6016_v39 = vld [vmem:[%s7649_s3 + $0xb30] sm:$0xf0]  ;;  %v5891_v44 = vor.u32 %v6985_v36, %v5888_v37 }
 0x130   : > { %3821 = vmatpush.bf16.msra.mxu3 %v6051_v12  ;;  %v6917_v41 = vld [vmem:[%s7649_s3 + $0x804] sm:$0xf]  ;;  %v5616_v42 = vld [vmem:[%s7649_s3 + $0x810] sm:$0xf0]  ;;  %v6019_v50 = vor.u32 %v7017_v38, %v6016_v39 }
 0x131   : > { %3780 = vmatpush.bf16.msra.mxu0 %v5651_v23  ;;  %v6949_v45 = vld [vmem:[%s7649_s3 + $0x904] sm:$0xf]  ;;  %v5744_v46 = vld [vmem:[%s7649_s3 + $0x910] sm:$0xf0]  ;;  %v5619_v3 = vor.u32 %v6917_v41, %v5616_v42 }
 0x132   : > { %3794 = vmatpush.bf16.msra.mxu1 %v5779_v27  ;;  %v6981_v49 = vld [vmem:[%s7649_s3 + $0xa04] sm:$0xf]  ;;  %v5872_v53 = vld [vmem:[%s7649_s3 + $0xa10] sm:$0xf0]  ;;  %v5747_v7 = vor.u32 %v6949_v45, %v5744_v46 }
 0x133   : > { %3808 = vmatpush.bf16.msra.mxu2 %v5907_v28  ;;  %v7013_v61 = vld [vmem:[%s7649_s3 + $0xb04] sm:$0xf]  ;;  %v6000_v0 = vld [vmem:[%s7649_s3 + $0xb10] sm:$0xf0]  ;;  %v5875_v9 = vor.u32 %v6981_v49, %v5872_v53 }
 0x134   : > { %3822 = vmatpush.bf16.msra.mxu3 %v6035_v32  ;;  %v7073_v1 = vld [vmem:[%s7649_s3 + $0xce4] sm:$0xf]  ;;  %v6240_v20 = vld [vmem:[%s7649_s3 + $0xcf0] sm:$0xf0]  ;;  %v6003_v13 = vor.u32 %v7013_v61, %v6000_v0  ;;  %v8227_v32 = vpop.f32.mrf.mxu1 }
 0x135   : > { %v7105_v2 = vld [vmem:[%s7649_s3 + $0xde4] sm:$0xf]  ;;  %3781 = vmatpush.bf16.msra.mxu0 %v5635_v40  ;;  %v6368_v4 = vld [vmem:[%s7649_s3 + $0xdf0] sm:$0xf0]  ;;  %v6243_v14 = vor.u32 %v7073_v1, %v6240_v20  ;;  %v8244_v20 = vpop.f32.mrf.mxu2 }
 0x136   : > { %v7137_v5 = vld [vmem:[%s7649_s3 + $0xee4] sm:$0xf]  ;;  %v6496_v6 = vld [vmem:[%s7649_s3 + $0xef0] sm:$0xf0]  ;;  %3795 = vmatpush.bf16.msra.mxu1 %v5763_v43  ;;  %v6371_v15 = vor.u32 %v7105_v2, %v6368_v4 }
 0x137   : > { %3809 = vmatpush.bf16.msra.mxu2 %v5891_v44  ;;  %v7169_v11 = vld [vmem:[%s7649_s3 + $0xfe4] sm:$0xf]  ;;  %v6624_v12 = vld [vmem:[%s7649_s3 + $0xff0] sm:$0xf0]  ;;  %v6499_v16 = vor.u32 %v7137_v5, %v6496_v6  ;;  %v8249_v6 = vpop.f32.mrf.mxu3 }
 0x138   : > { %3823 = vmatpush.bf16.msra.mxu3 %v6019_v50  ;;  %v7069_v18 = vld [vmem:[%s7649_s3 + $0xcc4] sm:$0xf]  ;;  %v6224_v19 = vld [vmem:[%s7649_s3 + $0xcd0] sm:$0xf0]  ;;  %v6627_v22 = vor.u32 %v7169_v11, %v6624_v12 }
 0x139   : > { %v7101_v21 = vld [vmem:[%s7649_s3 + $0xdc4] sm:$0xf]  ;;  %3782 = vmatpush.bf16.msra.mxu0 %v5619_v3  ;;  %v6352_v23 = vld [vmem:[%s7649_s3 + $0xdd0] sm:$0xf0]  ;;  %v6227_v35 = vor.u32 %v7069_v18, %v6224_v19 }
 0x13a   : > { %v7133_v27 = vld [vmem:[%s7649_s3 + $0xec4] sm:$0xf]  ;;  %v6480_v28 = vld [vmem:[%s7649_s3 + $0xed0] sm:$0xf0]  ;;  %3796 = vmatpush.bf16.msra.mxu1 %v5747_v7  ;;  %v6355_v36 = vor.u32 %v7101_v21, %v6352_v23 }
 0x13b   : > { %3810 = vmatpush.bf16.msra.mxu2 %v5875_v9  ;;  %v7165_v30 = vld [vmem:[%s7649_s3 + $0xfc4] sm:$0xf]  ;;  %v6608_v31 = vld [vmem:[%s7649_s3 + $0xfd0] sm:$0xf0]  ;;  %v6483_v37 = vor.u32 %v7133_v27, %v6480_v28 }
 0x13c   : > { %3824 = vmatpush.bf16.msra.mxu3 %v6003_v13  ;;  %v7065_v38 = vld [vmem:[%s7649_s3 + $0xca4] sm:$0xf]  ;;  %v6208_v39 = vld [vmem:[%s7649_s3 + $0xcb0] sm:$0xf0]  ;;  %3783 = vmatmul.bf16.vlgmr.msra.gmra.mxu0 %v7911_v47  ;;  %v6611_v41 = vor.u32 %v7165_v30, %v6608_v31 }
 0x13d   : > { %3831 = vmatpush.bf16.msrb.mxu0 %v6243_v14  ;;  %v7097_v40 = vld [vmem:[%s7649_s3 + $0xda4] sm:$0xf]  ;;  %v6336_v42 = vld [vmem:[%s7649_s3 + $0xdb0] sm:$0xf0]  ;;  %3797 = vmatmul.bf16.vlgmr.msra.gmra.mxu1 %v7918_v52  ;;  %v6211_v49 = vor.u32 %v7065_v38, %v6208_v39  ;;  %v3560_v7 = vpop.f32.mrf.mxu0  ;;  %v3574_v14 = vpop.f32.mrf.mxu1 }
 0x13e   : > { %3845 = vmatpush.bf16.msrb.mxu1 %v6371_v15  ;;  %v7129_v43 = vld [vmem:[%s7649_s3 + $0xea4] sm:$0xf]  ;;  %v6464_v44 = vld [vmem:[%s7649_s3 + $0xeb0] sm:$0xf0]  ;;  %3811 = vmatmul.bf16.vlgmr.msra.gmra.mxu2 %v7916_v51  ;;  %v6339_v50 = vor.u32 %v7097_v40, %v6336_v42  ;;  %v3561_v12 = vadd.f32 %v3560_v7, %v8191_v24 }
 0x13f   : > { %3859 = vmatpush.bf16.msrb.mxu2 %v6499_v16  ;;  %v7161_v45 = vld [vmem:[%s7649_s3 + $0xfa4] sm:$0xf]  ;;  %v6592_v46 = vld [vmem:[%s7649_s3 + $0xfb0] sm:$0xf0]  ;;  %3825 = vmatmul.bf16.vlgmr.msra.gmra.mxu3 %v7922_v56  ;;  %v6467_v53 = vor.u32 %v7129_v43, %v6464_v44  ;;  %v3588_v43 = vpop.f32.mrf.mxu2 }
 0x140   : > { %3873 = vmatpush.bf16.msrb.mxu3 %v6627_v22  ;;  %v7061_v61 = vld [vmem:[%s7649_s3 + $0xc84] sm:$0xf]  ;;  %v6192_v0 = vld [vmem:[%s7649_s3 + $0xc90] sm:$0xf0]  ;;  %v6595_v2 = vor.u32 %v7161_v45, %v6592_v46  ;;  %v3575_v23 = vadd.f32 %v3574_v14, %v3561_v12  ;;  %v3602_v46 = vpop.f32.mrf.mxu3 }
 0x141   : > { %3832 = vmatpush.bf16.msrb.mxu0 %v6227_v35  ;;  %v7093_v1 = vld [vmem:[%s7649_s3 + $0xd84] sm:$0xf]  ;;  %v6320_v3 = vld [vmem:[%s7649_s3 + $0xd90] sm:$0xf0]  ;;  %v6195_v13 = vor.u32 %v7061_v61, %v6192_v0  ;;  %v3465_v35 = vadd.f32 %v8148_v8, %v8138_v58 }
 0x142   : > { %3846 = vmatpush.bf16.msrb.mxu1 %v6355_v36  ;;  %v7125_v4 = vld [vmem:[%s7649_s3 + $0xe84] sm:$0xf]  ;;  %v6448_v5 = vld [vmem:[%s7649_s3 + $0xe90] sm:$0xf0]  ;;  %v6323_v15 = vor.u32 %v7093_v1, %v6320_v3  ;;  %v3589_v8 = vadd.f32 %v3588_v43, %v3575_v23 }
 0x143   : > { %3860 = vmatpush.bf16.msrb.mxu2 %v6483_v37  ;;  %v7157_v9 = vld [vmem:[%s7649_s3 + $0xf84] sm:$0xf]  ;;  %v6576_v11 = vld [vmem:[%s7649_s3 + $0xf90] sm:$0xf0]  ;;  %v6451_v16 = vor.u32 %v7125_v4, %v6448_v5 }
 0x144   : > { %3874 = vmatpush.bf16.msrb.mxu3 %v6611_v41  ;;  %v7057_v18 = vld [vmem:[%s7649_s3 + $0xc64] sm:$0xf]  ;;  %v6176_v19 = vld [vmem:[%s7649_s3 + $0xc70] sm:$0xf0]  ;;  %v6579_v22 = vor.u32 %v7157_v9, %v6576_v11  ;;  %v8273_v0 = vadd.f32 %v3602_v46, %v3589_v8 }
 0x145   : > { %3833 = vmatpush.bf16.msrb.mxu0 %v6211_v49  ;;  %v7089_v21 = vld [vmem:[%s7649_s3 + $0xd64] sm:$0xf]  ;;  %v6304_v27 = vld [vmem:[%s7649_s3 + $0xd70] sm:$0xf0]  ;;  %v6179_v36 = vor.u32 %v7057_v18, %v6176_v19 }
 0x146   : > { %3847 = vmatpush.bf16.msrb.mxu1 %v6339_v50  ;;  %v7121_v28 = vld [vmem:[%s7649_s3 + $0xe64] sm:$0xf]  ;;  %v6432_v24 = vld [vmem:[%s7649_s3 + $0xe70] sm:$0xf0]  ;;  %v6307_v37 = vor.u32 %v7089_v21, %v6304_v27 }
 0x147   : > { %3861 = vmatpush.bf16.msrb.mxu2 %v6467_v53  ;;  %v7153_v30 = vld [vmem:[%s7649_s3 + $0xf64] sm:$0xf]  ;;  %v6560_v31 = vld [vmem:[%s7649_s3 + $0xf70] sm:$0xf0]  ;;  %v6435_v38 = vor.u32 %v7121_v28, %v6432_v24  ;;  %v3479_v53 = vadd.f32 %v8162_v25, %v3465_v35  ;;  %v4710_v35 = vld [vmem:[%s7649_s3 + $0xe8] sm:$0xf] }
 0x148   : > { %3875 = vmatpush.bf16.msrb.mxu3 %v6595_v2  ;;  %v7053_v39 = vld [vmem:[%s7649_s3 + $0xc44] sm:$0xf]  ;;  %v6160_v40 = vld [vmem:[%s7649_s3 + $0xc50] sm:$0xf0]  ;;  %v6563_v42 = vor.u32 %v7153_v30, %v6560_v31 }
 0x149   : > { %3834 = vmatpush.bf16.msrb.mxu0 %v6195_v13  ;;  %v7085_v41 = vld [vmem:[%s7649_s3 + $0xd44] sm:$0xf]  ;;  %v6288_v44 = vld [vmem:[%s7649_s3 + $0xd50] sm:$0xf0]  ;;  %v6163_v61 = vor.u32 %v7053_v39, %v6160_v40  ;;  %v3493_v18 = vadd.f32 %v8167_v34, %v3479_v53  ;;  %v6724_v39 = vld [vmem:[%s7649_s3 + $0x1f4] sm:$0xf0] }
 0x14a   : > { %3848 = vmatpush.bf16.msrb.mxu1 %v6323_v15  ;;  %v7117_v45 = vld [vmem:[%s7649_s3 + $0xe44] sm:$0xf]  ;;  %v6416_v58 = vld [vmem:[%s7649_s3 + $0xe50] sm:$0xf0]  ;;  %v6291_v1 = vor.u32 %v7085_v41, %v6288_v44  ;;  %v4966_v40 = vld [vmem:[%s7649_s3 + $0x2e8] sm:$0xf] }
 0x14b   : > { %3862 = vmatpush.bf16.msrb.mxu2 %v6451_v16  ;;  %v7149_v49 = vld [vmem:[%s7649_s3 + $0xf44] sm:$0xf]  ;;  %v6544_v50 = vld [vmem:[%s7649_s3 + $0xf50] sm:$0xf0]  ;;  %v6419_v2 = vor.u32 %v7117_v45, %v6416_v58  ;;  %v3507_v34 = vadd.f32 %v8223_v29, %v3493_v18  ;;  %v6756_v41 = vld [vmem:[%s7649_s3 + $0x2f4] sm:$0xf0] }
 0x14c   : > { %3876 = vmatpush.bf16.msrb.mxu3 %v6579_v22  ;;  %v7049_v3 = vld [vmem:[%s7649_s3 + $0xc24] sm:$0xf]  ;;  %v6144_v4 = vld [vmem:[%s7649_s3 + $0xc30] sm:$0xf0]  ;;  %v6547_v7 = vor.u32 %v7149_v49, %v6544_v50  ;;  %v5094_v44 = vld [vmem:[%s7649_s3 + $0x3e8] sm:$0xf]  ;;  %v4967_v49 = vor.u32 %v6756_v41, %v4966_v40  ;;  %v3604_v41 = vpop.f32.mrf.mxu3 }
 0x14d   : > { %3835 = vmatpush.bf16.msrb.mxu0 %v6179_v36  ;;  %v7081_v5 = vld [vmem:[%s7649_s3 + $0xd24] sm:$0xf]  ;;  %v6272_v25 = vld [vmem:[%s7649_s3 + $0xd30] sm:$0xf0]  ;;  %v6147_v14 = vor.u32 %v7049_v3, %v6144_v4  ;;  %v6692_v36 = vld [vmem:[%s7649_s3 + $0xf4] sm:$0xf0]  ;;  %v3521_v8 = vadd.f32 %v8227_v32, %v3507_v34 }
 0x14e   : > { %3849 = vmatpush.bf16.msrb.mxu1 %v6307_v37  ;;  %v7113_v9 = vld [vmem:[%s7649_s3 + $0xe24] sm:$0xf]  ;;  %v6400_v11 = vld [vmem:[%s7649_s3 + $0xe30] sm:$0xf0]  ;;  %v6275_v19 = vor.u32 %v7081_v5, %v6272_v25  ;;  %v4838_v37 = vld [vmem:[%s7649_s3 + $0x1e8] sm:$0xf]  ;;  %v4711_v58 = vor.u32 %v6692_v36, %v4710_v35  ;;  %v3590_v36 = vpop.f32.mrf.mxu2 }
 0x14f   : > { %3863 = vmatpush.bf16.msrb.mxu2 %v6435_v38  ;;  %v7145_v12 = vld [vmem:[%s7649_s3 + $0xf24] sm:$0xf]  ;;  %v6528_v13 = vld [vmem:[%s7649_s3 + $0xf30] sm:$0xf0]  ;;  %v6403_v21 = vor.u32 %v7113_v9, %v6400_v11  ;;  %v6788_v29 = vld [vmem:[%s7649_s3 + $0x3f4] sm:$0xf0]  ;;  %v4839_v46 = vor.u32 %v6724_v39, %v4838_v37  ;;  %v3535_v5 = vadd.f32 %v8244_v20, %v3521_v8  ;;  %v3576_v9 = vpop.f32.mrf.mxu1 }
 0x150   : > { %3877 = vmatpush.bf16.msrb.mxu3 %v6563_v42  ;;  %v7045_v15 = vld [vmem:[%s7649_s3 + $0xc04] sm:$0xf]  ;;  %v6128_v16 = vld [vmem:[%s7649_s3 + $0xc10] sm:$0xf0]  ;;  %v6531_v28 = vor.u32 %v7145_v12, %v6528_v13  ;;  %v4694_v50 = vld [vmem:[%s7649_s3 + $0xc8] sm:$0xf] }
 0x151   : > { %3836 = vmatpush.bf16.msrb.mxu0 %v6163_v61  ;;  %v7077_v22 = vld [vmem:[%s7649_s3 + $0xd04] sm:$0xf]  ;;  %v6256_v23 = vld [vmem:[%s7649_s3 + $0xd10] sm:$0xf0]  ;;  %v6131_v38 = vor.u32 %v7045_v15, %v6128_v16  ;;  %v6688_v53 = vld [vmem:[%s7649_s3 + $0xd4] sm:$0xf0] }
 0x152   : > { %3850 = vmatpush.bf16.msrb.mxu1 %v6291_v1  ;;  %v7109_v27 = vld [vmem:[%s7649_s3 + $0xe04] sm:$0xf]  ;;  %v6384_v24 = vld [vmem:[%s7649_s3 + $0xe10] sm:$0xf0]  ;;  %v6259_v42 = vor.u32 %v7077_v22, %v6256_v23  ;;  %v4822_v61 = vld [vmem:[%s7649_s3 + $0x1c8] sm:$0xf]  ;;  %v5095_v1 = vor.u32 %v6788_v29, %v5094_v44  ;;  %v4695_v11 = vor.u32 %v6688_v53, %v4694_v50  ;;  %v3549_v22 = vadd.f32 %v8249_v6, %v3535_v5 }
 0x153   : > { %3864 = vmatpush.bf16.msrb.mxu2 %v6419_v2  ;;  %v7141_v30 = vld [vmem:[%s7649_s3 + $0xf04] sm:$0xf]  ;;  %v6512_v31 = vld [vmem:[%s7649_s3 + $0xf10] sm:$0xf0]  ;;  %v6387_v43 = vor.u32 %v7109_v27, %v6384_v24  ;;  %v6720_v2 = vld [vmem:[%s7649_s3 + $0x1d4] sm:$0xf0] }
 0x154   : > { %3878 = vmatpush.bf16.msrb.mxu3 %v6547_v7  ;;  %v6515_v45 = vor.u32 %v7141_v30, %v6512_v31  ;;  %v4950_v3 = vld [vmem:[%s7649_s3 + $0x2c8] sm:$0xf]  ;;  %v6752_v4 = vld [vmem:[%s7649_s3 + $0x2d4] sm:$0xf0]  ;;  %v3562_v7 = vpop.f32.mrf.mxu0  ;;  %v4823_v12 = vor.u32 %v6720_v2, %v4822_v61 }
 0x155   : > { %3837 = vmatpush.bf16.msrb.mxu0 %v6147_v14  ;;  %v5078_v32 = vld [vmem:[%s7649_s3 + $0x3c8] sm:$0xf]  ;;  %v6784_v25 = vld [vmem:[%s7649_s3 + $0x3d4] sm:$0xf0]  ;;  %v4951_v13 = vor.u32 %v6752_v4, %v4950_v3  ;;  %v3563_v24 = vadd.f32 %v3562_v7, %v3549_v22 }
 0x156   : > { %3851 = vmatpush.bf16.msrb.mxu1 %v6275_v19  ;;  %v4678_v20 = vld [vmem:[%s7649_s3 + $0xa8] sm:$0xf]  ;;  %v6684_v14 = vld [vmem:[%s7649_s3 + $0xb4] sm:$0xf0]  ;;  %v5079_v16 = vor.u32 %v6784_v25, %v5078_v32 }
 0x157   : > { %3865 = vmatpush.bf16.msrb.mxu2 %v6403_v21  ;;  %v4806_v15 = vld [vmem:[%s7649_s3 + $0x1a8] sm:$0xf]  ;;  %v6716_v18 = vld [vmem:[%s7649_s3 + $0x1b4] sm:$0xf0]  ;;  %v3577_v8 = vadd.f32 %v3576_v9, %v3563_v24 }
 0x158   : > { %3879 = vmatpush.bf16.msrb.mxu3 %v6531_v28  ;;  %v4934_v19 = vld [vmem:[%s7649_s3 + $0x2a8] sm:$0xf]  ;;  %v6748_v21 = vld [vmem:[%s7649_s3 + $0x2b4] sm:$0xf0]  ;;  %v4679_v28 = vor.u32 %v6684_v14, %v4678_v20  ;;  %v4807_v30 = vor.u32 %v6716_v18, %v4806_v15 }
 0x159   : > { %3838 = vmatpush.bf16.msrb.mxu0 %v6131_v38  ;;  %v5062_v23 = vld [vmem:[%s7649_s3 + $0x3a8] sm:$0xf]  ;;  %v6780_v27 = vld [vmem:[%s7649_s3 + $0x3b4] sm:$0xf0]  ;;  %v4935_v6 = vor.u32 %v6748_v21, %v4934_v19  ;;  %v3591_v5 = vadd.f32 %v3590_v36, %v3577_v8 }
 0x15a   : > { %3852 = vmatpush.bf16.msrb.mxu1 %v6259_v42  ;;  %v4662_v31 = vld [vmem:[%s7649_s3 + $0x88] sm:$0xf]  ;;  %v6680_v34 = vld [vmem:[%s7649_s3 + $0x94] sm:$0xf0]  ;;  %v5063_v37 = vor.u32 %v6780_v27, %v5062_v23 }
 0x15b   : > { %3866 = vmatpush.bf16.msrb.mxu2 %v6387_v43  ;;  %v4790_v35 = vld [vmem:[%s7649_s3 + $0x188] sm:$0xf]  ;;  %v6712_v38 = vld [vmem:[%s7649_s3 + $0x194] sm:$0xf0]  ;;  %v3605_v21 = vadd.f32 %v3604_v41, %v3591_v5 }
 0x15c   : > { %3880 = vmatpush.bf16.msrb.mxu3 %v6515_v45  ;;  %3839 = vmatmul.bf16.vlgmr.msrb.gmra.mxu0 %v7995_v48  ;;  %v4918_v39 = vld [vmem:[%s7649_s3 + $0x288] sm:$0xf]  ;;  %v6744_v40 = vld [vmem:[%s7649_s3 + $0x294] sm:$0xf0]  ;;  %v3616_v42 = vpop.f32.mrf.mxu0  ;;  %v4663_v45 = vor.u32 %v6680_v34, %v4662_v31 }
 0x15d   : > { %3887 = vmatpush.bf16.msra.mxu0 %v4711_v58  ;;  %3853 = vmatmul.bf16.vlgmr.msrb.gmra.mxu1 %v8002_v57  ;;  %v5046_v43 = vld [vmem:[%s7649_s3 + $0x388] sm:$0xf]  ;;  %v6776_v44 = vld [vmem:[%s7649_s3 + $0x394] sm:$0xf0]  ;;  %v3617_v29 = vadd.f32 %v3616_v42, %v8273_v0  ;;  %v3630_v58 = vpop.f32.mrf.mxu1 }
 0x15e   : > { %3901 = vmatpush.bf16.msra.mxu1 %v4839_v46  ;;  %3867 = vmatmul.bf16.vlgmr.msrb.gmra.mxu2 %v8000_v54  ;;  %v4791_v46 = vor.u32 %v6712_v38, %v4790_v35  ;;  %v4646_v50 = vld [vmem:[%s7649_s3 + $0x68] sm:$0xf]  ;;  %v6676_v53 = vld [vmem:[%s7649_s3 + $0x74] sm:$0xf0] }
 0x15f   : > { %3915 = vmatpush.bf16.msra.mxu2 %v4967_v49  ;;  %3881 = vmatmul.bf16.vlgmr.msrb.gmra.mxu3 %v8006_v62  ;;  %v4919_v49 = vor.u32 %v6744_v40, %v4918_v39  ;;  %v4774_v61 = vld [vmem:[%s7649_s3 + $0x168] sm:$0xf]  ;;  %v3631_v2 = vadd.f32 %v3630_v58, %v3617_v29  ;;  %v6708_v0 = vld [vmem:[%s7649_s3 + $0x174] sm:$0xf0]  ;;  %v4647_v25 = vor.u32 %v6676_v53, %v4646_v50 }
 0x160   : > { %3929 = vmatpush.bf16.msra.mxu3 %v5095_v1  ;;  %v5047_v1 = vor.u32 %v6776_v44, %v5046_v43  ;;  %v4902_v3 = vld [vmem:[%s7649_s3 + $0x268] sm:$0xf]  ;;  %v6740_v4 = vld [vmem:[%s7649_s3 + $0x274] sm:$0xf0] }
 0x161   : > { %3888 = vmatpush.bf16.msra.mxu0 %v4695_v11  ;;  %v5030_v7 = vld [vmem:[%s7649_s3 + $0x368] sm:$0xf]  ;;  %v6772_v32 = vld [vmem:[%s7649_s3 + $0x374] sm:$0xf0]  ;;  %v4775_v11 = vor.u32 %v6708_v0, %v4774_v61 }
 0x162   : > { %3902 = vmatpush.bf16.msra.mxu1 %v4823_v12  ;;  %v4630_v9 = vld [vmem:[%s7649_s3 + $0x48] sm:$0xf]  ;;  %v4903_v12 = vor.u32 %v6740_v4, %v4902_v3  ;;  %v6704_v14 = vld [vmem:[%s7649_s3 + $0x154] sm:$0xf0]  ;;  %v5031_v15 = vor.u32 %v6772_v32, %v5030_v7  ;;  %v3658_v27 = vpop.f32.mrf.mxu3 }
 0x163   : > { %3916 = vmatpush.bf16.msra.mxu2 %v4951_v13  ;;  %v6672_v13 = vld [vmem:[%s7649_s3 + $0x54] sm:$0xf0]  ;;  %v4758_v20 = vld [vmem:[%s7649_s3 + $0x148] sm:$0xf] }
 0x164   : > { %3930 = vmatpush.bf16.msra.mxu3 %v5079_v16  ;;  %v3644_v16 = vpop.f32.mrf.mxu2  ;;  %v4886_v18 = vld [vmem:[%s7649_s3 + $0x248] sm:$0xf]  ;;  %v6736_v19 = vld [vmem:[%s7649_s3 + $0x254] sm:$0xf0]  ;;  %v3618_v23 = vpop.f32.mrf.mxu0 }
 0x165   : > { %3889 = vmatpush.bf16.msra.mxu0 %v4679_v28  ;;  %v3645_v22 = vadd.f32 %v3644_v16, %v3631_v2  ;;  %v5014_v28 = vld [vmem:[%s7649_s3 + $0x348] sm:$0xf]  ;;  %v6768_v24 = vld [vmem:[%s7649_s3 + $0x354] sm:$0xf0]  ;;  %v3619_v31 = vadd.f32 %v3618_v23, %v3605_v21  ;;  %v4887_v35 = vor.u32 %v6736_v19, %v4886_v18  ;;  %v3632_v40 = vpop.f32.mrf.mxu1 }
 0x166   : > { %3903 = vmatpush.bf16.msra.mxu1 %v4807_v30  ;;  %v4631_v30 = vor.u32 %v6672_v13, %v4630_v9  ;;  %v4614_v36 = vld [vmem:[%s7649_s3 + $0x28] sm:$0xf]  ;;  %v5015_v39 = vor.u32 %v6768_v24, %v5014_v28  ;;  %v6700_v41 = vld [vmem:[%s7649_s3 + $0x134] sm:$0xf0] }
 0x167   : > { %3917 = vmatpush.bf16.msra.mxu2 %v4935_v6  ;;  %v4759_v6 = vor.u32 %v6704_v14, %v4758_v20  ;;  %v8349_v34 = vadd.f32 %v3658_v27, %v3645_v22  ;;  %v4742_v38 = vld [vmem:[%s7649_s3 + $0x128] sm:$0xf]  ;;  %v6732_v43 = vld [vmem:[%s7649_s3 + $0x234] sm:$0xf0] }
 0x168   : > { %3931 = vmatpush.bf16.msra.mxu3 %v5063_v37  ;;  %v6668_v37 = vld [vmem:[%s7649_s3 + $0x34] sm:$0xf0]  ;;  %v4870_v42 = vld [vmem:[%s7649_s3 + $0x228] sm:$0xf] }
 0x169   : > { %3890 = vmatpush.bf16.msra.mxu0 %v4663_v45  ;;  %v4998_v44 = vld [vmem:[%s7649_s3 + $0x328] sm:$0xf]  ;;  %v6764_v29 = vld [vmem:[%s7649_s3 + $0x334] sm:$0xf0]  ;;  %v4615_v45 = vor.u32 %v6668_v37, %v4614_v36  ;;  %v4871_v50 = vor.u32 %v6732_v43, %v4870_v42 }
 0x16a   : > { %3904 = vmatpush.bf16.msra.mxu1 %v4791_v46  ;;  %v4598_v58 = vld [vmem:[%s7649_s3 + $0x8] sm:$0xf]  ;;  %v6664_v8 = vld [vmem:[%s7649_s3 + $0x14] sm:$0xf0]  ;;  %v3633_v46 = vadd.f32 %v3632_v40, %v3619_v31  ;;  %v4999_v2 = vor.u32 %v6764_v29, %v4998_v44  ;;  %v3660_v32 = vpop.f32.mrf.mxu3 }
 0x16b   : > { %3918 = vmatpush.bf16.msra.mxu2 %v4919_v49  ;;  %v4743_v49 = vor.u32 %v6700_v41, %v4742_v38  ;;  %v4726_v53 = vld [vmem:[%s7649_s3 + $0x108] sm:$0xf]  ;;  %v6696_v61 = vld [vmem:[%s7649_s3 + $0x114] sm:$0xf0] }
 0x16c   : > { %3932 = vmatpush.bf16.msra.mxu3 %v5047_v1  ;;  %v4854_v1 = vld [vmem:[%s7649_s3 + $0x208] sm:$0xf]  ;;  %v3646_v0 = vpop.f32.mrf.mxu2  ;;  %v6728_v3 = vld [vmem:[%s7649_s3 + $0x214] sm:$0xf0]  ;;  %v4727_v16 = vor.u32 %v6696_v61, %v4726_v53 }
 0x16d   : > { %3891 = vmatpush.bf16.msra.mxu0 %v4647_v25  ;;  %v4982_v4 = vld [vmem:[%s7649_s3 + $0x308] sm:$0xf]  ;;  %v6760_v5 = vld [vmem:[%s7649_s3 + $0x314] sm:$0xf0]  ;;  %v3647_v7 = vadd.f32 %v3646_v0, %v3633_v46  ;;  %v4855_v18 = vor.u32 %v6728_v3, %v4854_v1 }
 0x16e   : > { %3905 = vmatpush.bf16.msra.mxu1 %v4775_v11  ;;  %v5222_v25 = vld [vmem:[%s7649_s3 + $0x4e8] sm:$0xf]  ;;  %v6820_v9 = vld [vmem:[%s7649_s3 + $0x4f4] sm:$0xf0]  ;;  %v4983_v22 = vor.u32 %v6760_v5, %v4982_v4 }
 0x16f   : > { %3919 = vmatpush.bf16.msra.mxu2 %v4903_v12  ;;  %v5350_v11 = vld [vmem:[%s7649_s3 + $0x5e8] sm:$0xf]  ;;  %v4599_v12 = vor.u32 %v6664_v8, %v4598_v58  ;;  %v6852_v13 = vld [vmem:[%s7649_s3 + $0x5f4] sm:$0xf0]  ;;  %v5223_v23 = vor.u32 %v6820_v9, %v5222_v25 }
 0x170   : > { %3933 = vmatpush.bf16.msra.mxu3 %v5031_v15  ;;  %v5478_v20 = vld [vmem:[%s7649_s3 + $0x6e8] sm:$0xf]  ;;  %v6884_v14 = vld [vmem:[%s7649_s3 + $0x6f4] sm:$0xf0]  ;;  %v8373_v15 = vadd.f32 %v3660_v32, %v3647_v7  ;;  %v5351_v27 = vor.u32 %v6852_v13, %v5350_v11 }
 0x171   : > { %3892 = vmatpush.bf16.msra.mxu0 %v4631_v30  ;;  %v5606_v19 = vld [vmem:[%s7649_s3 + $0x7e8] sm:$0xf]  ;;  %v6916_v21 = vld [vmem:[%s7649_s3 + $0x7f4] sm:$0xf0]  ;;  %v5479_v28 = vor.u32 %v6884_v14, %v5478_v20 }
 0x172   : > { %3906 = vmatpush.bf16.msra.mxu1 %v4759_v6  ;;  %v5206_v24 = vld [vmem:[%s7649_s3 + $0x4c8] sm:$0xf]  ;;  %v6816_v30 = vld [vmem:[%s7649_s3 + $0x4d4] sm:$0xf0]  ;;  %v5607_v31 = vor.u32 %v6916_v21, %v5606_v19 }
 0x173   : > { %3920 = vmatpush.bf16.msra.mxu2 %v4887_v35  ;;  %v5334_v6 = vld [vmem:[%s7649_s3 + $0x5c8] sm:$0xf]  ;;  %v6848_v35 = vld [vmem:[%s7649_s3 + $0x5d4] sm:$0xf0]  ;;  %v5207_v40 = vor.u32 %v6816_v30, %v5206_v24 }
 0x174   : > { %3934 = vmatpush.bf16.msra.mxu3 %v5015_v39  ;;  %v5462_v36 = vld [vmem:[%s7649_s3 + $0x6c8] sm:$0xf]  ;;  %v6880_v37 = vld [vmem:[%s7649_s3 + $0x6d4] sm:$0xf0]  ;;  %v5335_v41 = vor.u32 %v6848_v35, %v5334_v6 }
 0x175   : > { %3893 = vmatpush.bf16.msra.mxu0 %v4615_v45  ;;  %v5590_v38 = vld [vmem:[%s7649_s3 + $0x7c8] sm:$0xf]  ;;  %v6912_v39 = vld [vmem:[%s7649_s3 + $0x7d4] sm:$0xf0]  ;;  %v5463_v42 = vor.u32 %v6880_v37, %v5462_v36 }
 0x176   : > { %3907 = vmatpush.bf16.msra.mxu1 %v4743_v49  ;;  %v5190_v43 = vld [vmem:[%s7649_s3 + $0x4a8] sm:$0xf]  ;;  %v6812_v44 = vld [vmem:[%s7649_s3 + $0x4b4] sm:$0xf0]  ;;  %v5591_v45 = vor.u32 %v6912_v39, %v5590_v38 }
 0x177   : > { %3921 = vmatpush.bf16.msra.mxu2 %v4871_v50  ;;  %v5318_v29 = vld [vmem:[%s7649_s3 + $0x5a8] sm:$0xf]  ;;  %v6844_v58 = vld [vmem:[%s7649_s3 + $0x5b4] sm:$0xf0]  ;;  %v5191_v53 = vor.u32 %v6812_v44, %v5190_v43 }
 0x178   : > { %3935 = vmatpush.bf16.msra.mxu3 %v4999_v2  ;;  %v5446_v8 = vld [vmem:[%s7649_s3 + $0x6a8] sm:$0xf]  ;;  %v6876_v46 = vld [vmem:[%s7649_s3 + $0x6b4] sm:$0xf0]  ;;  %v5319_v61 = vor.u32 %v6844_v58, %v5318_v29 }
 0x179   : > { %3894 = vmatpush.bf16.msra.mxu0 %v4599_v12  ;;  %v5574_v49 = vld [vmem:[%s7649_s3 + $0x7a8] sm:$0xf]  ;;  %v6908_v50 = vld [vmem:[%s7649_s3 + $0x7b4] sm:$0xf0]  ;;  %v5447_v1 = vor.u32 %v6876_v46, %v5446_v8  ;;  %v3672_v11 = vpop.f32.mrf.mxu0 }
 0x17a   : > { %3908 = vmatpush.bf16.msra.mxu1 %v4727_v16  ;;  %v5174_v2 = vld [vmem:[%s7649_s3 + $0x488] sm:$0xf]  ;;  %v6808_v0 = vld [vmem:[%s7649_s3 + $0x494] sm:$0xf0]  ;;  %v5575_v4 = vor.u32 %v6908_v50, %v5574_v49  ;;  %v3686_v13 = vpop.f32.mrf.mxu1 }
 0x17b   : > { %3922 = vmatpush.bf16.msra.mxu2 %v4855_v18  ;;  %v5302_v3 = vld [vmem:[%s7649_s3 + $0x588] sm:$0xf]  ;;  %v6840_v5 = vld [vmem:[%s7649_s3 + $0x594] sm:$0xf0]  ;;  %v5175_v12 = vor.u32 %v6808_v0, %v5174_v2  ;;  %v3687_v21 = vadd.f32 %v3686_v13, %v3672_v11 }
 0x17c   : > { %3936 = vmatpush.bf16.msra.mxu3 %v4983_v22  ;;  %3895 = vmatmul.bf16.vlgmr.msra.gmra.mxu0 %v7745_v10  ;;  %v5430_v7 = vld [vmem:[%s7649_s3 + $0x688] sm:$0xf]  ;;  %v6872_v32 = vld [vmem:[%s7649_s3 + $0x694] sm:$0xf0]  ;;  %v5303_v20 = vor.u32 %v6840_v5, %v5302_v3 }
 0x17d   : > { %3943 = vmatpush.bf16.msrb.mxu0 %v5223_v23  ;;  %3909 = vmatmul.bf16.vlgmr.msra.gmra.mxu1 %v7761_v26  ;;  %v5558_v25 = vld [vmem:[%s7649_s3 + $0x788] sm:$0xf]  ;;  %v6904_v9 = vld [vmem:[%s7649_s3 + $0x794] sm:$0xf0]  ;;  %v5431_v14 = vor.u32 %v6872_v32, %v5430_v7 }
 0x17e   : > { %3957 = vmatpush.bf16.msrb.mxu1 %v5351_v27  ;;  %3923 = vmatmul.bf16.vlgmr.msra.gmra.mxu2 %v7751_v17  ;;  %v5158_v16 = vld [vmem:[%s7649_s3 + $0x468] sm:$0xf]  ;;  %v6804_v18 = vld [vmem:[%s7649_s3 + $0x474] sm:$0xf0]  ;;  %v5559_v22 = vor.u32 %v6904_v9, %v5558_v25 }
 0x17f   : > { %3971 = vmatpush.bf16.msrb.mxu2 %v5479_v28  ;;  %3937 = vmatmul.bf16.vlgmr.msra.gmra.mxu3 %v7767_v33  ;;  %v5286_v19 = vld [vmem:[%s7649_s3 + $0x568] sm:$0xf]  ;;  %v6836_v23 = vld [vmem:[%s7649_s3 + $0x574] sm:$0xf0]  ;;  %v5159_v6 = vor.u32 %v6804_v18, %v5158_v16 }
 0x180   : > { %3985 = vmatpush.bf16.msrb.mxu3 %v5607_v31  ;;  %v5414_v27 = vld [vmem:[%s7649_s3 + $0x668] sm:$0xf]  ;;  %v6868_v28 = vld [vmem:[%s7649_s3 + $0x674] sm:$0xf0]  ;;  %v5287_v35 = vor.u32 %v6836_v23, %v5286_v19 }
 0x181   : > { %3944 = vmatpush.bf16.msrb.mxu0 %v5207_v40  ;;  %v5542_v24 = vld [vmem:[%s7649_s3 + $0x768] sm:$0xf]  ;;  %v6900_v30 = vld [vmem:[%s7649_s3 + $0x774] sm:$0xf0]  ;;  %v5415_v36 = vor.u32 %v6868_v28, %v5414_v27  ;;  %v3700_v43 = vpop.f32.mrf.mxu2  ;;  %v3674_v49 = vpop.f32.mrf.mxu0 }
 0x182   : > { %3958 = vmatpush.bf16.msrb.mxu1 %v5335_v41  ;;  %v5142_v31 = vld [vmem:[%s7649_s3 + $0x448] sm:$0xf]  ;;  %v6800_v37 = vld [vmem:[%s7649_s3 + $0x454] sm:$0xf0]  ;;  %v5543_v40 = vor.u32 %v6900_v30, %v5542_v24  ;;  %v3714_v58 = vpop.f32.mrf.mxu3  ;;  %v3688_v50 = vpop.f32.mrf.mxu1 }
 0x183   : > { %3972 = vmatpush.bf16.msrb.mxu2 %v5463_v42  ;;  %v5270_v38 = vld [vmem:[%s7649_s3 + $0x548] sm:$0xf]  ;;  %v6832_v39 = vld [vmem:[%s7649_s3 + $0x554] sm:$0xf0]  ;;  %v5143_v8 = vor.u32 %v6800_v37, %v5142_v31  ;;  %v3689_v3 = vadd.f32 %v3688_v50, %v3674_v49 }
 0x184   : > { %3986 = vmatpush.bf16.msrb.mxu3 %v5591_v45  ;;  %v5398_v41 = vld [vmem:[%s7649_s3 + $0x648] sm:$0xf]  ;;  %v6864_v42 = vld [vmem:[%s7649_s3 + $0x654] sm:$0xf0]  ;;  %v3701_v45 = vadd.f32 %v3700_v43, %v3687_v21  ;;  %v5271_v46 = vor.u32 %v6832_v39, %v5270_v38 }
 0x185   : > { %3945 = vmatpush.bf16.msrb.mxu0 %v5191_v53  ;;  %v5526_v44 = vld [vmem:[%s7649_s3 + $0x748] sm:$0xf]  ;;  %v6896_v29 = vld [vmem:[%s7649_s3 + $0x754] sm:$0xf0]  ;;  %v5399_v53 = vor.u32 %v6864_v42, %v5398_v41 }
 0x186   : > { %3959 = vmatpush.bf16.msrb.mxu1 %v5319_v61  ;;  %v5126_v61 = vld [vmem:[%s7649_s3 + $0x428] sm:$0xf]  ;;  %v8424_v0 = vadd.f32 %v3714_v58, %v3701_v45  ;;  %v6828_v5 = vld [vmem:[%s7649_s3 + $0x534] sm:$0xf0] }
 0x187   : > { %3973 = vmatpush.bf16.msrb.mxu2 %v5447_v1  ;;  %v6796_v1 = vld [vmem:[%s7649_s3 + $0x434] sm:$0xf0]  ;;  %v5254_v2 = vld [vmem:[%s7649_s3 + $0x528] sm:$0xf] }
 0x188   : > { %3987 = vmatpush.bf16.msrb.mxu3 %v5575_v4  ;;  %v5527_v4 = vor.u32 %v6896_v29, %v5526_v44  ;;  %v5382_v7 = vld [vmem:[%s7649_s3 + $0x628] sm:$0xf]  ;;  %v6860_v32 = vld [vmem:[%s7649_s3 + $0x634] sm:$0xf0]  ;;  %v5127_v11 = vor.u32 %v6796_v1, %v5126_v61 }
 0x189   : > { %3946 = vmatpush.bf16.msrb.mxu0 %v5175_v12  ;;  %v5510_v25 = vld [vmem:[%s7649_s3 + $0x728] sm:$0xf]  ;;  %v6892_v9 = vld [vmem:[%s7649_s3 + $0x734] sm:$0xf0]  ;;  %v3702_v28 = vpop.f32.mrf.mxu2 }
 0x18a   : > { %3960 = vmatpush.bf16.msrb.mxu1 %v5303_v20  ;;  %v5110_v12 = vld [vmem:[%s7649_s3 + $0x408] sm:$0xf]  ;;  %v6792_v13 = vld [vmem:[%s7649_s3 + $0x414] sm:$0xf0]  ;;  %v5255_v20 = vor.u32 %v6828_v5, %v5254_v2  ;;  %v5511_v21 = vor.u32 %v6892_v9, %v5510_v25  ;;  %v3703_v31 = vadd.f32 %v3702_v28, %v3689_v3  ;;  %v3716_v39 = vpop.f32.mrf.mxu3 }
 0x18b   : > { %3974 = vmatpush.bf16.msrb.mxu2 %v5431_v14  ;;  %v5383_v14 = vor.u32 %v6860_v32, %v5382_v7  ;;  %v5238_v16 = vld [vmem:[%s7649_s3 + $0x508] sm:$0xf]  ;;  %v6824_v18 = vld [vmem:[%s7649_s3 + $0x514] sm:$0xf0] }
 0x18c   : > { %3988 = vmatpush.bf16.msrb.mxu3 %v5559_v22  ;;  %v5366_v19 = vld [vmem:[%s7649_s3 + $0x608] sm:$0xf]  ;;  %v6856_v22 = vld [vmem:[%s7649_s3 + $0x614] sm:$0xf0]  ;;  %v8447_v44 = vadd.f32 %v3716_v39, %v3703_v31 }
 0x18d   : > { %3947 = vmatpush.bf16.msrb.mxu0 %v5159_v6  ;;  %v5494_v23 = vld [vmem:[%s7649_s3 + $0x708] sm:$0xf]  ;;  %v6888_v27 = vld [vmem:[%s7649_s3 + $0x714] sm:$0xf0]  ;;  %v5367_v41 = vor.u32 %v6856_v22, %v5366_v19 }
 0x18e   : > { %3961 = vmatpush.bf16.msrb.mxu1 %v5287_v35  ;;  %v5734_v24 = vld [vmem:[%s7649_s3 + $0x8e8] sm:$0xf]  ;;  %v6948_v30 = vld [vmem:[%s7649_s3 + $0x8f4] sm:$0xf0]  ;;  %v5111_v35 = vor.u32 %v6792_v13, %v5110_v12  ;;  %v5495_v29 = vor.u32 %v6888_v27, %v5494_v23 }
 0x18f   : > { %3975 = vmatpush.bf16.msrb.mxu2 %v5415_v36  ;;  %v5862_v6 = vld [vmem:[%s7649_s3 + $0x9e8] sm:$0xf]  ;;  %v6980_v36 = vld [vmem:[%s7649_s3 + $0x9f4] sm:$0xf0]  ;;  %v5735_v45 = vor.u32 %v6948_v30, %v5734_v24 }
 0x190   : > { %3989 = vmatpush.bf16.msrb.mxu3 %v5543_v40  ;;  %v5990_v37 = vld [vmem:[%s7649_s3 + $0xae8] sm:$0xf]  ;;  %v7012_v38 = vld [vmem:[%s7649_s3 + $0xaf4] sm:$0xf0]  ;;  %v5239_v40 = vor.u32 %v6824_v18, %v5238_v16  ;;  %v5863_v58 = vor.u32 %v6980_v36, %v5862_v6 }
 0x191   : > { %3948 = vmatpush.bf16.msrb.mxu0 %v5143_v8  ;;  %v6118_v42 = vld [vmem:[%s7649_s3 + $0xbe8] sm:$0xf]  ;;  %v7044_v43 = vld [vmem:[%s7649_s3 + $0xbf4] sm:$0xf0]  ;;  %v5991_v8 = vor.u32 %v7012_v38, %v5990_v37 }
 0x192   : > { %3962 = vmatpush.bf16.msrb.mxu1 %v5271_v46  ;;  %v5718_v46 = vld [vmem:[%s7649_s3 + $0x8c8] sm:$0xf]  ;;  %v6944_v49 = vld [vmem:[%s7649_s3 + $0x8d4] sm:$0xf0] }
 0x193   : > { %3976 = vmatpush.bf16.msrb.mxu2 %v5399_v53  ;;  %v5846_v50 = vld [vmem:[%s7649_s3 + $0x9c8] sm:$0xf]  ;;  %v6119_v53 = vor.u32 %v7044_v43, %v6118_v42  ;;  %v6976_v61 = vld [vmem:[%s7649_s3 + $0x9d4] sm:$0xf0]  ;;  %v5719_v5 = vor.u32 %v6944_v49, %v5718_v46 }
 0x194   : > { %3990 = vmatpush.bf16.msrb.mxu3 %v5527_v4  ;;  %v5974_v1 = vld [vmem:[%s7649_s3 + $0xac8] sm:$0xf]  ;;  %v7008_v2 = vld [vmem:[%s7649_s3 + $0xad4] sm:$0xf0]  ;;  %v5847_v7 = vor.u32 %v6976_v61, %v5846_v50 }
 0x195   : > { %3949 = vmatpush.bf16.msrb.mxu0 %v5127_v11  ;;  %v6102_v3 = vld [vmem:[%s7649_s3 + $0xbc8] sm:$0xf]  ;;  %v7040_v4 = vld [vmem:[%s7649_s3 + $0xbd4] sm:$0xf0]  ;;  %v5975_v32 = vor.u32 %v7008_v2, %v5974_v1 }
 0x196   : > { %3963 = vmatpush.bf16.msrb.mxu1 %v5255_v20  ;;  %v5702_v25 = vld [vmem:[%s7649_s3 + $0x8a8] sm:$0xf]  ;;  %v6940_v9 = vld [vmem:[%s7649_s3 + $0x8b4] sm:$0xf0]  ;;  %v6103_v12 = vor.u32 %v7040_v4, %v6102_v3 }
 0x197   : > { %3977 = vmatpush.bf16.msrb.mxu2 %v5383_v14  ;;  %v5830_v11 = vld [vmem:[%s7649_s3 + $0x9a8] sm:$0xf]  ;;  %v6972_v13 = vld [vmem:[%s7649_s3 + $0x9b4] sm:$0xf0]  ;;  %v5703_v19 = vor.u32 %v6940_v9, %v5702_v25 }
 0x198   : > { %3991 = vmatpush.bf16.msrb.mxu3 %v5511_v21  ;;  %v5958_v20 = vld [vmem:[%s7649_s3 + $0xaa8] sm:$0xf]  ;;  %v7004_v14 = vld [vmem:[%s7649_s3 + $0xab4] sm:$0xf0]  ;;  %v5831_v21 = vor.u32 %v6972_v13, %v5830_v11 }
 0x199   : > { %3950 = vmatpush.bf16.msrb.mxu0 %v5111_v35  ;;  %v6086_v16 = vld [vmem:[%s7649_s3 + $0xba8] sm:$0xf]  ;;  %v7036_v18 = vld [vmem:[%s7649_s3 + $0xbb4] sm:$0xf0]  ;;  %v5959_v22 = vor.u32 %v7004_v14, %v5958_v20  ;;  %v3728_v35 = vpop.f32.mrf.mxu0 }
 0x19a   : > { %3964 = vmatpush.bf16.msrb.mxu1 %v5239_v40  ;;  %v5686_v23 = vld [vmem:[%s7649_s3 + $0x888] sm:$0xf]  ;;  %v6936_v27 = vld [vmem:[%s7649_s3 + $0x894] sm:$0xf0]  ;;  %v6087_v24 = vor.u32 %v7036_v18, %v6086_v16  ;;  %v3729_v38 = vadd.f32 %v3728_v35, %v8424_v0  ;;  %v3742_v40 = vpop.f32.mrf.mxu1 }
 0x19b   : > { %3978 = vmatpush.bf16.msrb.mxu2 %v5367_v41  ;;  %v5814_v28 = vld [vmem:[%s7649_s3 + $0x988] sm:$0xf]  ;;  %v6968_v30 = vld [vmem:[%s7649_s3 + $0x994] sm:$0xf0]  ;;  %v5687_v39 = vor.u32 %v6936_v27, %v5686_v23 }
 0x19c   : > { %3992 = vmatpush.bf16.msrb.mxu3 %v5495_v29  ;;  %3951 = vmatmul.bf16.vlgmr.msrb.gmra.mxu0 %v7827_v55  ;;  %v5942_v6 = vld [vmem:[%s7649_s3 + $0xa88] sm:$0xf]  ;;  %v7000_v31 = vld [vmem:[%s7649_s3 + $0xa94] sm:$0xf0]  ;;  %v5815_v41 = vor.u32 %v6968_v30, %v5814_v28 }
 0x19d   : > { %3999 = vmatpush.bf16.msra.mxu0 %v5735_v45  ;;  %3965 = vmatmul.bf16.vlgmr.msrb.gmra.mxu1 %v7834_v60  ;;  %v6070_v36 = vld [vmem:[%s7649_s3 + $0xb88] sm:$0xf]  ;;  %v7032_v37 = vld [vmem:[%s7649_s3 + $0xb94] sm:$0xf0]  ;;  %v5943_v42 = vor.u32 %v7000_v31, %v5942_v6 }
 0x19e   : > { %4013 = vmatpush.bf16.msra.mxu1 %v5863_v58  ;;  %3979 = vmatmul.bf16.vlgmr.msrb.gmra.mxu2 %v7832_v59  ;;  %v5670_v43 = vld [vmem:[%s7649_s3 + $0x868] sm:$0xf]  ;;  %v6932_v29 = vld [vmem:[%s7649_s3 + $0x874] sm:$0xf0]  ;;  %v6071_v58 = vor.u32 %v7032_v37, %v6070_v36 }
 0x19f   : > { %4027 = vmatpush.bf16.msra.mxu2 %v5991_v8  ;;  %3993 = vmatmul.bf16.vlgmr.msrb.gmra.mxu3 %v7838_v63  ;;  %v5798_v45 = vld [vmem:[%s7649_s3 + $0x968] sm:$0xf]  ;;  %v3743_v8 = vadd.f32 %v3742_v40, %v3729_v38  ;;  %v6964_v46 = vld [vmem:[%s7649_s3 + $0x974] sm:$0xf0]  ;;  %v5671_v61 = vor.u32 %v6932_v29, %v5670_v43 }
 0x1a0   : > { %4041 = vmatpush.bf16.msra.mxu3 %v6119_v53  ;;  %v5926_v49 = vld [vmem:[%s7649_s3 + $0xa68] sm:$0xf]  ;;  %v6996_v0 = vld [vmem:[%s7649_s3 + $0xa74] sm:$0xf0]  ;;  %v5799_v1 = vor.u32 %v6964_v46, %v5798_v45 }
 0x1a1   : > { %4000 = vmatpush.bf16.msra.mxu0 %v5719_v5  ;;  %v6054_v50 = vld [vmem:[%s7649_s3 + $0xb68] sm:$0xf]  ;;  %v7028_v53 = vld [vmem:[%s7649_s3 + $0xb74] sm:$0xf0]  ;;  %v5927_v2 = vor.u32 %v6996_v0, %v5926_v49  ;;  %v3730_v13 = vpop.f32.mrf.mxu0 }
 0x1a2   : > { %4014 = vmatpush.bf16.msra.mxu1 %v5847_v7  ;;  %v5654_v3 = vld [vmem:[%s7649_s3 + $0x848] sm:$0xf]  ;;  %v6928_v4 = vld [vmem:[%s7649_s3 + $0x854] sm:$0xf0]  ;;  %v6055_v7 = vor.u32 %v7028_v53, %v6054_v50  ;;  %v3770_v20 = vpop.f32.mrf.mxu3  ;;  %v3731_v18 = vadd.f32 %v3730_v13, %v8447_v44 }
 0x1a3   : > { %4028 = vmatpush.bf16.msra.mxu2 %v5975_v32  ;;  %v5782_v5 = vld [vmem:[%s7649_s3 + $0x948] sm:$0xf]  ;;  %v3756_v32 = vpop.f32.mrf.mxu2  ;;  %v6960_v25 = vld [vmem:[%s7649_s3 + $0x954] sm:$0xf0] }
 0x1a4   : > { %4042 = vmatpush.bf16.msra.mxu3 %v6103_v12  ;;  %v5910_v9 = vld [vmem:[%s7649_s3 + $0xa48] sm:$0xf]  ;;  %v6992_v11 = vld [vmem:[%s7649_s3 + $0xa54] sm:$0xf0]  ;;  %v3757_v12 = vadd.f32 %v3756_v32, %v3743_v8  ;;  %v5783_v23 = vor.u32 %v6960_v25, %v5782_v5 }
 0x1a5   : > { %4001 = vmatpush.bf16.msra.mxu0 %v5703_v19  ;;  %v6038_v14 = vld [vmem:[%s7649_s3 + $0xb48] sm:$0xf]  ;;  %v7024_v16 = vld [vmem:[%s7649_s3 + $0xb54] sm:$0xf0]  ;;  %v5655_v19 = vor.u32 %v6928_v4, %v5654_v3  ;;  %v5911_v27 = vor.u32 %v6992_v11, %v5910_v9 }
 0x1a6   : > { %4015 = vmatpush.bf16.msra.mxu1 %v5831_v21  ;;  %v3744_v21 = vpop.f32.mrf.mxu1  ;;  %v5638_v28 = vld [vmem:[%s7649_s3 + $0x828] sm:$0xf]  ;;  %v6039_v6 = vor.u32 %v7024_v16, %v6038_v14  ;;  %v6956_v31 = vld [vmem:[%s7649_s3 + $0x934] sm:$0xf0] }
 0x1a7   : > { %4029 = vmatpush.bf16.msra.mxu2 %v5959_v22  ;;  %v8495_v22 = vadd.f32 %v3770_v20, %v3757_v12  ;;  %v5766_v30 = vld [vmem:[%s7649_s3 + $0x928] sm:$0xf]  ;;  %v3745_v44 = vadd.f32 %v3744_v21, %v3731_v18  ;;  %v6988_v36 = vld [vmem:[%s7649_s3 + $0xa34] sm:$0xf0] }
 0x1a8   : > { %4043 = vmatpush.bf16.msra.mxu3 %v6087_v24  ;;  %v6924_v24 = vld [vmem:[%s7649_s3 + $0x834] sm:$0xf0]  ;;  %v5894_v35 = vld [vmem:[%s7649_s3 + $0xa28] sm:$0xf] }
 0x1a9   : > { %4002 = vmatpush.bf16.msra.mxu0 %v5687_v39  ;;  %v6022_v37 = vld [vmem:[%s7649_s3 + $0xb28] sm:$0xf]  ;;  %v7020_v38 = vld [vmem:[%s7649_s3 + $0xb34] sm:$0xf0]  ;;  %v5639_v39 = vor.u32 %v6924_v24, %v5638_v28  ;;  %v5895_v43 = vor.u32 %v6988_v36, %v5894_v35 }
 0x1aa   : > { %4016 = vmatpush.bf16.msra.mxu1 %v5815_v41  ;;  %v5622_v40 = vld [vmem:[%s7649_s3 + $0x808] sm:$0xf]  ;;  %v6920_v41 = vld [vmem:[%s7649_s3 + $0x814] sm:$0xf0]  ;;  %v6023_v8 = vor.u32 %v7020_v38, %v6022_v37 }
 0x1ab   : > { %4030 = vmatpush.bf16.msra.mxu2 %v5943_v42  ;;  %v5767_v42 = vor.u32 %v6956_v31, %v5766_v30  ;;  %v5750_v29 = vld [vmem:[%s7649_s3 + $0x908] sm:$0xf]  ;;  %v6952_v45 = vld [vmem:[%s7649_s3 + $0x914] sm:$0xf0]  ;;  %v3758_v46 = vpop.f32.mrf.mxu2  ;;  %v5623_v4 = vor.u32 %v6920_v41, %v5622_v40 }
 0x1ac   : > { %4044 = vmatpush.bf16.msra.mxu3 %v6071_v58  ;;  %v5878_v58 = vld [vmem:[%s7649_s3 + $0xa08] sm:$0xf]  ;;  %v6984_v49 = vld [vmem:[%s7649_s3 + $0xa14] sm:$0xf0]  ;;  %v3759_v53 = vadd.f32 %v3758_v46, %v3745_v44  ;;  %v5751_v9 = vor.u32 %v6952_v45, %v5750_v29 }
 0x1ad   : > { %4003 = vmatpush.bf16.msra.mxu0 %v5671_v61  ;;  %v6006_v0 = vld [vmem:[%s7649_s3 + $0xb08] sm:$0xf]  ;;  %v7016_v50 = vld [vmem:[%s7649_s3 + $0xb14] sm:$0xf0]  ;;  %v3772_v61 = vpop.f32.mrf.mxu3  ;;  %v5879_v11 = vor.u32 %v6984_v49, %v5878_v58 }
 0x1ae   : > { %4017 = vmatpush.bf16.msra.mxu1 %v5799_v1  ;;  %v6246_v1 = vld [vmem:[%s7649_s3 + $0xce8] sm:$0xf]  ;;  %v7108_v5 = vld [vmem:[%s7649_s3 + $0xdf4] sm:$0xf0]  ;;  %v8519_v25 = vadd.f32 %v3772_v61, %v3759_v53  ;;  %v6007_v20 = vor.u32 %v7016_v50, %v6006_v0 }
 0x1af   : > { %4031 = vmatpush.bf16.msra.mxu2 %v5927_v2  ;;  %v7076_v2 = vld [vmem:[%s7649_s3 + $0xcf4] sm:$0xf0]  ;;  %v6374_v3 = vld [vmem:[%s7649_s3 + $0xde8] sm:$0xf] }
 0x1b0   : > { %4045 = vmatpush.bf16.msra.mxu3 %v6055_v7  ;;  %v6502_v7 = vld [vmem:[%s7649_s3 + $0xee8] sm:$0xf]  ;;  %v7140_v32 = vld [vmem:[%s7649_s3 + $0xef4] sm:$0xf0]  ;;  %v6247_v14 = vor.u32 %v7076_v2, %v6246_v1  ;;  %v6375_v16 = vor.u32 %v7108_v5, %v6374_v3 }
 0x1b1   : > { %4004 = vmatpush.bf16.msra.mxu0 %v5655_v19  ;;  %v6630_v12 = vld [vmem:[%s7649_s3 + $0xfe8] sm:$0xf]  ;;  %v7172_v13 = vld [vmem:[%s7649_s3 + $0xff4] sm:$0xf0]  ;;  %v6503_v18 = vor.u32 %v7140_v32, %v6502_v7 }
 0x1b2   : > { %4018 = vmatpush.bf16.msra.mxu1 %v5783_v23  ;;  %v6230_v19 = vld [vmem:[%s7649_s3 + $0xcc8] sm:$0xf]  ;;  %v7072_v21 = vld [vmem:[%s7649_s3 + $0xcd4] sm:$0xf0] }
 0x1b3   : > { %4032 = vmatpush.bf16.msra.mxu2 %v5911_v27  ;;  %v6358_v23 = vld [vmem:[%s7649_s3 + $0xdc8] sm:$0xf]  ;;  %v6631_v27 = vor.u32 %v7172_v13, %v6630_v12  ;;  %v7104_v28 = vld [vmem:[%s7649_s3 + $0xdd4] sm:$0xf0]  ;;  %v6231_v31 = vor.u32 %v7072_v21, %v6230_v19 }
 0x1b4   : > { %4046 = vmatpush.bf16.msra.mxu3 %v6039_v6  ;;  %v6486_v24 = vld [vmem:[%s7649_s3 + $0xec8] sm:$0xf]  ;;  %v7136_v30 = vld [vmem:[%s7649_s3 + $0xed4] sm:$0xf0]  ;;  %v6359_v35 = vor.u32 %v7104_v28, %v6358_v23 }
 0x1b5   : > { %4005 = vmatpush.bf16.msra.mxu0 %v5639_v39  ;;  %v6614_v6 = vld [vmem:[%s7649_s3 + $0xfc8] sm:$0xf]  ;;  %v7168_v44 = vld [vmem:[%s7649_s3 + $0xfd4] sm:$0xf0]  ;;  %v6487_v36 = vor.u32 %v7136_v30, %v6486_v24 }
 0x1b6   : > { %4019 = vmatpush.bf16.msra.mxu1 %v5767_v42  ;;  %v6214_v37 = vld [vmem:[%s7649_s3 + $0xca8] sm:$0xf]  ;;  %v7068_v38 = vld [vmem:[%s7649_s3 + $0xcb4] sm:$0xf0]  ;;  %v6615_v40 = vor.u32 %v7168_v44, %v6614_v6 }
 0x1b7   : > { %4033 = vmatpush.bf16.msra.mxu2 %v5895_v43  ;;  %v6342_v39 = vld [vmem:[%s7649_s3 + $0xda8] sm:$0xf]  ;;  %v7100_v41 = vld [vmem:[%s7649_s3 + $0xdb4] sm:$0xf0]  ;;  %v6215_v58 = vor.u32 %v7068_v38, %v6214_v37 }
 0x1b8   : > { %4047 = vmatpush.bf16.msra.mxu3 %v6023_v8  ;;  %v6470_v42 = vld [vmem:[%s7649_s3 + $0xea8] sm:$0xf]  ;;  %v7132_v43 = vld [vmem:[%s7649_s3 + $0xeb4] sm:$0xf0]  ;;  %v6343_v8 = vor.u32 %v7100_v41, %v6342_v39 }
 0x1b9   : > { %4006 = vmatpush.bf16.msra.mxu0 %v5623_v4  ;;  %v6598_v29 = vld [vmem:[%s7649_s3 + $0xfa8] sm:$0xf]  ;;  %v7164_v45 = vld [vmem:[%s7649_s3 + $0xfb4] sm:$0xf0]  ;;  %v6471_v46 = vor.u32 %v7132_v43, %v6470_v42  ;;  %v3784_v3 = vpop.f32.mrf.mxu0 }
 0x1ba   : > { %4020 = vmatpush.bf16.msra.mxu1 %v5751_v9  ;;  %v6198_v49 = vld [vmem:[%s7649_s3 + $0xc88] sm:$0xf]  ;;  %v7064_v0 = vld [vmem:[%s7649_s3 + $0xc94] sm:$0xf0]  ;;  %v6599_v53 = vor.u32 %v7164_v45, %v6598_v29  ;;  %v3785_v7 = vadd.f32 %v3784_v3, %v8495_v22  ;;  %v3798_v9 = vpop.f32.mrf.mxu1 }
 0x1bb   : > { %4034 = vmatpush.bf16.msra.mxu2 %v5879_v11  ;;  %v6326_v50 = vld [vmem:[%s7649_s3 + $0xd88] sm:$0xf]  ;;  %v7096_v61 = vld [vmem:[%s7649_s3 + $0xd94] sm:$0xf0]  ;;  %v6199_v32 = vor.u32 %v7064_v0, %v6198_v49 }
 0x1bc   : > { %4048 = vmatpush.bf16.msra.mxu3 %v6007_v20  ;;  %4007 = vmatmul.bf16.vlgmr.msra.gmra.mxu0 %v7911_v47  ;;  %v6454_v1 = vld [vmem:[%s7649_s3 + $0xe88] sm:$0xf]  ;;  %v7128_v2 = vld [vmem:[%s7649_s3 + $0xe94] sm:$0xf0]  ;;  %v6327_v11 = vor.u32 %v7096_v61, %v6326_v50 }
 0x1bd   : > { %4055 = vmatpush.bf16.msrb.mxu0 %v6247_v14  ;;  %4021 = vmatmul.bf16.vlgmr.msra.gmra.mxu1 %v7918_v52  ;;  %v6582_v4 = vld [vmem:[%s7649_s3 + $0xf88] sm:$0xf]  ;;  %v7160_v5 = vld [vmem:[%s7649_s3 + $0xf94] sm:$0xf0]  ;;  %v6455_v12 = vor.u32 %v7128_v2, %v6454_v1 }
 0x1be   : > { %4069 = vmatpush.bf16.msrb.mxu1 %v6375_v16  ;;  %4035 = vmatmul.bf16.vlgmr.msra.gmra.mxu2 %v7916_v51  ;;  %v6182_v13 = vld [vmem:[%s7649_s3 + $0xc68] sm:$0xf]  ;;  %v7060_v20 = vld [vmem:[%s7649_s3 + $0xc74] sm:$0xf0]  ;;  %v6583_v16 = vor.u32 %v7160_v5, %v6582_v4 }
 0x1bf   : > { %4083 = vmatpush.bf16.msrb.mxu2 %v6503_v18  ;;  %4049 = vmatmul.bf16.vlgmr.msra.gmra.mxu3 %v7922_v56  ;;  %v6310_v14 = vld [vmem:[%s7649_s3 + $0xd68] sm:$0xf]  ;;  %v3799_v18 = vadd.f32 %v3798_v9, %v3785_v7  ;;  %v7092_v19 = vld [vmem:[%s7649_s3 + $0xd74] sm:$0xf0]  ;;  %v6183_v28 = vor.u32 %v7060_v20, %v6182_v13 }
 0x1c0   : > { %4097 = vmatpush.bf16.msrb.mxu3 %v6631_v27  ;;  %v6438_v21 = vld [vmem:[%s7649_s3 + $0xe68] sm:$0xf]  ;;  %v7124_v22 = vld [vmem:[%s7649_s3 + $0xe74] sm:$0xf0]  ;;  %v6311_v24 = vor.u32 %v7092_v19, %v6310_v14 }
 0x1c1   : > { %4056 = vmatpush.bf16.msrb.mxu0 %v6231_v31  ;;  %v6566_v23 = vld [vmem:[%s7649_s3 + $0xf68] sm:$0xf]  ;;  %v7156_v27 = vld [vmem:[%s7649_s3 + $0xf74] sm:$0xf0]  ;;  %v6439_v30 = vor.u32 %v7124_v22, %v6438_v21  ;;  %v3786_v41 = vpop.f32.mrf.mxu0 }
 0x1c2   : > { %4070 = vmatpush.bf16.msrb.mxu1 %v6359_v35  ;;  %v6166_v6 = vld [vmem:[%s7649_s3 + $0xc48] sm:$0xf]  ;;  %v7056_v44 = vld [vmem:[%s7649_s3 + $0xc54] sm:$0xf0]  ;;  %v6567_v35 = vor.u32 %v7156_v27, %v6566_v23  ;;  %v3826_v42 = vpop.f32.mrf.mxu3  ;;  %v3787_v45 = vadd.f32 %v3786_v41, %v8519_v25  ;;  %v5096_v41 = vld [vmem:[%s7649_s3 + $0x3f8] sm:$0xf0] }
 0x1c3   : > { %4084 = vmatpush.bf16.msrb.mxu2 %v6487_v36  ;;  %v6294_v31 = vld [vmem:[%s7649_s3 + $0xd48] sm:$0xf]  ;;  %v3812_v36 = vpop.f32.mrf.mxu2  ;;  %v7088_v37 = vld [vmem:[%s7649_s3 + $0xd54] sm:$0xf0] }
 0x1c4   : > { %4098 = vmatpush.bf16.msrb.mxu3 %v6615_v40  ;;  %v6422_v38 = vld [vmem:[%s7649_s3 + $0xe48] sm:$0xf]  ;;  %v7120_v39 = vld [vmem:[%s7649_s3 + $0xe54] sm:$0xf0]  ;;  %v3813_v40 = vadd.f32 %v3812_v36, %v3799_v18  ;;  %v6295_v49 = vor.u32 %v7088_v37, %v6294_v31  ;;  %v4840_v31 = vld [vmem:[%s7649_s3 + $0x1f8] sm:$0xf0] }
 0x1c5   : > { %4057 = vmatpush.bf16.msrb.mxu0 %v6215_v58  ;;  %v6550_v43 = vld [vmem:[%s7649_s3 + $0xf48] sm:$0xf]  ;;  %v7152_v29 = vld [vmem:[%s7649_s3 + $0xf54] sm:$0xf0]  ;;  %v6167_v58 = vor.u32 %v7056_v44, %v6166_v6  ;;  %v6423_v0 = vor.u32 %v7120_v39, %v6422_v38  ;;  %v6722_v6 = vld [vmem:[%s7649_s3 + $0x1ec] sm:$0xf] }
 0x1c6   : > { %4071 = vmatpush.bf16.msrb.mxu1 %v6343_v8  ;;  %v3800_v8 = vpop.f32.mrf.mxu1  ;;  %v6150_v50 = vld [vmem:[%s7649_s3 + $0xc28] sm:$0xf]  ;;  %v6551_v1 = vor.u32 %v7152_v29, %v6550_v43  ;;  %v7084_v2 = vld [vmem:[%s7649_s3 + $0xd34] sm:$0xf0]  ;;  %v4968_v36 = vld [vmem:[%s7649_s3 + $0x2f8] sm:$0xf0]  ;;  %v4843_v29 = vor.u32 %v6722_v6, %v4840_v31 }
 0x1c7   : > { %4085 = vmatpush.bf16.msrb.mxu2 %v6471_v46  ;;  %v8569_v46 = vadd.f32 %v3826_v42, %v3813_v40  ;;  %v6278_v61 = vld [vmem:[%s7649_s3 + $0xd28] sm:$0xf]  ;;  %v3801_v25 = vadd.f32 %v3800_v8, %v3787_v45  ;;  %v7116_v4 = vld [vmem:[%s7649_s3 + $0xe34] sm:$0xf0]  ;;  %v6786_v40 = vld [vmem:[%s7649_s3 + $0x3ec] sm:$0xf] }
 0x1c8   : > { %4099 = vmatpush.bf16.msrb.mxu3 %v6599_v53  ;;  %v7052_v53 = vld [vmem:[%s7649_s3 + $0xc34] sm:$0xf0]  ;;  %v6406_v3 = vld [vmem:[%s7649_s3 + $0xe28] sm:$0xf]  ;;  %v4696_v8 = vld [vmem:[%s7649_s3 + $0xd8] sm:$0xf0] }
 0x1c9   : > { %4058 = vmatpush.bf16.msrb.mxu0 %v6199_v32  ;;  %v6534_v5 = vld [vmem:[%s7649_s3 + $0xf28] sm:$0xf]  ;;  %v7148_v7 = vld [vmem:[%s7649_s3 + $0xf34] sm:$0xf0]  ;;  %v6151_v32 = vor.u32 %v7052_v53, %v6150_v50  ;;  %v6407_v13 = vor.u32 %v7116_v4, %v6406_v3  ;;  %v4824_v50 = vld [vmem:[%s7649_s3 + $0x1d8] sm:$0xf0] }
 0x1ca   : > { %4072 = vmatpush.bf16.msrb.mxu1 %v6327_v11  ;;  %v6134_v9 = vld [vmem:[%s7649_s3 + $0xc08] sm:$0xf]  ;;  %v7048_v11 = vld [vmem:[%s7649_s3 + $0xc14] sm:$0xf0]  ;;  %v6535_v18 = vor.u32 %v7148_v7, %v6534_v5  ;;  %v6750_v53 = vld [vmem:[%s7649_s3 + $0x2cc] sm:$0xf] }
 0x1cb   : > { %4086 = vmatpush.bf16.msrb.mxu2 %v6455_v12  ;;  %v6279_v12 = vor.u32 %v7084_v2, %v6278_v61  ;;  %v6262_v20 = vld [vmem:[%s7649_s3 + $0xd08] sm:$0xf]  ;;  %v7080_v14 = vld [vmem:[%s7649_s3 + $0xd14] sm:$0xf0]  ;;  %v3814_v19 = vpop.f32.mrf.mxu2  ;;  %v6135_v44 = vor.u32 %v7048_v11, %v6134_v9  ;;  %v4952_v61 = vld [vmem:[%s7649_s3 + $0x2d8] sm:$0xf0] }
 0x1cc   : > { %4100 = vmatpush.bf16.msrb.mxu3 %v6583_v16  ;;  %v6390_v16 = vld [vmem:[%s7649_s3 + $0xe08] sm:$0xf]  ;;  %v7112_v21 = vld [vmem:[%s7649_s3 + $0xe14] sm:$0xf0]  ;;  %v3815_v27 = vadd.f32 %v3814_v19, %v3801_v25  ;;  %v6263_v38 = vor.u32 %v7080_v14, %v6262_v20  ;;  %v5080_v25 = vld [vmem:[%s7649_s3 + $0x3d8] sm:$0xf0]  ;;  %v4955_v4 = vor.u32 %v6750_v53, %v4952_v61 }
 0x1cd   : > { %4059 = vmatpush.bf16.msrb.mxu0 %v6183_v28  ;;  %v6518_v22 = vld [vmem:[%s7649_s3 + $0xf08] sm:$0xf]  ;;  %v7144_v23 = vld [vmem:[%s7649_s3 + $0xf14] sm:$0xf0]  ;;  %v3828_v28 = vpop.f32.mrf.mxu3  ;;  %v6391_v39 = vor.u32 %v7112_v21, %v6390_v16  ;;  %v6682_v5 = vld [vmem:[%s7649_s3 + $0xac] sm:$0xf] }
 0x1ce   : > { %4073 = vmatpush.bf16.msrb.mxu1 %v6311_v24  ;;  %v6690_v24 = vld [vmem:[%s7649_s3 + $0xec] sm:$0xf]  ;;  %v8593_v37 = vadd.f32 %v3828_v28, %v3815_v27  ;;  %v6519_v42 = vor.u32 %v7144_v23, %v6518_v22  ;;  %v4680_v7 = vld [vmem:[%s7649_s3 + $0xb8] sm:$0xf0] }
 0x1cf   : > { %4087 = vmatpush.bf16.msrb.mxu2 %v6439_v30  ;;  %v4712_v30 = vld [vmem:[%s7649_s3 + $0xf8] sm:$0xf0]  ;;  %v6778_v20 = vld [vmem:[%s7649_s3 + $0x3ac] sm:$0xf]  ;;  %v4683_v16 = vor.u32 %v6682_v5, %v4680_v7 }
 0x1d0   : > { %4101 = vmatpush.bf16.msrb.mxu3 %v6567_v35  ;;  %v6754_v35 = vld [vmem:[%s7649_s3 + $0x2ec] sm:$0xf]  ;;  %v4715_v43 = vor.u32 %v6690_v24, %v4712_v30  ;;  %v4808_v11 = vld [vmem:[%s7649_s3 + $0x1b8] sm:$0xf0] }
 0x1d1   : > { %4060 = vmatpush.bf16.msrb.mxu0 %v6167_v58  ;;  %v4971_v45 = vor.u32 %v6754_v35, %v4968_v36  ;;  %v6686_v58 = vld [vmem:[%s7649_s3 + $0xcc] sm:$0xf]  ;;  %v5064_v14 = vld [vmem:[%s7649_s3 + $0x3b8] sm:$0xf0] }
 0x1d2   : > { %4074 = vmatpush.bf16.msrb.mxu1 %v6295_v49  ;;  %v6718_v49 = vld [vmem:[%s7649_s3 + $0x1cc] sm:$0xf]  ;;  %v4699_v2 = vor.u32 %v6686_v58, %v4696_v8  ;;  %v4664_v22 = vld [vmem:[%s7649_s3 + $0x98] sm:$0xf0]  ;;  %v5067_v27 = vor.u32 %v6778_v20, %v5064_v14 }
 0x1d3   : > { %4088 = vmatpush.bf16.msrb.mxu2 %v6423_v0  ;;  %v5099_v0 = vor.u32 %v6786_v40, %v5096_v41  ;;  %v4827_v3 = vor.u32 %v6718_v49, %v4824_v50  ;;  %v6678_v21 = vld [vmem:[%s7649_s3 + $0x8c] sm:$0xf]  ;;  %v4792_v28 = vld [vmem:[%s7649_s3 + $0x198] sm:$0xf0] }
 0x1d4   : > { %4102 = vmatpush.bf16.msrb.mxu3 %v6551_v1  ;;  %v6782_v1 = vld [vmem:[%s7649_s3 + $0x3cc] sm:$0xf]  ;;  %v4920_v30 = vld [vmem:[%s7649_s3 + $0x298] sm:$0xf0]  ;;  %v4667_v36 = vor.u32 %v6678_v21, %v4664_v22 }
 0x1d5   : > { %4061 = vmatpush.bf16.msrb.mxu0 %v6151_v32  ;;  %v6714_v32 = vld [vmem:[%s7649_s3 + $0x1ac] sm:$0xf]  ;;  %v5083_v9 = vor.u32 %v6782_v1, %v5080_v25  ;;  %v5048_v31 = vld [vmem:[%s7649_s3 + $0x398] sm:$0xf0] }
 0x1d6   : > { %4075 = vmatpush.bf16.msrb.mxu1 %v6279_v12  ;;  %v6746_v12 = vld [vmem:[%s7649_s3 + $0x2ac] sm:$0xf]  ;;  %v4776_v58 = vld [vmem:[%s7649_s3 + $0x178] sm:$0xf0] }
 0x1d7   : > { %4089 = vmatpush.bf16.msrb.mxu2 %v6407_v13  ;;  %v4936_v13 = vld [vmem:[%s7649_s3 + $0x2b8] sm:$0xf0]  ;;  %v6710_v23 = vld [vmem:[%s7649_s3 + $0x18c] sm:$0xf] }
 0x1d8   : > { %4103 = vmatpush.bf16.msrb.mxu3 %v6535_v18  ;;  %v4811_v18 = vor.u32 %v6714_v32, %v4808_v11  ;;  %v4939_v19 = vor.u32 %v6746_v12, %v4936_v13  ;;  %v6742_v24 = vld [vmem:[%s7649_s3 + $0x28c] sm:$0xf]  ;;  %v4632_v25 = vld [vmem:[%s7649_s3 + $0x58] sm:$0xf0] }
 0x1d9   : > { %4062 = vmatpush.bf16.msrb.mxu0 %v6135_v44  ;;  %v3840_v6 = vpop.f32.mrf.mxu0  ;;  %v6774_v44 = vld [vmem:[%s7649_s3 + $0x38c] sm:$0xf]  ;;  %v4923_v40 = vor.u32 %v6742_v24, %v4920_v30  ;;  %v4760_v5 = vld [vmem:[%s7649_s3 + $0x158] sm:$0xf0] }
 0x1da   : > { %4076 = vmatpush.bf16.msrb.mxu1 %v6263_v38  ;;  %v3841_v35 = vadd.f32 %v3840_v6, %v8569_v46  ;;  %v3854_v38 = vpop.f32.mrf.mxu1  ;;  %v6674_v41 = vld [vmem:[%s7649_s3 + $0x6c] sm:$0xf]  ;;  %v4904_v46 = vld [vmem:[%s7649_s3 + $0x278] sm:$0xf0] }
 0x1db   : > { %4090 = vmatpush.bf16.msrb.mxu2 %v6391_v39  ;;  %v4795_v39 = vor.u32 %v6710_v23, %v4792_v28  ;;  %v6738_v8 = vld [vmem:[%s7649_s3 + $0x26c] sm:$0xf]  ;;  %v4888_v32 = vld [vmem:[%s7649_s3 + $0x258] sm:$0xf0] }
 0x1dc   : > { %4104 = vmatpush.bf16.msrb.mxu3 %v6519_v42  ;;  %4063 = vmatmul.bf16.vlgmr.msrb.gmra.mxu0 %v7995_v48  ;;  %v4648_v42 = vld [vmem:[%s7649_s3 + $0x78] sm:$0xf0]  ;;  %v6770_v49 = vld [vmem:[%s7649_s3 + $0x36c] sm:$0xf]  ;;  %v4907_v61 = vor.u32 %v6738_v8, %v4904_v46 }
 0x1dd   : > { %4111 = vmatpush.bf16.msra.mxu0 %v4715_v43  ;;  %4077 = vmatmul.bf16.vlgmr.msrb.gmra.mxu1 %v8002_v57  ;;  %v6706_v43 = vld [vmem:[%s7649_s3 + $0x16c] sm:$0xf]  ;;  %v4651_v50 = vor.u32 %v6674_v41, %v4648_v42  ;;  %v5016_v20 = vld [vmem:[%s7649_s3 + $0x358] sm:$0xf0] }
 0x1de   : > { %4125 = vmatpush.bf16.msra.mxu1 %v4843_v29  ;;  %4091 = vmatmul.bf16.vlgmr.msrb.gmra.mxu2 %v8000_v54  ;;  %v5051_v29 = vor.u32 %v6774_v44, %v5048_v31  ;;  %v4779_v53 = vor.u32 %v6706_v43, %v4776_v58  ;;  %v6670_v1 = vld [vmem:[%s7649_s3 + $0x4c] sm:$0xf]  ;;  %v4744_v30 = vld [vmem:[%s7649_s3 + $0x138] sm:$0xf0] }
 0x1df   : > { %4139 = vmatpush.bf16.msra.mxu2 %v4971_v45  ;;  %4105 = vmatmul.bf16.vlgmr.msrb.gmra.mxu3 %v8006_v62  ;;  %v3855_v45 = vadd.f32 %v3854_v38, %v3841_v35  ;;  %v6734_v7 = vld [vmem:[%s7649_s3 + $0x24c] sm:$0xf]  ;;  %v4872_v44 = vld [vmem:[%s7649_s3 + $0x238] sm:$0xf0] }
 0x1e0   : > { %4153 = vmatpush.bf16.msra.mxu3 %v5099_v0  ;;  %v5032_v0 = vld [vmem:[%s7649_s3 + $0x378] sm:$0xf0]  ;;  %v6766_v13 = vld [vmem:[%s7649_s3 + $0x34c] sm:$0xf]  ;;  %v4891_v22 = vor.u32 %v6734_v7, %v4888_v32 }
 0x1e1   : > { %4112 = vmatpush.bf16.msra.mxu0 %v4699_v2  ;;  %v6702_v2 = vld [vmem:[%s7649_s3 + $0x14c] sm:$0xf]  ;;  %v3842_v11 = vpop.f32.mrf.mxu0  ;;  %v5019_v24 = vor.u32 %v6766_v13, %v5016_v20  ;;  %v5000_v35 = vld [vmem:[%s7649_s3 + $0x338] sm:$0xf0] }
 0x1e2   : > { %4126 = vmatpush.bf16.msra.mxu1 %v4827_v3  ;;  %v5035_v3 = vor.u32 %v6770_v49, %v5032_v0  ;;  %v3882_v12 = vpop.f32.mrf.mxu3  ;;  %v3843_v14 = vadd.f32 %v3842_v11, %v8593_v37  ;;  %v4763_v21 = vor.u32 %v6702_v2, %v4760_v5  ;;  %v6666_v23 = vld [vmem:[%s7649_s3 + $0x2c] sm:$0xf]  ;;  %v4728_v43 = vld [vmem:[%s7649_s3 + $0x118] sm:$0xf0] }
 0x1e3   : > { %4140 = vmatpush.bf16.msra.mxu2 %v4955_v4  ;;  %v3868_v4 = vpop.f32.mrf.mxu2  ;;  %v6698_v28 = vld [vmem:[%s7649_s3 + $0x12c] sm:$0xf]  ;;  %v4856_v8 = vld [vmem:[%s7649_s3 + $0x218] sm:$0xf0] }
 0x1e4   : > { %4154 = vmatpush.bf16.msra.mxu3 %v5083_v9  ;;  %v3869_v9 = vadd.f32 %v3868_v4, %v3855_v45  ;;  %v6730_v6 = vld [vmem:[%s7649_s3 + $0x22c] sm:$0xf]  ;;  %v4984_v49 = vld [vmem:[%s7649_s3 + $0x318] sm:$0xf0] }
 0x1e5   : > { %4113 = vmatpush.bf16.msra.mxu0 %v4683_v16  ;;  %v4635_v16 = vor.u32 %v6670_v1, %v4632_v25  ;;  %v6762_v31 = vld [vmem:[%s7649_s3 + $0x32c] sm:$0xf]  ;;  %v4875_v41 = vor.u32 %v6730_v6, %v4872_v44  ;;  %v5352_v2 = vld [vmem:[%s7649_s3 + $0x5f8] sm:$0xf0] }
 0x1e6   : > { %4127 = vmatpush.bf16.msra.mxu1 %v4811_v18  ;;  %v3856_v18 = vpop.f32.mrf.mxu1  ;;  %v6662_v38 = vld [vmem:[%s7649_s3 + $0xc] sm:$0xf]  ;;  %v5003_v45 = vor.u32 %v6762_v31, %v5000_v35  ;;  %v5480_v4 = vld [vmem:[%s7649_s3 + $0x6f8] sm:$0xf0] }
 0x1e7   : > { %4141 = vmatpush.bf16.msra.mxu2 %v4939_v19  ;;  %v8643_v19 = vadd.f32 %v3882_v12, %v3869_v9  ;;  %v3857_v37 = vadd.f32 %v3856_v18, %v3843_v14  ;;  %v6694_v42 = vld [vmem:[%s7649_s3 + $0x10c] sm:$0xf]  ;;  %v5608_v11 = vld [vmem:[%s7649_s3 + $0x7f8] sm:$0xf0] }
 0x1e8   : > { %4155 = vmatpush.bf16.msra.mxu3 %v5067_v27  ;;  %v4616_v27 = vld [vmem:[%s7649_s3 + $0x38] sm:$0xf0]  ;;  %v6758_v46 = vld [vmem:[%s7649_s3 + $0x30c] sm:$0xf]  ;;  %v4731_v7 = vor.u32 %v6694_v42, %v4728_v43 }
 0x1e9   : > { %4114 = vmatpush.bf16.msra.mxu0 %v4667_v36  ;;  %v4619_v36 = vor.u32 %v6666_v23, %v4616_v27  ;;  %v6850_v1 = vld [vmem:[%s7649_s3 + $0x5ec] sm:$0xf]  ;;  %v4987_v12 = vor.u32 %v6758_v46, %v4984_v49  ;;  %v5208_v18 = vld [vmem:[%s7649_s3 + $0x4d8] sm:$0xf0] }
 0x1ea   : > { %4128 = vmatpush.bf16.msra.mxu1 %v4795_v39  ;;  %v4600_v39 = vld [vmem:[%s7649_s3 + $0x18] sm:$0xf0]  ;;  %v6914_v9 = vld [vmem:[%s7649_s3 + $0x7ec] sm:$0xf]  ;;  %v5355_v20 = vor.u32 %v6850_v1, %v5352_v2 }
 0x1eb   : > { %4142 = vmatpush.bf16.msra.mxu2 %v4923_v40  ;;  %v4747_v40 = vor.u32 %v6698_v28, %v4744_v30  ;;  %v3870_v58 = vpop.f32.mrf.mxu2  ;;  %v4603_v25 = vor.u32 %v6662_v38, %v4600_v39  ;;  %v5336_v23 = vld [vmem:[%s7649_s3 + $0x5d8] sm:$0xf0]  ;;  %v6878_v27 = vld [vmem:[%s7649_s3 + $0x6cc] sm:$0xf] }
 0x1ec   : > { %4156 = vmatpush.bf16.msra.mxu3 %v5051_v29  ;;  %v6726_v29 = vld [vmem:[%s7649_s3 + $0x20c] sm:$0xf]  ;;  %v3871_v0 = vadd.f32 %v3870_v58, %v3857_v37  ;;  %v5464_v28 = vld [vmem:[%s7649_s3 + $0x6d8] sm:$0xf0] }
 0x1ed   : > { %4115 = vmatpush.bf16.msra.mxu0 %v4651_v50  ;;  %v3884_v50 = vpop.f32.mrf.mxu3  ;;  %v4859_v32 = vor.u32 %v6726_v29, %v4856_v8  ;;  %v5592_v37 = vld [vmem:[%s7649_s3 + $0x7d8] sm:$0xf0]  ;;  %v5467_v44 = vor.u32 %v6878_v27, %v5464_v28  ;;  %v6810_v31 = vld [vmem:[%s7649_s3 + $0x4ac] sm:$0xf] }
 0x1ee   : > { %4129 = vmatpush.bf16.msra.mxu1 %v4779_v53  ;;  %v6818_v53 = vld [vmem:[%s7649_s3 + $0x4ec] sm:$0xf]  ;;  %v8667_v5 = vadd.f32 %v3884_v50, %v3871_v0  ;;  %v5192_v35 = vld [vmem:[%s7649_s3 + $0x4b8] sm:$0xf0] }
 0x1ef   : > { %4143 = vmatpush.bf16.msra.mxu2 %v4907_v61  ;;  %v5224_v61 = vld [vmem:[%s7649_s3 + $0x4f8] sm:$0xf0]  ;;  %v6906_v42 = vld [vmem:[%s7649_s3 + $0x7ac] sm:$0xf]  ;;  %v5195_v29 = vor.u32 %v6810_v31, %v5192_v35 }
 0x1f0   : > { %4157 = vmatpush.bf16.msra.mxu3 %v5035_v3  ;;  %v6882_v3 = vld [vmem:[%s7649_s3 + $0x6ec] sm:$0xf]  ;;  %v5227_v13 = vor.u32 %v6818_v53, %v5224_v61  ;;  %v5320_v39 = vld [vmem:[%s7649_s3 + $0x5b8] sm:$0xf0] }
 0x1f1   : > { %4116 = vmatpush.bf16.msra.mxu0 %v4635_v16  ;;  %v5483_v14 = vor.u32 %v6882_v3, %v5480_v4  ;;  %v6814_v16 = vld [vmem:[%s7649_s3 + $0x4cc] sm:$0xf]  ;;  %v5576_v43 = vld [vmem:[%s7649_s3 + $0x7b8] sm:$0xf0] }
 0x1f2   : > { %4130 = vmatpush.bf16.msra.mxu1 %v4763_v21  ;;  %v6846_v21 = vld [vmem:[%s7649_s3 + $0x5cc] sm:$0xf]  ;;  %v5211_v30 = vor.u32 %v6814_v16, %v5208_v18  ;;  %v5176_v8 = vld [vmem:[%s7649_s3 + $0x498] sm:$0xf0] }
 0x1f3   : > { %4144 = vmatpush.bf16.msra.mxu2 %v4891_v22  ;;  %v5611_v22 = vor.u32 %v6914_v9, %v5608_v11  ;;  %v5339_v6 = vor.u32 %v6846_v21, %v5336_v23  ;;  %v6838_v46 = vld [vmem:[%s7649_s3 + $0x58c] sm:$0xf]  ;;  %v5304_v49 = vld [vmem:[%s7649_s3 + $0x598] sm:$0xf0] }
 0x1f4   : > { %4158 = vmatpush.bf16.msra.mxu3 %v5019_v24  ;;  %v6910_v24 = vld [vmem:[%s7649_s3 + $0x7cc] sm:$0xf]  ;;  %v5432_v0 = vld [vmem:[%s7649_s3 + $0x698] sm:$0xf0] }
 0x1f5   : > { %4117 = vmatpush.bf16.msra.mxu0 %v4619_v36  ;;  %v6842_v36 = vld [vmem:[%s7649_s3 + $0x5ac] sm:$0xf]  ;;  %v5595_v38 = vor.u32 %v6910_v24, %v5592_v37  ;;  %v5560_v53 = vld [vmem:[%s7649_s3 + $0x798] sm:$0xf0] }
 0x1f6   : > { %4131 = vmatpush.bf16.msra.mxu1 %v4747_v40  ;;  %v6874_v40 = vld [vmem:[%s7649_s3 + $0x6ac] sm:$0xf]  ;;  %v5160_v4 = vld [vmem:[%s7649_s3 + $0x478] sm:$0xf0] }
 0x1f7   : > { %4145 = vmatpush.bf16.msra.mxu2 %v4875_v41  ;;  %v5448_v41 = vld [vmem:[%s7649_s3 + $0x6b8] sm:$0xf0]  ;;  %v6902_v50 = vld [vmem:[%s7649_s3 + $0x78c] sm:$0xf] }
 0x1f8   : > { %4159 = vmatpush.bf16.msra.mxu3 %v5003_v45  ;;  %v5323_v45 = vor.u32 %v6842_v36, %v5320_v39  ;;  %v5451_v58 = vor.u32 %v6874_v40, %v5448_v41  ;;  %v6802_v3 = vld [vmem:[%s7649_s3 + $0x46c] sm:$0xf]  ;;  %v5563_v9 = vor.u32 %v6902_v50, %v5560_v53  ;;  %v5288_v11 = vld [vmem:[%s7649_s3 + $0x578] sm:$0xf0] }
 0x1f9   : > { %4118 = vmatpush.bf16.msra.mxu0 %v4603_v25  ;;  %v5307_v25 = vor.u32 %v6838_v46, %v5304_v49  ;;  %v5163_v16 = vor.u32 %v6802_v3, %v5160_v4  ;;  %v6798_v18 = vld [vmem:[%s7649_s3 + $0x44c] sm:$0xf]  ;;  %v5144_v23 = vld [vmem:[%s7649_s3 + $0x458] sm:$0xf0] }
 0x1fa   : > { %4132 = vmatpush.bf16.msra.mxu1 %v4731_v7  ;;  %v3910_v1 = vpop.f32.mrf.mxu1  ;;  %v6834_v7 = vld [vmem:[%s7649_s3 + $0x56c] sm:$0xf]  ;;  %v5272_v28 = vld [vmem:[%s7649_s3 + $0x558] sm:$0xf0] }
 0x1fb   : > { %4146 = vmatpush.bf16.msra.mxu2 %v4859_v32  ;;  %v5291_v21 = vor.u32 %v6834_v7, %v5288_v11  ;;  %v6830_v27 = vld [vmem:[%s7649_s3 + $0x54c] sm:$0xf]  ;;  %v5528_v31 = vld [vmem:[%s7649_s3 + $0x758] sm:$0xf0] }
 0x1fc   : > { %4160 = vmatpush.bf16.msra.mxu3 %v4987_v12  ;;  %4119 = vmatmul.bf16.vlgmr.msra.gmra.mxu0 %v7745_v10  ;;  %v6806_v10 = vld [vmem:[%s7649_s3 + $0x48c] sm:$0xf]  ;;  %v5275_v39 = vor.u32 %v6830_v27, %v5272_v28  ;;  %v5256_v46 = vld [vmem:[%s7649_s3 + $0x538] sm:$0xf0] }
 0x1fd   : > { %4167 = vmatpush.bf16.msrb.mxu0 %v5227_v13  ;;  %4133 = vmatmul.bf16.vlgmr.msra.gmra.mxu1 %v7761_v26  ;;  %v6870_v26 = vld [vmem:[%s7649_s3 + $0x68c] sm:$0xf]  ;;  %v5179_v61 = vor.u32 %v6806_v10, %v5176_v8  ;;  %v5416_v13 = vld [vmem:[%s7649_s3 + $0x678] sm:$0xf0] }
 0x1fe   : > { %4181 = vmatpush.bf16.msrb.mxu1 %v5355_v20  ;;  %4147 = vmatmul.bf16.vlgmr.msra.gmra.mxu2 %v7751_v17  ;;  %v5579_v17 = vor.u32 %v6906_v42, %v5576_v43  ;;  %v5435_v2 = vor.u32 %v6870_v26, %v5432_v0  ;;  %v6866_v12 = vld [vmem:[%s7649_s3 + $0x66c] sm:$0xf]  ;;  %v5384_v49 = vld [vmem:[%s7649_s3 + $0x638] sm:$0xf0] }
 0x1ff   : > { %4195 = vmatpush.bf16.msrb.mxu2 %v5483_v14  ;;  %4161 = vmatmul.bf16.vlgmr.msra.gmra.mxu3 %v7767_v33  ;;  %v3896_v33 = vpop.f32.mrf.mxu0  ;;  %v6898_v20 = vld [vmem:[%s7649_s3 + $0x76c] sm:$0xf]  ;;  %v5544_v14 = vld [vmem:[%s7649_s3 + $0x778] sm:$0xf0] }
 0x200   : > { %4209 = vmatpush.bf16.msrb.mxu3 %v5611_v22  ;;  %v3911_v32 = vadd.f32 %v3910_v1, %v3896_v33  ;;  %v5419_v22 = vor.u32 %v6866_v12, %v5416_v13  ;;  %v5547_v24 = vor.u32 %v6898_v20, %v5544_v14  ;;  %v6862_v37 = vld [vmem:[%s7649_s3 + $0x64c] sm:$0xf]  ;;  %v5512_v0 = vld [vmem:[%s7649_s3 + $0x738] sm:$0xf0] }
 0x201   : > { %4168 = vmatpush.bf16.msrb.mxu0 %v5211_v30  ;;  %v5400_v30 = vld [vmem:[%s7649_s3 + $0x658] sm:$0xf0]  ;;  %v6794_v43 = vld [vmem:[%s7649_s3 + $0x42c] sm:$0xf] }
 0x202   : > { %4182 = vmatpush.bf16.msrb.mxu1 %v5339_v6  ;;  %v3924_v6 = vpop.f32.mrf.mxu2  ;;  %v3938_v36 = vpop.f32.mrf.mxu3  ;;  %v5403_v42 = vor.u32 %v6862_v37, %v5400_v30  ;;  %v6890_v26 = vld [vmem:[%s7649_s3 + $0x72c] sm:$0xf]  ;;  %v5112_v33 = vld [vmem:[%s7649_s3 + $0x418] sm:$0xf0] }
 0x203   : > { %4196 = vmatpush.bf16.msrb.mxu2 %v5467_v44  ;;  %v6894_v44 = vld [vmem:[%s7649_s3 + $0x74c] sm:$0xf]  ;;  %v3925_v35 = vadd.f32 %v3924_v6, %v3911_v32  ;;  %v3912_v41 = vpop.f32.mrf.mxu1  ;;  %v5515_v4 = vor.u32 %v6890_v26, %v5512_v0  ;;  %v5368_v7 = vld [vmem:[%s7649_s3 + $0x618] sm:$0xf0] }
 0x204   : > { %4210 = vmatpush.bf16.msrb.mxu3 %v5595_v38  ;;  %v5147_v38 = vor.u32 %v6798_v18, %v5144_v23  ;;  %v5531_v8 = vor.u32 %v6894_v44, %v5528_v31  ;;  %v6790_v53 = vld [vmem:[%s7649_s3 + $0x40c] sm:$0xf]  ;;  %v5736_v13 = vld [vmem:[%s7649_s3 + $0x8f8] sm:$0xf0] }
 0x205   : > { %4169 = vmatpush.bf16.msrb.mxu0 %v5195_v29  ;;  %v5128_v29 = vld [vmem:[%s7649_s3 + $0x438] sm:$0xf0]  ;;  %v6854_v3 = vld [vmem:[%s7649_s3 + $0x60c] sm:$0xf] }
 0x206   : > { %4183 = vmatpush.bf16.msrb.mxu1 %v5323_v45  ;;  %v6826_v45 = vld [vmem:[%s7649_s3 + $0x52c] sm:$0xf]  ;;  %v5131_v50 = vor.u32 %v6794_v43, %v5128_v29  ;;  %v5864_v18 = vld [vmem:[%s7649_s3 + $0x9f8] sm:$0xf0]  ;;  %v5371_v28 = vor.u32 %v6854_v3, %v5368_v7 }
 0x207   : > { %4197 = vmatpush.bf16.msrb.mxu2 %v5451_v58  ;;  %v3898_v40 = vpop.f32.mrf.mxu0  ;;  %v8718_v58 = vadd.f32 %v3938_v36, %v3925_v35  ;;  %v6886_v32 = vld [vmem:[%s7649_s3 + $0x70c] sm:$0xf]  ;;  %v6120_v37 = vld [vmem:[%s7649_s3 + $0xbf8] sm:$0xf0] }
 0x208   : > { %4211 = vmatpush.bf16.msrb.mxu3 %v5579_v17  ;;  %v3913_v10 = vadd.f32 %v3912_v41, %v3898_v40  ;;  %v6858_v17 = vld [vmem:[%s7649_s3 + $0x62c] sm:$0xf]  ;;  %v5848_v41 = vld [vmem:[%s7649_s3 + $0x9d8] sm:$0xf0] }
 0x209   : > { %4170 = vmatpush.bf16.msrb.mxu0 %v5179_v61  ;;  %v5259_v61 = vor.u32 %v6826_v45, %v5256_v46  ;;  %v5387_v1 = vor.u32 %v6858_v17, %v5384_v49  ;;  %v6946_v12 = vld [vmem:[%s7649_s3 + $0x8ec] sm:$0xf]  ;;  %v5976_v43 = vld [vmem:[%s7649_s3 + $0xad8] sm:$0xf0] }
 0x20a   : > { %4184 = vmatpush.bf16.msrb.mxu1 %v5307_v25  ;;  %v6822_v25 = vld [vmem:[%s7649_s3 + $0x50c] sm:$0xf]  ;;  %v3926_v11 = vpop.f32.mrf.mxu2  ;;  %v3940_v23 = vpop.f32.mrf.mxu3  ;;  %v5739_v44 = vor.u32 %v6946_v12, %v5736_v13  ;;  %v6104_v45 = vld [vmem:[%s7649_s3 + $0xbd8] sm:$0xf0] }
 0x20b   : > { %4198 = vmatpush.bf16.msrb.mxu2 %v5435_v2  ;;  %v5240_v2 = vld [vmem:[%s7649_s3 + $0x518] sm:$0xf0]  ;;  %v6978_v20 = vld [vmem:[%s7649_s3 + $0x9ec] sm:$0xf]  ;;  %v3927_v14 = vadd.f32 %v3926_v11, %v3913_v10 }
 0x20c   : > { %4212 = vmatpush.bf16.msrb.mxu3 %v5563_v9  ;;  %v5496_v9 = vld [vmem:[%s7649_s3 + $0x718] sm:$0xf0]  ;;  %v5243_v27 = vor.u32 %v6822_v25, %v5240_v2  ;;  %v5867_v31 = vor.u32 %v6978_v20, %v5864_v18  ;;  %v6942_v36 = vld [vmem:[%s7649_s3 + $0x8cc] sm:$0xf] }
 0x20d   : > { %4171 = vmatpush.bf16.msrb.mxu0 %v5163_v16  ;;  %v5115_v16 = vor.u32 %v6790_v53, %v5112_v33  ;;  %v8741_v30 = vadd.f32 %v3940_v23, %v3927_v14  ;;  %v5499_v6 = vor.u32 %v6886_v32, %v5496_v9  ;;  %v7038_v29 = vld [vmem:[%s7649_s3 + $0xbcc] sm:$0xf]  ;;  %v5704_v49 = vld [vmem:[%s7649_s3 + $0x8b8] sm:$0xf0] }
 0x20e   : > { %4185 = vmatpush.bf16.msrb.mxu1 %v5291_v21  ;;  %v7010_v21 = vld [vmem:[%s7649_s3 + $0xaec] sm:$0xf]  ;;  %v6107_v0 = vor.u32 %v7038_v29, %v6104_v45  ;;  %v5960_v33 = vld [vmem:[%s7649_s3 + $0xab8] sm:$0xf0] }
 0x20f   : > { %4199 = vmatpush.bf16.msrb.mxu2 %v5419_v22  ;;  %v5992_v22 = vld [vmem:[%s7649_s3 + $0xaf8] sm:$0xf0]  ;;  %v6938_v17 = vld [vmem:[%s7649_s3 + $0x8ac] sm:$0xf] }
 0x210   : > { %4213 = vmatpush.bf16.msrb.mxu3 %v5547_v24  ;;  %v7042_v24 = vld [vmem:[%s7649_s3 + $0xbec] sm:$0xf]  ;;  %v5995_v35 = vor.u32 %v7010_v21, %v5992_v22  ;;  %v5816_v7 = vld [vmem:[%s7649_s3 + $0x998] sm:$0xf0] }
 0x211   : > { %4172 = vmatpush.bf16.msrb.mxu0 %v5147_v38  ;;  %v5720_v38 = vld [vmem:[%s7649_s3 + $0x8d8] sm:$0xf0]  ;;  %v6123_v40 = vor.u32 %v7042_v24, %v6120_v37  ;;  %v6970_v26 = vld [vmem:[%s7649_s3 + $0x9ac] sm:$0xf] }
 0x212   : > { %4186 = vmatpush.bf16.msrb.mxu1 %v5275_v39  ;;  %v6974_v39 = vld [vmem:[%s7649_s3 + $0x9cc] sm:$0xf]  ;;  %v5723_v10 = vor.u32 %v6942_v36, %v5720_v38  ;;  %v5944_v9 = vld [vmem:[%s7649_s3 + $0xa98] sm:$0xf0] }
 0x213   : > { %4200 = vmatpush.bf16.msrb.mxu2 %v5403_v42  ;;  %v7006_v42 = vld [vmem:[%s7649_s3 + $0xacc] sm:$0xf]  ;;  %v6072_v12 = vld [vmem:[%s7649_s3 + $0xb98] sm:$0xf0] }
 0x214   : > { %4214 = vmatpush.bf16.msrb.mxu3 %v5531_v8  ;;  %v5851_v8 = vor.u32 %v6974_v39, %v5848_v41  ;;  %v5979_v46 = vor.u32 %v7006_v42, %v5976_v43  ;;  %v7002_v53 = vld [vmem:[%s7649_s3 + $0xaac] sm:$0xf]  ;;  %v5672_v22 = vld [vmem:[%s7649_s3 + $0x878] sm:$0xf0] }
 0x215   : > { %4173 = vmatpush.bf16.msrb.mxu0 %v5131_v50  ;;  %v5832_v50 = vld [vmem:[%s7649_s3 + $0x9b8] sm:$0xf0]  ;;  %v5963_v2 = vor.u32 %v7002_v53, %v5960_v33  ;;  %v6934_v3 = vld [vmem:[%s7649_s3 + $0x88c] sm:$0xf] }
 0x216   : > { %4187 = vmatpush.bf16.msrb.mxu1 %v5259_v61  ;;  %v7034_v61 = vld [vmem:[%s7649_s3 + $0xbac] sm:$0xf]  ;;  %v5835_v25 = vor.u32 %v6970_v26, %v5832_v50  ;;  %v5800_v24 = vld [vmem:[%s7649_s3 + $0x978] sm:$0xf0] }
 0x217   : > { %4201 = vmatpush.bf16.msrb.mxu2 %v5387_v1  ;;  %v6088_v1 = vld [vmem:[%s7649_s3 + $0xbb8] sm:$0xf0]  ;;  %v6998_v32 = vld [vmem:[%s7649_s3 + $0xa8c] sm:$0xf] }
 0x218   : > { %4215 = vmatpush.bf16.msrb.mxu3 %v5515_v4  ;;  %v5688_v4 = vld [vmem:[%s7649_s3 + $0x898] sm:$0xf0]  ;;  %v7030_v11 = vld [vmem:[%s7649_s3 + $0xb8c] sm:$0xf]  ;;  %v5947_v18 = vor.u32 %v6998_v32, %v5944_v9 }
 0x219   : > { %4174 = vmatpush.bf16.msrb.mxu0 %v5115_v16  ;;  %v5691_v20 = vor.u32 %v6934_v3, %v5688_v4  ;;  %v6930_v21 = vld [vmem:[%s7649_s3 + $0x86c] sm:$0xf]  ;;  %v5656_v39 = vld [vmem:[%s7649_s3 + $0x858] sm:$0xf0] }
 0x21a   : > { %4188 = vmatpush.bf16.msrb.mxu1 %v5243_v27  ;;  %v3966_v14 = vpop.f32.mrf.mxu1  ;;  %v6962_v23 = vld [vmem:[%s7649_s3 + $0x96c] sm:$0xf]  ;;  %v6075_v27 = vor.u32 %v7030_v11, %v6072_v12  ;;  %v5784_v43 = vld [vmem:[%s7649_s3 + $0x958] sm:$0xf0] }
 0x21b   : > { %4202 = vmatpush.bf16.msrb.mxu2 %v5371_v28  ;;  %v6994_v37 = vld [vmem:[%s7649_s3 + $0xa6c] sm:$0xf]  ;;  %v5912_v45 = vld [vmem:[%s7649_s3 + $0xa58] sm:$0xf0] }
 0x21c   : > { %4216 = vmatpush.bf16.msrb.mxu3 %v5499_v6  ;;  %4175 = vmatmul.bf16.vlgmr.msrb.gmra.mxu0 %v7827_v55  ;;  %v5707_v55 = vor.u32 %v6938_v17, %v5704_v49  ;;  %v7026_v6 = vld [vmem:[%s7649_s3 + $0xb6c] sm:$0xf]  ;;  %v6040_v49 = vld [vmem:[%s7649_s3 + $0xb58] sm:$0xf0] }
 0x21d   : > { %4223 = vmatpush.bf16.msra.mxu0 %v5739_v44  ;;  %4189 = vmatmul.bf16.vlgmr.msrb.gmra.mxu1 %v7834_v60  ;;  %v6091_v60 = vor.u32 %v7034_v61, %v6088_v1  ;;  %v6056_v44 = vld [vmem:[%s7649_s3 + $0xb78] sm:$0xf0]  ;;  %v6926_v38 = vld [vmem:[%s7649_s3 + $0x84c] sm:$0xf] }
 0x21e   : > { %4237 = vmatpush.bf16.msra.mxu1 %v5867_v31  ;;  %4203 = vmatmul.bf16.vlgmr.msrb.gmra.mxu2 %v7832_v59  ;;  %v6966_v59 = vld [vmem:[%s7649_s3 + $0x98c] sm:$0xf]  ;;  %v5675_v31 = vor.u32 %v6930_v21, %v5672_v22  ;;  %v6059_v41 = vor.u32 %v7026_v6, %v6056_v44  ;;  %v5768_v3 = vld [vmem:[%s7649_s3 + $0x938] sm:$0xf0] }
 0x21f   : > { %4251 = vmatpush.bf16.msra.mxu2 %v5995_v35  ;;  %4217 = vmatmul.bf16.vlgmr.msrb.gmra.mxu3 %v7838_v63  ;;  %v3952_v63 = vpop.f32.mrf.mxu0  ;;  %v5819_v16 = vor.u32 %v6966_v59, %v5816_v7  ;;  %v5803_v35 = vor.u32 %v6962_v23, %v5800_v24  ;;  %v6990_v29 = vld [vmem:[%s7649_s3 + $0xa4c] sm:$0xf]  ;;  %v5896_v59 = vld [vmem:[%s7649_s3 + $0xa38] sm:$0xf0] }
 0x220   : > { %4265 = vmatpush.bf16.msra.mxu3 %v6123_v40  ;;  %v3953_v13 = vadd.f32 %v3952_v63, %v8718_v58  ;;  %v5928_v58 = vld [vmem:[%s7649_s3 + $0xa78] sm:$0xf0]  ;;  %v6958_v40 = vld [vmem:[%s7649_s3 + $0x94c] sm:$0xf]  ;;  %v5915_v61 = vor.u32 %v6990_v29, %v5912_v45 }
 0x221   : > { %4224 = vmatpush.bf16.msra.mxu0 %v5723_v10  ;;  %v5931_v36 = vor.u32 %v6994_v37, %v5928_v58  ;;  %v3980_v42 = vpop.f32.mrf.mxu2  ;;  %v7022_v17 = vld [vmem:[%s7649_s3 + $0xb4c] sm:$0xf]  ;;  %v5787_v33 = vor.u32 %v6958_v40, %v5784_v43  ;;  %v6024_v7 = vld [vmem:[%s7649_s3 + $0xb38] sm:$0xf0] }
 0x222   : > { %4238 = vmatpush.bf16.msra.mxu1 %v5851_v8  ;;  %v3967_v28 = vadd.f32 %v3966_v14, %v3953_v13  ;;  %v3968_v50 = vpop.f32.mrf.mxu1  ;;  %v6922_v1 = vld [vmem:[%s7649_s3 + $0x82c] sm:$0xf]  ;;  %v5624_v63 = vld [vmem:[%s7649_s3 + $0x818] sm:$0xf0] }
 0x223   : > { %4252 = vmatpush.bf16.msra.mxu2 %v5979_v46  ;;  %v3994_v46 = vpop.f32.mrf.mxu3  ;;  %v6986_v4 = vld [vmem:[%s7649_s3 + $0xa2c] sm:$0xf]  ;;  %v5880_v21 = vld [vmem:[%s7649_s3 + $0xa18] sm:$0xf0] }
 0x224   : > { %4266 = vmatpush.bf16.msra.mxu3 %v6107_v0  ;;  %v3981_v10 = vadd.f32 %v3980_v42, %v3967_v28  ;;  %v5659_v0 = vor.u32 %v6926_v38, %v5656_v39  ;;  %v6918_v9 = vld [vmem:[%s7649_s3 + $0x80c] sm:$0xf]  ;;  %v5899_v12 = vor.u32 %v6986_v4, %v5896_v59  ;;  %v6008_v23 = vld [vmem:[%s7649_s3 + $0xb18] sm:$0xf0] }
 0x225   : > { %4225 = vmatpush.bf16.msra.mxu0 %v5707_v55  ;;  %v5640_v55 = vld [vmem:[%s7649_s3 + $0x838] sm:$0xf0]  ;;  %v6950_v13 = vld [vmem:[%s7649_s3 + $0x90c] sm:$0xf]  ;;  %v5627_v6 = vor.u32 %v6918_v9, %v5624_v63 }
 0x226   : > { %4239 = vmatpush.bf16.msra.mxu1 %v5835_v25  ;;  %v8789_v53 = vadd.f32 %v3994_v46, %v3981_v10  ;;  %v6954_v25 = vld [vmem:[%s7649_s3 + $0x92c] sm:$0xf]  ;;  %v5643_v32 = vor.u32 %v6922_v1, %v5640_v55  ;;  %v6248_v37 = vld [vmem:[%s7649_s3 + $0xcf8] sm:$0xf0] }
 0x227   : > { %4253 = vmatpush.bf16.msra.mxu2 %v5963_v2  ;;  %v3954_v8 = vpop.f32.mrf.mxu0  ;;  %v6043_v2 = vor.u32 %v7022_v17, %v6040_v49  ;;  %v5771_v11 = vor.u32 %v6954_v25, %v5768_v3  ;;  %v6982_v14 = vld [vmem:[%s7649_s3 + $0xa0c] sm:$0xf]  ;;  %v6376_v44 = vld [vmem:[%s7649_s3 + $0xdf8] sm:$0xf0] }
 0x228   : > { %4267 = vmatpush.bf16.msra.mxu3 %v6091_v60  ;;  %v3955_v26 = vadd.f32 %v3954_v8, %v8741_v30  ;;  %v7018_v60 = vld [vmem:[%s7649_s3 + $0xb2c] sm:$0xf]  ;;  %v5883_v39 = vor.u32 %v6982_v14, %v5880_v21  ;;  %v6232_v8 = vld [vmem:[%s7649_s3 + $0xcd8] sm:$0xf0] }
 0x229   : > { %4226 = vmatpush.bf16.msra.mxu0 %v5691_v20  ;;  %v5752_v20 = vld [vmem:[%s7649_s3 + $0x918] sm:$0xf0]  ;;  %v7014_v22 = vld [vmem:[%s7649_s3 + $0xb0c] sm:$0xf] }
 0x22a   : > { %4240 = vmatpush.bf16.msra.mxu1 %v5819_v16  ;;  %v3969_v30 = vadd.f32 %v3968_v50, %v3955_v26  ;;  %v6027_v16 = vor.u32 %v7018_v60, %v6024_v7  ;;  %v7074_v24 = vld [vmem:[%s7649_s3 + $0xcec] sm:$0xf]  ;;  %v5755_v38 = vor.u32 %v6950_v13, %v5752_v20  ;;  %v6011_v42 = vor.u32 %v7014_v22, %v6008_v23  ;;  %v6360_v49 = vld [vmem:[%s7649_s3 + $0xdd8] sm:$0xf0] }
 0x22b   : > { %4254 = vmatpush.bf16.msra.mxu2 %v5947_v18  ;;  %v3982_v18 = vpop.f32.mrf.mxu2  ;;  %v3996_v28 = vpop.f32.mrf.mxu3  ;;  %v7106_v58 = vld [vmem:[%s7649_s3 + $0xdec] sm:$0xf]  ;;  %v6251_v43 = vor.u32 %v7074_v24, %v6248_v37  ;;  %v6344_v4 = vld [vmem:[%s7649_s3 + $0xdb8] sm:$0xf0] }
 0x22c   : > { %4268 = vmatpush.bf16.msra.mxu3 %v6075_v27  ;;  %v3983_v27 = vadd.f32 %v3982_v18, %v3969_v30  ;;  %v7170_v40 = vld [vmem:[%s7649_s3 + $0xfec] sm:$0xf]  ;;  %v6379_v29 = vor.u32 %v7106_v58, %v6376_v44  ;;  %v6472_v60 = vld [vmem:[%s7649_s3 + $0xeb8] sm:$0xf0] }
 0x22d   : > { %4227 = vmatpush.bf16.msra.mxu0 %v5675_v31  ;;  %v7138_v31 = vld [vmem:[%s7649_s3 + $0xeec] sm:$0xf]  ;;  %v6328_v13 = vld [vmem:[%s7649_s3 + $0xd98] sm:$0xf0] }
 0x22e   : > { %4241 = vmatpush.bf16.msra.mxu1 %v5803_v35  ;;  %v6504_v35 = vld [vmem:[%s7649_s3 + $0xef8] sm:$0xf0]  ;;  %v7070_v10 = vld [vmem:[%s7649_s3 + $0xccc] sm:$0xf] }
 0x22f   : > { %4255 = vmatpush.bf16.msra.mxu2 %v5931_v36  ;;  %v8813_v36 = vadd.f32 %v3996_v28, %v3983_v27  ;;  %v6507_v45 = vor.u32 %v7138_v31, %v6504_v35  ;;  %v7102_v46 = vld [vmem:[%s7649_s3 + $0xdcc] sm:$0xf]  ;;  %v6456_v14 = vld [vmem:[%s7649_s3 + $0xe98] sm:$0xf0] }
 0x230   : > { %4269 = vmatpush.bf16.msra.mxu3 %v6059_v41  ;;  %v6632_v41 = vld [vmem:[%s7649_s3 + $0xff8] sm:$0xf0]  ;;  %v7134_v26 = vld [vmem:[%s7649_s3 + $0xecc] sm:$0xf]  ;;  %v6363_v1 = vor.u32 %v7102_v46, %v6360_v49 }
 0x231   : > { %4228 = vmatpush.bf16.msra.mxu0 %v5659_v0  ;;  %v6635_v17 = vor.u32 %v7170_v40, %v6632_v41  ;;  %v6488_v0 = vld [vmem:[%s7649_s3 + $0xed8] sm:$0xf0]  ;;  %v7166_v50 = vld [vmem:[%s7649_s3 + $0xfcc] sm:$0xf] }
 0x232   : > { %4242 = vmatpush.bf16.msra.mxu1 %v5787_v33  ;;  %v6616_v33 = vld [vmem:[%s7649_s3 + $0xfd8] sm:$0xf0]  ;;  %v6491_v55 = vor.u32 %v7134_v26, %v6488_v0  ;;  %v7066_v25 = vld [vmem:[%s7649_s3 + $0xcac] sm:$0xf] }
 0x233   : > { %4256 = vmatpush.bf16.msra.mxu2 %v5915_v61  ;;  %v6235_v61 = vor.u32 %v7070_v10, %v6232_v8  ;;  %v7098_v30 = vld [vmem:[%s7649_s3 + $0xdac] sm:$0xf]  ;;  %v6619_v3 = vor.u32 %v7166_v50, %v6616_v33  ;;  %v6584_v18 = vld [vmem:[%s7649_s3 + $0xf98] sm:$0xf0] }
 0x234   : > { %4270 = vmatpush.bf16.msra.mxu3 %v6043_v2  ;;  %v6216_v2 = vld [vmem:[%s7649_s3 + $0xcb8] sm:$0xf0]  ;;  %v7130_v59 = vld [vmem:[%s7649_s3 + $0xeac] sm:$0xf]  ;;  %v6347_v9 = vor.u32 %v7098_v30, %v6344_v4 }
 0x235   : > { %4229 = vmatpush.bf16.msra.mxu0 %v5643_v32  ;;  %v7162_v7 = vld [vmem:[%s7649_s3 + $0xfac] sm:$0xf]  ;;  %v6600_v32 = vld [vmem:[%s7649_s3 + $0xfb8] sm:$0xf0]  ;;  %v6475_v63 = vor.u32 %v7130_v59, %v6472_v60 }
 0x236   : > { %4243 = vmatpush.bf16.msra.mxu1 %v5771_v11  ;;  %v7062_v11 = vld [vmem:[%s7649_s3 + $0xc8c] sm:$0xf]  ;;  %v6184_v37 = vld [vmem:[%s7649_s3 + $0xc78] sm:$0xf0] }
 0x237   : > { %4257 = vmatpush.bf16.msra.mxu2 %v5899_v12  ;;  %v6200_v12 = vld [vmem:[%s7649_s3 + $0xc98] sm:$0xf0]  ;;  %v7126_v20 = vld [vmem:[%s7649_s3 + $0xe8c] sm:$0xf] }
 0x238   : > { %4271 = vmatpush.bf16.msra.mxu3 %v6027_v16  ;;  %v7158_v16 = vld [vmem:[%s7649_s3 + $0xf8c] sm:$0xf]  ;;  %v6203_v22 = vor.u32 %v7062_v11, %v6200_v12  ;;  %v6459_v28 = vor.u32 %v7126_v20, %v6456_v14  ;;  %v6312_v31 = vld [vmem:[%s7649_s3 + $0xd78] sm:$0xf0] }
 0x239   : > { %4230 = vmatpush.bf16.msra.mxu0 %v5627_v6  ;;  %v7058_v24 = vld [vmem:[%s7649_s3 + $0xc6c] sm:$0xf]  ;;  %v6587_v6 = vor.u32 %v7158_v16, %v6584_v18  ;;  %v6296_v46 = vld [vmem:[%s7649_s3 + $0xd58] sm:$0xf0] }
 0x23a   : > { %4244 = vmatpush.bf16.msra.mxu1 %v5755_v38  ;;  %v4022_v23 = vpop.f32.mrf.mxu1  ;;  %v7090_v58 = vld [vmem:[%s7649_s3 + $0xd6c] sm:$0xf]  ;;  %v6187_v40 = vor.u32 %v7058_v24, %v6184_v37  ;;  %v6424_v49 = vld [vmem:[%s7649_s3 + $0xe58] sm:$0xf0] }
 0x23b   : > { %4258 = vmatpush.bf16.msra.mxu2 %v5883_v39  ;;  %v7122_v35 = vld [vmem:[%s7649_s3 + $0xe6c] sm:$0xf]  ;;  %v6568_v39 = vld [vmem:[%s7649_s3 + $0xf78] sm:$0xf0]  ;;  %v6315_v41 = vor.u32 %v7090_v58, %v6312_v31 }
 0x23c   : > { %4272 = vmatpush.bf16.msra.mxu3 %v6011_v42  ;;  %4231 = vmatmul.bf16.vlgmr.msra.gmra.mxu0 %v7911_v47  ;;  %v6219_v47 = vor.u32 %v7066_v25, %v6216_v2  ;;  %v7154_v38 = vld [vmem:[%s7649_s3 + $0xf6c] sm:$0xf]  ;;  %v6152_v59 = vld [vmem:[%s7649_s3 + $0xc38] sm:$0xf0] }
 0x23d   : > { %4279 = vmatpush.bf16.msrb.mxu0 %v6251_v43  ;;  %4245 = vmatmul.bf16.vlgmr.msra.gmra.mxu1 %v7918_v52  ;;  %v6603_v52 = vor.u32 %v7162_v7, %v6600_v32  ;;  %v7054_v43 = vld [vmem:[%s7649_s3 + $0xc4c] sm:$0xf]  ;;  %v6571_v10 = vor.u32 %v7154_v38, %v6568_v39  ;;  %v6536_v11 = vld [vmem:[%s7649_s3 + $0xf38] sm:$0xf0] }
 0x23e   : > { %4293 = vmatpush.bf16.msrb.mxu1 %v6379_v29  ;;  %4259 = vmatmul.bf16.vlgmr.msra.gmra.mxu2 %v7916_v51  ;;  %v7094_v51 = vld [vmem:[%s7649_s3 + $0xd8c] sm:$0xf]  ;;  %v6168_v29 = vld [vmem:[%s7649_s3 + $0xc58] sm:$0xf0] }
 0x23f   : > { %4307 = vmatpush.bf16.msrb.mxu2 %v6507_v45  ;;  %4273 = vmatmul.bf16.vlgmr.msra.gmra.mxu3 %v7922_v56  ;;  %v4008_v56 = vpop.f32.mrf.mxu0  ;;  %v6331_v27 = vor.u32 %v7094_v51, %v6328_v13  ;;  %v7086_v45 = vld [vmem:[%s7649_s3 + $0xd4c] sm:$0xf]  ;;  %v6136_v20 = vld [vmem:[%s7649_s3 + $0xc18] sm:$0xf0] }
 0x240   : > { %4321 = vmatpush.bf16.msrb.mxu3 %v6635_v17  ;;  %v4009_v21 = vadd.f32 %v4008_v56, %v8789_v53  ;;  %v6440_v53 = vld [vmem:[%s7649_s3 + $0xe78] sm:$0xf0]  ;;  %v7118_v17 = vld [vmem:[%s7649_s3 + $0xe4c] sm:$0xf]  ;;  %v6299_v30 = vor.u32 %v7086_v45, %v6296_v46 }
 0x241   : > { %4280 = vmatpush.bf16.msrb.mxu0 %v6235_v61  ;;  %v6443_v42 = vor.u32 %v7122_v35, %v6440_v53  ;;  %v4036_v8 = vpop.f32.mrf.mxu2  ;;  %v7150_v33 = vld [vmem:[%s7649_s3 + $0xf4c] sm:$0xf]  ;;  %v6552_v61 = vld [vmem:[%s7649_s3 + $0xf58] sm:$0xf0] }
 0x242   : > { %4294 = vmatpush.bf16.msrb.mxu1 %v6363_v1  ;;  %v4023_v44 = vadd.f32 %v4022_v23, %v4009_v21  ;;  %v4050_v50 = vpop.f32.mrf.mxu3  ;;  %v4024_v25 = vpop.f32.mrf.mxu1  ;;  %v7050_v4 = vld [vmem:[%s7649_s3 + $0xc2c] sm:$0xf]  ;;  %v6555_v7 = vor.u32 %v7150_v33, %v6552_v61  ;;  %v6264_v18 = vld [vmem:[%s7649_s3 + $0xd18] sm:$0xf0] }
 0x243   : > { %4308 = vmatpush.bf16.msrb.mxu2 %v6491_v55  ;;  %v6171_v55 = vor.u32 %v7054_v43, %v6168_v29  ;;  %v7082_v60 = vld [vmem:[%s7649_s3 + $0xd2c] sm:$0xf]  ;;  %v6155_v12 = vor.u32 %v7050_v4, %v6152_v59  ;;  %v6520_v24 = vld [vmem:[%s7649_s3 + $0xf18] sm:$0xf0] }
 0x244   : > { %4322 = vmatpush.bf16.msrb.mxu3 %v6619_v3  ;;  %v4037_v26 = vadd.f32 %v4036_v8, %v4023_v44  ;;  %v6427_v3 = vor.u32 %v7118_v17, %v6424_v49  ;;  %v7046_v13 = vld [vmem:[%s7649_s3 + $0xc0c] sm:$0xf] }
 0x245   : > { %4281 = vmatpush.bf16.msrb.mxu0 %v6219_v47  ;;  %v7114_v47 = vld [vmem:[%s7649_s3 + $0xe2c] sm:$0xf]  ;;  %v6139_v37 = vor.u32 %v7046_v13, %v6136_v20 }
 0x246   : > { %4295 = vmatpush.bf16.msrb.mxu1 %v6347_v9  ;;  %v4051_v2 = vadd.f32 %v4050_v50, %v4037_v26  ;;  %v6408_v9 = vld [vmem:[%s7649_s3 + $0xe38] sm:$0xf0]  ;;  %v7078_v14 = vld [vmem:[%s7649_s3 + $0xd0c] sm:$0xf] }
 0x247   : > { %4309 = vmatpush.bf16.msrb.mxu2 %v6475_v63  ;;  %v4010_v0 = vpop.f32.mrf.mxu0  ;;  %v7146_v63 = vld [vmem:[%s7649_s3 + $0xf2c] sm:$0xf] }
 0x248   : > { %4323 = vmatpush.bf16.msrb.mxu3 %v6603_v52  ;;  %v4011_v1 = vadd.f32 %v4010_v0, %v8813_v36  ;;  %v6280_v36 = vld [vmem:[%s7649_s3 + $0xd38] sm:$0xf0]  ;;  %v6411_v52 = vor.u32 %v7114_v47, %v6408_v9  ;;  %v6539_v56 = vor.u32 %v7146_v63, %v6536_v11  ;;  %v7110_v21 = vld [vmem:[%s7649_s3 + $0xe0c] sm:$0xf] }
 0x249   : > { %4282 = vmatpush.bf16.msrb.mxu0 %v6203_v22  ;;  %v6283_v51 = vor.u32 %v7082_v60, %v6280_v36  ;;  %v4038_v16 = vpop.f32.mrf.mxu2  ;;  %v6392_v22 = vld [vmem:[%s7649_s3 + $0xe18] sm:$0xf0] }
 0x24a   : > { %4296 = vmatpush.bf16.msrb.mxu1 %v6331_v27  ;;  %v4025_v32 = vadd.f32 %v4024_v25, %v4011_v1  ;;  %v4052_v27 = vpop.f32.mrf.mxu3  ;;  %v6395_v44 = vor.u32 %v7110_v21, %v6392_v22 }
 0x24b   : > { %4310 = vmatpush.bf16.msrb.mxu2 %v6459_v28  ;;  %v7142_v28 = vld [vmem:[%s7649_s3 + $0xf0c] sm:$0xf] }
 0x24c   : > { %4324 = vmatpush.bf16.msrb.mxu3 %v6587_v6  ;;  %v4039_v23 = vadd.f32 %v4038_v16, %v4025_v32  ;;  %v6267_v6 = vor.u32 %v7078_v14, %v6264_v18  ;;  %v6523_v31 = vor.u32 %v7142_v28, %v6520_v24 }
 0x24d   : > { %4283 = vmatpush.bf16.msrb.mxu0 %v6187_v40 }
 0x24e   : > { %4297 = vmatpush.bf16.msrb.mxu1 %v6315_v41  ;;  %v4053_v58 = vadd.f32 %v4052_v27, %v4039_v23 }
 0x24f   : > { %4311 = vmatpush.bf16.msrb.mxu2 %v6443_v42 }
 0x250   : > { %4325 = vmatpush.bf16.msrb.mxu3 %v6571_v10 }
 0x251   : > { %4284 = vmatpush.bf16.msrb.mxu0 %v6171_v55 }
 0x252   : > { %4298 = vmatpush.bf16.msrb.mxu1 %v6299_v30 }
 0x253   : > { %4312 = vmatpush.bf16.msrb.mxu2 %v6427_v3 }
 0x254   : > { %4326 = vmatpush.bf16.msrb.mxu3 %v6555_v7 }
 0x255   : > { %4285 = vmatpush.bf16.msrb.mxu0 %v6155_v12 }
 0x256   : > { %4299 = vmatpush.bf16.msrb.mxu1 %v6283_v51 }
 0x257   : > { %4313 = vmatpush.bf16.msrb.mxu2 %v6411_v52 }
 0x258   : > { %4327 = vmatpush.bf16.msrb.mxu3 %v6539_v56 }
 0x259   : > { %4286 = vmatpush.bf16.msrb.mxu0 %v6139_v37  ;;  %v4064_v35 = vpop.f32.mrf.mxu0 }
 0x25a   : > { %4300 = vmatpush.bf16.msrb.mxu1 %v6267_v6  ;;  %v4065_v53 = vadd.f32 %v4064_v35, %v4051_v2  ;;  %v4078_v38 = vpop.f32.mrf.mxu1 }
 0x25b   : > { %4314 = vmatpush.bf16.msrb.mxu2 %v6395_v44 }
 0x25c   : > { %4328 = vmatpush.bf16.msrb.mxu3 %v6523_v31  ;;  %4287 = vmatmul.bf16.vlgmr.msrb.gmra.mxu0 %v7995_v48  ;;  %v4079_v39 = vadd.f32 %v4078_v38, %v4065_v53 }
 0x25d   : > { %4301 = vmatmul.bf16.vlgmr.msrb.gmra.mxu1 %v8002_v57 }
 0x25e   : > { %4315 = vmatmul.bf16.vlgmr.msrb.gmra.mxu2 %v8000_v54 }
 0x25f   : > { %4329 = vmatmul.bf16.vlgmr.msrb.gmra.mxu3 %v8006_v62 }
 0x261   : > { %v4092_v40 = vpop.f32.mrf.mxu2  ;;  %v4066_v42 = vpop.f32.mrf.mxu0 }
 0x262   : > { %v4093_v41 = vadd.f32 %v4092_v40, %v4079_v39  ;;  %v4106_v43 = vpop.f32.mrf.mxu3  ;;  %v4067_v29 = vadd.f32 %v4066_v42, %v4053_v58  ;;  %v4080_v45 = vpop.f32.mrf.mxu1 }
 0x264   : > { %v8883_v10 = vadd.f32 %v4106_v43, %v4093_v41  ;;  %v4081_v8 = vadd.f32 %v4080_v45, %v4067_v29 }
 0x269   : > { %v4094_v48 = vpop.f32.mrf.mxu2 }
 0x26a   : > { %v4095_v46 = vadd.f32 %v4094_v48, %v4081_v8  ;;  %v4108_v57 = vpop.f32.mrf.mxu3 }
 0x26c   : > { %v8885_v17 = vadd.f32 %v4108_v57, %v4095_v46 }
 0x279   : > { %v4120_v54 = vpop.f32.mrf.mxu0 }
 0x27a   : > { %v4134_v62 = vpop.f32.mrf.mxu1 }
 0x27b   : > { %v4135_v1 = vadd.f32 %v4134_v62, %v4120_v54 }
 0x281   : > { %v4148_v49 = vpop.f32.mrf.mxu2  ;;  %v4122_v0 = vpop.f32.mrf.mxu0 }
 0x282   : > { %v4162_v26 = vpop.f32.mrf.mxu3  ;;  %v4136_v50 = vpop.f32.mrf.mxu1  ;;  %v4149_v2 = vadd.f32 %v4148_v49, %v4135_v1 }
 0x283   : > { %v4137_v60 = vadd.f32 %v4136_v50, %v4122_v0 }
 0x284   : > { %v4163_v3 = vadd.f32 %v4162_v26, %v4149_v2 }
 0x289   : > { %v4150_v33 = vpop.f32.mrf.mxu2 }
 0x28a   : > { %v4164_v61 = vpop.f32.mrf.mxu3  ;;  %v4151_v36 = vadd.f32 %v4150_v33, %v4137_v60 }
 0x28c   : > { %v4165_v12 = vadd.f32 %v4164_v61, %v4151_v36 }
 0x299   : > { %v4176_v55 = vpop.f32.mrf.mxu0 }
 0x29a   : > { %v4190_v25 = vpop.f32.mrf.mxu1  ;;  %v4177_v7 = vadd.f32 %v4176_v55, %v4163_v3 }
 0x29c   : > { %v4191_v47 = vadd.f32 %v4190_v25, %v4177_v7 }
 0x2a1   : > { %v4204_v30 = vpop.f32.mrf.mxu2  ;;  %v4178_v59 = vpop.f32.mrf.mxu0 }
 0x2a2   : > { %v4218_v4 = vpop.f32.mrf.mxu3  ;;  %v4192_v32 = vpop.f32.mrf.mxu1  ;;  %v4205_v51 = vadd.f32 %v4204_v30, %v4191_v47  ;;  %v4179_v13 = vadd.f32 %v4178_v59, %v4165_v12 }
 0x2a4   : > { %v4219_v20 = vadd.f32 %v4218_v4, %v4205_v51  ;;  %v4193_v56 = vadd.f32 %v4192_v32, %v4179_v13 }
 0x2a9   : > { %v4206_v9 = vpop.f32.mrf.mxu2 }
 0x2aa   : > { %v4220_v63 = vpop.f32.mrf.mxu3  ;;  %v4207_v21 = vadd.f32 %v4206_v9, %v4193_v56 }
 0x2ac   : > { %v4221_v28 = vadd.f32 %v4220_v63, %v4207_v21 }
 0x2b9   : > { %v4232_v11 = vpop.f32.mrf.mxu0 }
 0x2ba   : > { %v4246_v52 = vpop.f32.mrf.mxu1  ;;  %v4233_v16 = vadd.f32 %v4232_v11, %v4219_v20 }
 0x2bc   : > { %v4247_v23 = vadd.f32 %v4246_v52, %v4233_v16 }
 0x2c1   : > { %v4260_v14 = vpop.f32.mrf.mxu2  ;;  %v4234_v22 = vpop.f32.mrf.mxu0 }
 0x2c2   : > { %v4274_v18 = vpop.f32.mrf.mxu3  ;;  %v4248_v27 = vpop.f32.mrf.mxu1  ;;  %v4261_v24 = vadd.f32 %v4260_v14, %v4247_v23  ;;  %v4235_v37 = vadd.f32 %v4234_v22, %v4221_v28 }
 0x2c4   : > { %v4275_v6 = vadd.f32 %v4274_v18, %v4261_v24  ;;  %v4249_v35 = vadd.f32 %v4248_v27, %v4235_v37 }
 0x2c9   : > { %v4262_v58 = vpop.f32.mrf.mxu2 }
 0x2ca   : > { %v4276_v44 = vpop.f32.mrf.mxu3  ;;  %v4263_v39 = vadd.f32 %v4262_v58, %v4249_v35 }
 0x2cc   : > { %v4277_v42 = vadd.f32 %v4276_v44, %v4263_v39 }
 0x2d9   : > { %v4288_v31 = vpop.f32.mrf.mxu0 }
 0x2da   : > { %v4289_v53 = vadd.f32 %v4288_v31, %v4275_v6  ;;  %v4302_v38 = vpop.f32.mrf.mxu1 }
 0x2dc   : > { %v4303_v40 = vadd.f32 %v4302_v38, %v4289_v53 }
 0x2e1   : > { %v4316_v41 = vpop.f32.mrf.mxu2  ;;  %v4290_v45 = vpop.f32.mrf.mxu0 }
 0x2e2   : > { %v4317_v43 = vadd.f32 %v4316_v41, %v4303_v40  ;;  %v4330_v29 = vpop.f32.mrf.mxu3  ;;  %v4291_v48 = vadd.f32 %v4290_v45, %v4277_v42  ;;  %v4304_v46 = vpop.f32.mrf.mxu1 }
 0x2e4   : > { %v4331_v8 = vadd.f32 %v4330_v29, %v4317_v43  ;;  %v4305_v57 = vadd.f32 %v4304_v46, %v4291_v48 }
 0x2e8   : > { %4338 = sbr.rel (%p6636_p7) target bundleno = 757 (0x2f5), region = 59 }
 0x2e9   : > { %v4318_v54 = vpop.f32.mrf.mxu2 }
 0x2ea   : > { %v4319_v62 = vadd.f32 %v4318_v54, %v4305_v57  ;;  %v4332_v49 = vpop.f32.mrf.mxu3 }
 0x2ec   : > { %v4333_v26 = vadd.f32 %v4332_v49, %v4319_v62 }
 0x2ed   : > { %4339 = vst [vmem:[%s8888_s25] sm:$0xff] %v8349_v34 }
 0x2ee   : > { %4340 = vst [vmem:[%s8888_s25 + $0x8] sm:$0xff] %v8643_v19 }
 0x2ef   : > { %4341 = vst [vmem:[%s8888_s25 + $0x10] sm:$0xff] %v8883_v10 }
 0x2f0   : > { %4342 = vst [vmem:[%s8888_s25 + $0x18] sm:$0xff] %v4331_v8 }
 0x2f1   : > { %4343 = vst [vmem:[%s8888_s25 + $0x20] sm:$0xff] %v8373_v15 }
 0x2f2   : > { %4344 = vst [vmem:[%s8888_s25 + $0x28] sm:$0xff] %v8667_v5 }
 0x2f3   : > { %4345 = vst [vmem:[%s8888_s25 + $0x30] sm:$0xff] %v8885_v17 }
 0x2f4   : > { %4346 = vst [vmem:[%s8888_s25 + $0x38] sm:$0xff] %v4333_v26 }
 0x2f5 PF: > { %p6637_p10 = scmp.le.s32.totalorder %s7443_s17, 0 }
 0x2f7   : > { %4350 = sbr.rel (%p6637_p10) target bundleno = 775 (0x307), region = 63 }
 0x2fc   : > { %v4351_v0 = vld [vmem:[%s8888_s25] sm:$0xff]  ;;  %v4352_v50 = vld [vmem:[%s8888_s25 + $0x8] sm:$0xff]  ;;  %v4353_v33 = vld [vmem:[%s8888_s25 + $0x10] sm:$0xff] }
 0x2fd   : > { %v4359_v61 = vadd.f32 %v4351_v0, %v8349_v34  ;;  %v4360_v1 = vadd.f32 %v4352_v50, %v8643_v19  ;;  %v4361_v55 = vadd.f32 %v4353_v33, %v8883_v10  ;;  %v4354_v25 = vld [vmem:[%s8888_s25 + $0x18] sm:$0xff]  ;;  %v4355_v2 = vld [vmem:[%s8888_s25 + $0x20] sm:$0xff]  ;;  %v4356_v30 = vld [vmem:[%s8888_s25 + $0x28] sm:$0xff] }
 0x2fe   : > { %v4362_v3 = vadd.f32 %v4354_v25, %v4331_v8  ;;  %v4357_v4 = vld [vmem:[%s8888_s25 + $0x30] sm:$0xff]  ;;  %v4363_v59 = vadd.f32 %v4355_v2, %v8373_v15  ;;  %v4358_v60 = vld [vmem:[%s8888_s25 + $0x38] sm:$0xff]  ;;  %v4364_v34 = vadd.f32 %v4356_v30, %v8667_v5 }
 0x2ff   : > { %4367 = vst [vmem:[%s8888_s25] sm:$0xff] %v4359_v61  ;;  %v4365_v19 = vadd.f32 %v4357_v4, %v8885_v17  ;;  %v4366_v10 = vadd.f32 %v4358_v60, %v4333_v26 }
 0x300   : > { %4368 = vst [vmem:[%s8888_s25 + $0x8] sm:$0xff] %v4360_v1 }
 0x301   : > { %4369 = vst [vmem:[%s8888_s25 + $0x10] sm:$0xff] %v4361_v55 }
 0x302   : > { %4370 = vst [vmem:[%s8888_s25 + $0x18] sm:$0xff] %v4362_v3 }
 0x303   : > { %4371 = vst [vmem:[%s8888_s25 + $0x20] sm:$0xff] %v4363_v59 }
 0x304   : > { %4372 = vst [vmem:[%s8888_s25 + $0x28] sm:$0xff] %v4364_v34 }
 0x305   : > { %4373 = vst [vmem:[%s8888_s25 + $0x30] sm:$0xff] %v4365_v19 }
 0x306   : > { %4374 = vst [vmem:[%s8888_s25 + $0x38] sm:$0xff] %v4366_v10 }
 0x307 PF: > { %s7173_s17 = sshll.u32 %s7447_s18, 5  ;;  %s4391_s26 = sshll.u32 %s8888_s25, 4  ;;  %s4392_s26 = int_to_ptr.vmem [resolvable:$true] %s4391_s26 }
 0x308   : > { %s4390_s8 = scalar_lea.hbm %s8996_s2, %s7173_s17  ;;  %s4376_s23 = scalar_lea.sflag [#allocation5], %s262_s11 }
 0x309   : > { %s4393_s27 = sshll.u32 %s4390_s8, 4  ;;  %s7341_s18 = scalar_lea.hbm %s8996_s2, 128  ;;  %s4394_s27 = int_to_ptr.hbm [resolvable:$true] %s4393_s27 }
 0x30a   : > { %s7335_s5 = sshra.s32 %s4394_s27, 4  ;;  %s7336_s5 = int_to_ptr.hbm [resolvable:$true] %s7335_s5 }
 0x30b   : > { %s7337_s6 = scalar_lea.hbm %s7336_s5, 64  ;;  %p7342_p0 = scmp.lt.s32.totalorder %s7336_s5, %s8996_s2 }
 0x30c   : > { %p7338_p11 = scmp.ne.s32.totalorder %s7336_s5, %s7337_s6  ;;  %p7343_p1 = scmp.lt.s32.totalorder %s7341_s18, %s7337_s6 }
 0x30e   : > { %p7339_p12 = pnand %p7338_p11, %p7601_p4  ;;  %p7344_p2 = por %p7343_p1, %p7342_p0 }
 0x310   : > { %p7340_p13 = pneg %p7339_p12 }
 0x312   : > { %p7345_p6 = pnand %p7344_p2, %p7340_p13 }
 0x314   : > { %7348 = shalt.err (!%p7345_p6)
}
 0x315   : > { %s7464_s30 = smov 512   ;;  %s7465_s22 = smov 1024  }
 0x316   : > { %s7466_s29 = smov 32  }
 0x317   : > { %7176 = dma.vmem_to_hbm [thread:$0]  (%p7601_p4), %s4392_s26, 1024, %s4394_s27, %s4376_s23, %s7464_s30, %s7465_s22, %s7466_s29  }
 0x318 PF: > { %p7182_p3 = scmp.ge.s32.totalorder %s7459_s21, 2  ;;  %s4408_s11 = sand.u32 1, %s7411_s9  }
 0x319   : > { %s4409_s15 = scalar_lea.sflag [#allocation5], %s4408_s11 }
 0x31a   : > { %p7179_p8 = pnand %p7182_p3, %p7605_p5 }
 0x31c   : > { %p7180_p9 = pneg %p7179_p8 }
 0x31e   : > { %7406 = dma.done.wait (%p7180_p9), %s4409_s15, 1024  }
 0x31f   : > { %7408 = vsyncadd (%p7180_p9), %s4409_s15, 4294966272  ;;  %s18_s21 = sadd.s32 1, %s7459_s21   ;;  %s9019_s12 = sld [smem:[#allocation9_spill]] }
 0x320   : > { %p8950_p7 = scmp.ge.s32.totalorder %s18_s21, 14   ;;  %s9020_s11 = sld [smem:[#allocation15_spill]] }
 0x321   : > { %s9021_s17 = sld [smem:[#allocation14_spill]]  ;;  %s9026_s9 = smov %s7415_s10 }
 0x322   : > { %s9022_s15 = sld [smem:[#allocation10_spill]]  ;;  %s9032_s18 = smov %s7455_s20 }
 0x323   : > { %s9023_s16 = sld [smem:[#allocation13_spill]] }
 0x324   : > { %s9024_s4 = sld [smem:[#allocation11_spill]] }
 0x325   : > { %s9025_s7 = sld [smem:[#allocation12_spill]]  ;;  %s9027_s10 = smov %s9019_s12 }
 0x326   : > { %s9028_s12 = smov %s7427_s13  ;;  %s9029_s13 = smov %s7431_s14 }
 0x327   : > { %s9030_s14 = smov %s9021_s17  ;;  %s9031_s17 = smov %s7451_s19 }
 0x328   :  { %17 = sbr.rel (!%p8950_p7) target bundleno = 12 (0xc), region = 112 }
 0x32a   : > { %s9033_s19 = smov %s9024_s4 }
 0x32b   : > { %s9034_s20 = smov %s9025_s7 }
 0x32d   :  { %4415 = vsyncpa [#allocation4], 1 }
 0x32e   :  { %4417 = vsyncpa [#allocation4 + $0x1], 1 }
 0x32f   :  { %4418 = vsyncpa [#allocation5], 1 }
 0x330   :  { %4420 = vsyncpa [#allocation5 + $0x1], 1 }

</bundles_post_ra>
